<compile_context>
chip_gen: v6e
topology: v6e:2x2x1
jax: 0.10.0
libtpu: 0.0.40
codegen_flags: <defaults>
</compile_context>

<pallas_src>
import functools

import jax
import jax.numpy as jnp
from jax import lax
from jax.experimental import pallas as pl
from jax.experimental.pallas import tpu as pltpu

D_MODEL = 6                               # input_size (trainDim)
HIDDEN = 48                               # hidden_size
D_INNER = (HIDDEN // D_MODEL) * D_MODEL   # expand_factor * d_model = 48
D_STATE = 32
D_CONV = 16
DT_RANK = max(1, -(-D_MODEL // 16))       # ceil(d_model / 16) = 1
NUM_CLASSES = 1
RMS_EPS = 1e-5


def _sigmoid(x):
    return 1.0 / (1.0 + jnp.exp(-x))


def _silu(x):
    return x * _sigmoid(x)


def _softplus(x):
    # numerically-stable softplus using only exp/log (Mosaic-friendly)
    return jnp.where(x > 20.0, x, jnp.log(1.0 + jnp.exp(jnp.minimum(x, 20.0))))


def _mamba_classifier_kernel(
    x_ref,          # (1, L, D_MODEL)
    w_norm_ref,     # (1, D_MODEL)            RMSNorm weight
    w_in_x_ref,     # (D_MODEL, D_INNER)      in_proj, x half
    w_in_z_ref,     # (D_MODEL, D_INNER)      in_proj, z (gate) half
    w_conv_ref,     # (D_CONV, D_INNER)       depthwise conv taps
    b_conv_ref,     # (1, D_INNER)
    w_xproj_ref,    # (D_INNER, 2*D_STATE+DT_RANK)  columns reordered [B | C | dt]
    w_dt_ref,       # (DT_RANK, D_INNER)
    b_dt_ref,       # (1, D_INNER)
    a_log_flat_ref, # (1, D_STATE*D_INNER)    A_log flattened, col = s*D_INNER + i
    d_ref,          # (1, D_INNER)            SSM skip D
    w_fc_ref,       # (NUM_CLASSES, D_INNER)
    b_fc_ref,       # (1, NUM_CLASSES)
    out_ref,        # (1, 1, NUM_CLASSES)     per-batch output block
    xin_pad_ref,    # VMEM (L + D_CONV, D_INNER)  conv staging (D_CONV leading zeros)
    delta_ref,      # VMEM (L, D_INNER)
    u_ref,          # VMEM (L, D_INNER)       delta * x_c
    bm_ref,         # VMEM (L, D_STATE)       B(t) * C(last)
    *, tc,
):
    L = x_ref.shape[1]
    n_chunks = L // tc

    xb = x_ref[0]                                                   # (L, D_MODEL)

    # ---- RMSNorm over the feature axis ----
    var = jnp.mean(xb * xb, axis=-1, keepdims=True)
    xn = xb * lax.rsqrt(var + RMS_EPS) * w_norm_ref[...]            # (L, D_MODEL)

    # ---- in_proj x-half for all timesteps (K=6 broadcast-FMAs on the VPU) ----
    w_in_x = w_in_x_ref[...]
    x_in = jnp.zeros((L, D_INNER), jnp.float32)
    for dd in range(D_MODEL):
        x_in = x_in + xn[:, dd:dd + 1] * w_in_x[dd:dd + 1, :]

    # ---- gate z only for the last timestep (only z[L-1] feeds the classifier) ----
    xn_last = xn[L - 1:L, :]
    w_in_z = w_in_z_ref[...]
    z_last = jnp.zeros((1, D_INNER), jnp.float32)
    for dd in range(D_MODEL):
        z_last = z_last + xn_last[:, dd:dd + 1] * w_in_z[dd:dd + 1, :]

    # ---- causal depthwise conv1d: stage padded x_in in VMEM, taps are ref loads ----
    # D_CONV leading zero rows => the x_in store is sublane-aligned; tap k reads rows
    # [k+1, k+1+L) which reproduces y[t] = sum_k w[k] * x_in[t - (D_CONV-1) + k].
    xin_pad_ref[:D_CONV, :] = jnp.zeros((D_CONV, D_INNER), jnp.float32)
    xin_pad_ref[D_CONV:, :] = x_in
    w_conv = w_conv_ref[...]
    acc_c = jnp.zeros((L, D_INNER), jnp.float32)
    for k in range(D_CONV):                                         # static unroll
        acc_c = acc_c + xin_pad_ref[k + 1:k + 1 + L, :] * w_conv[k:k + 1, :]
    x_c = _silu(acc_c + b_conv_ref[...])                            # (L, D_INNER)

    # ---- x_proj -> (B, C, delta_rank); columns pre-ordered [B | C | dt] ----
    dbc = jnp.dot(x_c, w_xproj_ref[...], preferred_element_type=jnp.float32)
    bm = dbc[:, :D_STATE]                                           # (L, D_STATE)
    cm_last = dbc[L - 1:L, D_STATE:2 * D_STATE]                     # (1, D_STATE)
    d_r = dbc[:, 2 * D_STATE:2 * D_STATE + DT_RANK]                 # (L, DT_RANK)

    # ---- dt_proj + softplus (DT_RANK=1: one VPU broadcast-FMA) ----
    w_dt = w_dt_ref[...]
    delta_pre = jnp.zeros((L, D_INNER), jnp.float32) + b_dt_ref[...]
    for r in range(DT_RANK):
        delta_pre = delta_pre + d_r[:, r:r + 1] * w_dt[r:r + 1, :]
    delta = _softplus(delta_pre)                                    # (L, D_INNER)

    x_c_last = x_c[L - 1:L, :]

    # stash per-timestep quantities; fold C(last) into B so the final state
    # contraction becomes a plain block-sum over the flat lane axis.
    delta_ref[...] = delta
    u_ref[...] = delta * x_c
    bm_ref[...] = bm * cm_last

    # A, flat over lanes: column s*D_INNER + i holds A[i, s] = -exp(A_log[i, s]).
    a_flat = -jnp.exp(a_log_flat_ref[...])                          # (1, 1536)

    # strictly-upper-triangular ones matrix: intra-chunk exclusive suffix sums as a
    # tiny MXU matmul (keeps every time slice 8-row aligned, no shifted value copies).
    row_i = lax.broadcasted_iota(jnp.int32, (tc, tc), 0)
    col_i = lax.broadcasted_iota(jnp.int32, (tc, tc), 1)
    tri = (col_i > row_i).astype(jnp.float32)                       # (tc, tc)

    # ---- h_last[i,s] = sum_t exp(S_t[i] A[i,s]) * u[t,i] * (B[t,s] C_last[s]) ----
    # Chunks processed in REVERSE order carrying the running suffix of delta, so the
    # full-sequence exclusive suffix S_t is (running suffix) + (intra-chunk suffix).
    def chunk_body(m, carry):
        acc, run_sfx = carry
        c = n_chunks - 1 - m
        off = pl.multiple_of(c * tc, tc)
        d_c = delta_ref[pl.ds(off, tc), :]                          # (tc, D_INNER)
        u_c = u_ref[pl.ds(off, tc), :]                              # (tc, D_INNER)
        b_c = bm_ref[pl.ds(off, tc), :]                             # (tc, D_STATE)
        s_loc = jnp.dot(tri, d_c, preferred_element_type=jnp.float32)
        s_tot = s_loc + run_sfx                                     # (tc, D_INNER)
        # lane-flatten to (tc, 1536): column s*48+i
        s_rep = jnp.concatenate([s_tot] * D_STATE, axis=1)          # tile over state blocks
        ub_rep = jnp.concatenate(
            [u_c * b_c[:, s:s + 1] for s in range(D_STATE)], axis=1)
        g = jnp.exp(s_rep * a_flat) * ub_rep                        # (tc, 1536)
        acc = acc + jnp.sum(g, axis=0, keepdims=True)               # (1, 1536)
        run_sfx = run_sfx + jnp.sum(d_c, axis=0, keepdims=True)     # (1, D_INNER)
        return acc, run_sfx

    acc0 = jnp.zeros((1, D_STATE * D_INNER), jnp.float32)
    sfx0 = jnp.zeros((1, D_INNER), jnp.float32)
    acc, _ = lax.fori_loop(0, n_chunks, chunk_body, (acc0, sfx0))

    # ---- y_last[i] = sum_s C_last[s] h[i,s]  (C already folded in) -> block-sum ----
    y_last = jnp.zeros((1, D_INNER), jnp.float32)
    for s in range(D_STATE):
        y_last = y_last + acc[:, s * D_INNER:(s + 1) * D_INNER]

    # ---- D skip, gate, classifier head ----
    y_last = y_last + x_c_last * d_ref[...]
    out_last = y_last * _silu(z_last)                               # (1, D_INNER)
    logits = jnp.sum(out_last * w_fc_ref[...], axis=-1, keepdims=True) + b_fc_ref[...]
    out_ref[0] = logits                                             # (1, NUM_CLASSES)


def mamba_classifier_forward(x, params):
    """x: (B, L, D_MODEL) f32 -> logits (B, NUM_CLASSES) f32."""
    (w_norm, w_in, w_conv, b_conv, w_xproj, w_dt, b_dt,
     a_log_t, d_vec, w_fc, b_fc) = params
    B, L, D = x.shape
    assert D == D_MODEL

    # time-chunk size for the parallel reduction (must divide L; keep >= 8 for alignment)
    tc = 16
    while L % tc:
        tc //= 2
    # TODO(synk): for L not divisible by 8/16 this degrades to small tc; a masked
    # remainder chunk would be the cleaner fix.

    # wrapper-side (free, XLA) weight re-layouts for the kernel:
    w_in_x = w_in[:, :D_INNER]
    w_in_z = w_in[:, D_INNER:]
    # reorder x_proj columns to [B | C | dt] so the full-length B slice starts at lane 0
    w_xproj_r = jnp.concatenate(
        [w_xproj[:, DT_RANK:DT_RANK + D_STATE],
         w_xproj[:, DT_RANK + D_STATE:],
         w_xproj[:, :DT_RANK]], axis=1)
    a_log_flat = a_log_t.reshape(1, D_STATE * D_INNER)

    kparams = (w_norm, w_in_x, w_in_z, w_conv, b_conv, w_xproj_r, w_dt, b_dt,
               a_log_flat, d_vec, w_fc, b_fc)

    in_specs = [pl.BlockSpec((1, L, D_MODEL), lambda b: (b, 0, 0))]
    in_specs += [pl.BlockSpec(p.shape, lambda b: (0, 0)) for p in kparams]

    grid_spec = pltpu.PrefetchScalarGridSpec(
        num_scalar_prefetch=0,
        grid=(B,),
        in_specs=in_specs,
        out_specs=pl.BlockSpec((1, 1, NUM_CLASSES), lambda b: (b, 0, 0)),
        scratch_shapes=[
            pltpu.VMEM((L + D_CONV, D_INNER), jnp.float32),   # padded conv input
            pltpu.VMEM((L, D_INNER), jnp.float32),            # delta
            pltpu.VMEM((L, D_INNER), jnp.float32),            # delta * x_c
            pltpu.VMEM((L, D_STATE), jnp.float32),            # B * C_last
        ],
    )
    out = pl.pallas_call(
        functools.partial(_mamba_classifier_kernel, tc=tc),
        out_shape=jax.ShapeDtypeStruct((B, 1, NUM_CLASSES), jnp.float32),
        grid_spec=grid_spec,
        compiler_params=pltpu.CompilerParams(
            dimension_semantics=("parallel",),
            vmem_limit_bytes=32 * 1024 * 1024),
    )(x, *kparams)
    return out[:, 0, :]


def mamba_classifier_reference(x, params):
    """Pure-JAX reference using the original sequential selective scan."""
    (w_norm, w_in, w_conv, b_conv, w_xproj, w_dt, b_dt, a_log_t, d_vec, w_fc, b_fc) = params
    B, L, _ = x.shape

    var = jnp.mean(x * x, axis=-1, keepdims=True)
    xn = x * lax.rsqrt(var + RMS_EPS) * w_norm[0]
    xz = xn @ w_in
    x_in, z = xz[..., :D_INNER], xz[..., D_INNER:]

    acc = jnp.zeros((B, L, D_INNER), jnp.float32)
    for k in range(D_CONV):
        shift = D_CONV - 1 - k
        if shift == 0:
            shifted = x_in
        else:
            shifted = jnp.concatenate(
                [jnp.zeros((B, shift, D_INNER), jnp.float32), x_in[:, : L - shift]], axis=1)
        acc = acc + shifted * w_conv[k]
    x_c = _silu(acc + b_conv[0])

    dbc = x_c @ w_xproj
    d_r = dbc[..., :DT_RANK]
    Bm = dbc[..., DT_RANK:DT_RANK + D_STATE]
    Cm = dbc[..., DT_RANK + D_STATE:]
    delta = _softplus(jnp.einsum("blr,rd->bld", d_r, w_dt) + b_dt[0])

    A = -jnp.exp(a_log_t.T)                                   # (D_INNER, D_STATE)
    dA = jnp.exp(delta[..., None] * A)                        # (B, L, D_INNER, D_STATE)
    dBx = (delta * x_c)[..., None] * Bm[:, :, None, :]

    def step(h, inp):
        da_t, bx_t = inp
        return da_t * h + bx_t, None

    h0 = jnp.zeros((B, D_INNER, D_STATE), jnp.float32)
    h_last, _ = lax.scan(step, h0, (jnp.moveaxis(dA, 1, 0), jnp.moveaxis(dBx, 1, 0)))

    y = jnp.sum(h_last * Cm[:, -1, None, :], axis=-1) + x_c[:, -1, :] * d_vec[0]
    out = y * _silu(z[:, -1, :])
    return out @ w_fc.T + b_fc


def init_params(key):
    ks = jax.random.split(key, 8)

    def rnd(k, shape, scale):
        return scale * jax.random.normal(k, shape, jnp.float32)

    w_norm = jnp.ones((1, D_MODEL), jnp.float32)
    w_in = rnd(ks[0], (D_MODEL, 2 * D_INNER), 0.3)
    w_conv = rnd(ks[1], (D_CONV, D_INNER), 0.2)
    b_conv = rnd(ks[2], (1, D_INNER), 0.05)
    w_xproj = rnd(ks[3], (D_INNER, DT_RANK + 2 * D_STATE), 0.15)
    w_dt = rnd(ks[4], (DT_RANK, D_INNER), 0.5)
    b_dt = jnp.full((1, D_INNER), -2.0, jnp.float32) + rnd(ks[5], (1, D_INNER), 0.1)
    a_log_t = jnp.log(jnp.broadcast_to(
        jnp.arange(1, D_STATE + 1, dtype=jnp.float32)[:, None], (D_STATE, D_INNER)))
    d_vec = jnp.ones((1, D_INNER), jnp.float32)
    w_fc = rnd(ks[6], (NUM_CLASSES, D_INNER), 0.2)
    b_fc = jnp.zeros((1, NUM_CLASSES), jnp.float32)
    return (w_norm, w_in, w_conv, b_conv, w_xproj, w_dt, b_dt, a_log_t, d_vec, w_fc, b_fc)


if __name__ == "__main__":
    B, L = 2, 64   # small seq for the demo (script default is 1000; 1000 % 8 == 0 too)
    key = jax.random.PRNGKey(0)
    k_params, k_x = jax.random.split(key)

    params = init_params(k_params)
    x = jax.random.normal(k_x, (B, L, D_MODEL), jnp.float32)

    logits = mamba_classifier_forward(x, params)
    logits = jax.block_until_ready(logits)

    ref = mamba_classifier_reference(x, params)
    assert logits.shape == (B, NUM_CLASSES)
    assert bool(jnp.all(jnp.isfinite(logits)))
    max_err = float(jnp.max(jnp.abs(logits - ref)))
    assert max_err < 5e-2, f"kernel/reference mismatch: {max_err}"

    print("KERNEL_OK")
</pallas_src>

<mosaic_0001>
module attributes {stable_mosaic.version = 11 : i64} {
  func.func @_mamba_classifier_kernel(%arg0: i32, %arg1: memref<1x64x6xf32, #tpu.memory_space<vmem>>, %arg2: memref<1x6xf32, #tpu.memory_space<vmem>>, %arg3: memref<6x48xf32, #tpu.memory_space<vmem>>, %arg4: memref<6x48xf32, #tpu.memory_space<vmem>>, %arg5: memref<16x48xf32, #tpu.memory_space<vmem>>, %arg6: memref<1x48xf32, #tpu.memory_space<vmem>>, %arg7: memref<48x65xf32, #tpu.memory_space<vmem>>, %arg8: memref<1x48xf32, #tpu.memory_space<vmem>>, %arg9: memref<1x48xf32, #tpu.memory_space<vmem>>, %arg10: memref<1x1536xf32, #tpu.memory_space<vmem>>, %arg11: memref<1x48xf32, #tpu.memory_space<vmem>>, %arg12: memref<1x48xf32, #tpu.memory_space<vmem>>, %arg13: memref<1x1xf32, #tpu.memory_space<vmem>>, %arg14: memref<1x1x1xf32, #tpu.memory_space<vmem>>, %arg15: memref<80x48xf32, #tpu.memory_space<vmem>>, %arg16: memref<64x48xf32, #tpu.memory_space<vmem>>, %arg17: memref<64x48xf32, #tpu.memory_space<vmem>>, %arg18: memref<64x32xf32, #tpu.memory_space<vmem>>) attributes {dimension_semantics = [#tpu.dimension_semantics<parallel>], iteration_bounds = array<i64: 2>, scalar_prefetch = 0 : i64, scratch_operands = 4 : i64, tpu.core_type = #tpu.core_type<tc>, window_params = [{transform_indices = @transform_0, window_bounds = array<i64: 1, 64, 6>}, {pipeline_mode = #tpu.pipeline_mode<synchronous>, transform_indices = @transform_1, window_bounds = array<i64: 1, 6>}, {pipeline_mode = #tpu.pipeline_mode<synchronous>, transform_indices = @transform_2, window_bounds = array<i64: 6, 48>}, {pipeline_mode = #tpu.pipeline_mode<synchronous>, transform_indices = @transform_3, window_bounds = array<i64: 6, 48>}, {pipeline_mode = #tpu.pipeline_mode<synchronous>, transform_indices = @transform_4, window_bounds = array<i64: 16, 48>}, {pipeline_mode = #tpu.pipeline_mode<synchronous>, transform_indices = @transform_5, window_bounds = array<i64: 1, 48>}, {pipeline_mode = #tpu.pipeline_mode<synchronous>, transform_indices = @transform_6, window_bounds = array<i64: 48, 65>}, {pipeline_mode = #tpu.pipeline_mode<synchronous>, transform_indices = @transform_7, window_bounds = array<i64: 1, 48>}, {pipeline_mode = #tpu.pipeline_mode<synchronous>, transform_indices = @transform_8, window_bounds = array<i64: 1, 48>}, {pipeline_mode = #tpu.pipeline_mode<synchronous>, transform_indices = @transform_9, window_bounds = array<i64: 1, 1536>}, {pipeline_mode = #tpu.pipeline_mode<synchronous>, transform_indices = @transform_10, window_bounds = array<i64: 1, 48>}, {pipeline_mode = #tpu.pipeline_mode<synchronous>, transform_indices = @transform_11, window_bounds = array<i64: 1, 48>}, {pipeline_mode = #tpu.pipeline_mode<synchronous>, transform_indices = @transform_12, window_bounds = array<i64: 1, 1>}, {transform_indices = @transform_13, window_bounds = array<i64: 1, 1, 1>}]} {
    %c0 = arith.constant 0 : index
    %c0_0 = arith.constant 0 : index
    %c0_1 = arith.constant 0 : index
    %0 = vector.load %arg1[%c0, %c0_0, %c0_1] : memref<1x64x6xf32, #tpu.memory_space<vmem>>, vector<1x64x6xf32>
    %1 = vector.shape_cast %0 : vector<1x64x6xf32> to vector<64x6xf32>
    %2 = arith.mulf %1, %1 : vector<64x6xf32>
    %cst = arith.constant dense<0.000000e+00> : vector<64xf32>
    %3 = vector.multi_reduction <add>, %2, %cst [1] : vector<64x6xf32> to vector<64xf32>
    %4 = vector.shape_cast %3 : vector<64xf32> to vector<64x1xf32>
    %cst_2 = arith.constant 6.000000e+00 : f32
    %5 = vector.broadcast %cst_2 : f32 to vector<64x1xf32>
    %6 = arith.divf %4, %5 : vector<64x1xf32>
    %cst_3 = arith.constant 9.99999974E-6 : f32
    %7 = vector.broadcast %cst_3 : f32 to vector<64x1xf32>
    %8 = arith.addf %6, %7 : vector<64x1xf32>
    %9 = math.rsqrt %8 : vector<64x1xf32>
    %10 = vector.broadcast %9 : vector<64x1xf32> to vector<64x6xf32>
    %11 = arith.mulf %1, %10 : vector<64x6xf32>
    %c0_4 = arith.constant 0 : index
    %c0_5 = arith.constant 0 : index
    %12 = vector.load %arg2[%c0_4, %c0_5] : memref<1x6xf32, #tpu.memory_space<vmem>>, vector<1x6xf32>
    %13 = vector.broadcast %12 : vector<1x6xf32> to vector<64x6xf32>
    %14 = arith.mulf %11, %13 : vector<64x6xf32>
    %c0_6 = arith.constant 0 : index
    %c0_7 = arith.constant 0 : index
    %15 = vector.load %arg3[%c0_6, %c0_7] : memref<6x48xf32, #tpu.memory_space<vmem>>, vector<6x48xf32>
    %cst_8 = arith.constant 0.000000e+00 : f32
    %16 = vector.broadcast %cst_8 : f32 to vector<64x48xf32>
    %17 = vector.extract_strided_slice %14 {offsets = [0, 0], sizes = [64, 1], strides = [1, 1]} : vector<64x6xf32> to vector<64x1xf32>
    %18 = vector.extract_strided_slice %15 {offsets = [0, 0], sizes = [1, 48], strides = [1, 1]} : vector<6x48xf32> to vector<1x48xf32>
    %19 = vector.broadcast %17 : vector<64x1xf32> to vector<64x48xf32>
    %20 = vector.broadcast %18 : vector<1x48xf32> to vector<64x48xf32>
    %21 = arith.mulf %19, %20 : vector<64x48xf32>
    %22 = arith.addf %16, %21 : vector<64x48xf32>
    %23 = vector.extract_strided_slice %14 {offsets = [0, 1], sizes = [64, 1], strides = [1, 1]} : vector<64x6xf32> to vector<64x1xf32>
    %24 = vector.extract_strided_slice %15 {offsets = [1, 0], sizes = [1, 48], strides = [1, 1]} : vector<6x48xf32> to vector<1x48xf32>
    %25 = vector.broadcast %23 : vector<64x1xf32> to vector<64x48xf32>
    %26 = vector.broadcast %24 : vector<1x48xf32> to vector<64x48xf32>
    %27 = arith.mulf %25, %26 : vector<64x48xf32>
    %28 = arith.addf %22, %27 : vector<64x48xf32>
    %29 = vector.extract_strided_slice %14 {offsets = [0, 2], sizes = [64, 1], strides = [1, 1]} : vector<64x6xf32> to vector<64x1xf32>
    %30 = vector.extract_strided_slice %15 {offsets = [2, 0], sizes = [1, 48], strides = [1, 1]} : vector<6x48xf32> to vector<1x48xf32>
    %31 = vector.broadcast %29 : vector<64x1xf32> to vector<64x48xf32>
    %32 = vector.broadcast %30 : vector<1x48xf32> to vector<64x48xf32>
    %33 = arith.mulf %31, %32 : vector<64x48xf32>
    %34 = arith.addf %28, %33 : vector<64x48xf32>
    %35 = vector.extract_strided_slice %14 {offsets = [0, 3], sizes = [64, 1], strides = [1, 1]} : vector<64x6xf32> to vector<64x1xf32>
    %36 = vector.extract_strided_slice %15 {offsets = [3, 0], sizes = [1, 48], strides = [1, 1]} : vector<6x48xf32> to vector<1x48xf32>
    %37 = vector.broadcast %35 : vector<64x1xf32> to vector<64x48xf32>
    %38 = vector.broadcast %36 : vector<1x48xf32> to vector<64x48xf32>
    %39 = arith.mulf %37, %38 : vector<64x48xf32>
    %40 = arith.addf %34, %39 : vector<64x48xf32>
    %41 = vector.extract_strided_slice %14 {offsets = [0, 4], sizes = [64, 1], strides = [1, 1]} : vector<64x6xf32> to vector<64x1xf32>
    %42 = vector.extract_strided_slice %15 {offsets = [4, 0], sizes = [1, 48], strides = [1, 1]} : vector<6x48xf32> to vector<1x48xf32>
    %43 = vector.broadcast %41 : vector<64x1xf32> to vector<64x48xf32>
    %44 = vector.broadcast %42 : vector<1x48xf32> to vector<64x48xf32>
    %45 = arith.mulf %43, %44 : vector<64x48xf32>
    %46 = arith.addf %40, %45 : vector<64x48xf32>
    %47 = vector.extract_strided_slice %14 {offsets = [0, 5], sizes = [64, 1], strides = [1, 1]} : vector<64x6xf32> to vector<64x1xf32>
    %48 = vector.extract_strided_slice %15 {offsets = [5, 0], sizes = [1, 48], strides = [1, 1]} : vector<6x48xf32> to vector<1x48xf32>
    %49 = vector.broadcast %47 : vector<64x1xf32> to vector<64x48xf32>
    %50 = vector.broadcast %48 : vector<1x48xf32> to vector<64x48xf32>
    %51 = arith.mulf %49, %50 : vector<64x48xf32>
    %52 = arith.addf %46, %51 : vector<64x48xf32>
    %53 = vector.extract_strided_slice %14 {offsets = [63, 0], sizes = [1, 6], strides = [1, 1]} : vector<64x6xf32> to vector<1x6xf32>
    %c0_9 = arith.constant 0 : index
    %c0_10 = arith.constant 0 : index
    %54 = vector.load %arg4[%c0_9, %c0_10] : memref<6x48xf32, #tpu.memory_space<vmem>>, vector<6x48xf32>
    %cst_11 = arith.constant 0.000000e+00 : f32
    %55 = vector.broadcast %cst_11 : f32 to vector<1x48xf32>
    %56 = vector.extract_strided_slice %53 {offsets = [0, 0], sizes = [1, 1], strides = [1, 1]} : vector<1x6xf32> to vector<1x1xf32>
    %57 = vector.extract_strided_slice %54 {offsets = [0, 0], sizes = [1, 48], strides = [1, 1]} : vector<6x48xf32> to vector<1x48xf32>
    %58 = vector.broadcast %56 : vector<1x1xf32> to vector<1x48xf32>
    %59 = arith.mulf %58, %57 : vector<1x48xf32>
    %60 = arith.addf %55, %59 : vector<1x48xf32>
    %61 = vector.extract_strided_slice %53 {offsets = [0, 1], sizes = [1, 1], strides = [1, 1]} : vector<1x6xf32> to vector<1x1xf32>
    %62 = vector.extract_strided_slice %54 {offsets = [1, 0], sizes = [1, 48], strides = [1, 1]} : vector<6x48xf32> to vector<1x48xf32>
    %63 = vector.broadcast %61 : vector<1x1xf32> to vector<1x48xf32>
    %64 = arith.mulf %63, %62 : vector<1x48xf32>
    %65 = arith.addf %60, %64 : vector<1x48xf32>
    %66 = vector.extract_strided_slice %53 {offsets = [0, 2], sizes = [1, 1], strides = [1, 1]} : vector<1x6xf32> to vector<1x1xf32>
    %67 = vector.extract_strided_slice %54 {offsets = [2, 0], sizes = [1, 48], strides = [1, 1]} : vector<6x48xf32> to vector<1x48xf32>
    %68 = vector.broadcast %66 : vector<1x1xf32> to vector<1x48xf32>
    %69 = arith.mulf %68, %67 : vector<1x48xf32>
    %70 = arith.addf %65, %69 : vector<1x48xf32>
    %71 = vector.extract_strided_slice %53 {offsets = [0, 3], sizes = [1, 1], strides = [1, 1]} : vector<1x6xf32> to vector<1x1xf32>
    %72 = vector.extract_strided_slice %54 {offsets = [3, 0], sizes = [1, 48], strides = [1, 1]} : vector<6x48xf32> to vector<1x48xf32>
    %73 = vector.broadcast %71 : vector<1x1xf32> to vector<1x48xf32>
    %74 = arith.mulf %73, %72 : vector<1x48xf32>
    %75 = arith.addf %70, %74 : vector<1x48xf32>
    %76 = vector.extract_strided_slice %53 {offsets = [0, 4], sizes = [1, 1], strides = [1, 1]} : vector<1x6xf32> to vector<1x1xf32>
    %77 = vector.extract_strided_slice %54 {offsets = [4, 0], sizes = [1, 48], strides = [1, 1]} : vector<6x48xf32> to vector<1x48xf32>
    %78 = vector.broadcast %76 : vector<1x1xf32> to vector<1x48xf32>
    %79 = arith.mulf %78, %77 : vector<1x48xf32>
    %80 = arith.addf %75, %79 : vector<1x48xf32>
    %81 = vector.extract_strided_slice %53 {offsets = [0, 5], sizes = [1, 1], strides = [1, 1]} : vector<1x6xf32> to vector<1x1xf32>
    %82 = vector.extract_strided_slice %54 {offsets = [5, 0], sizes = [1, 48], strides = [1, 1]} : vector<6x48xf32> to vector<1x48xf32>
    %83 = vector.broadcast %81 : vector<1x1xf32> to vector<1x48xf32>
    %84 = arith.mulf %83, %82 : vector<1x48xf32>
    %85 = arith.addf %80, %84 : vector<1x48xf32>
    %cst_12 = arith.constant 0.000000e+00 : f32
    %86 = vector.broadcast %cst_12 : f32 to vector<16x48xf32>
    %c0_13 = arith.constant 0 : index
    %c0_14 = arith.constant 0 : index
    %87 = vector.load %arg15[%c0_13, %c0_14] : memref<80x48xf32, #tpu.memory_space<vmem>>, vector<16x48xf32>
    tpu.vector_store %arg15[%c0_13, %c0_14], %86 {strides = array<i32>} : memref<80x48xf32, #tpu.memory_space<vmem>>, vector<16x48xf32>,
    %c16 = arith.constant 16 : index
    %c0_15 = arith.constant 0 : index
    %88 = vector.load %arg15[%c16, %c0_15] : memref<80x48xf32, #tpu.memory_space<vmem>>, vector<64x48xf32>
    tpu.vector_store %arg15[%c16, %c0_15], %52 {strides = array<i32>} : memref<80x48xf32, #tpu.memory_space<vmem>>, vector<64x48xf32>,
    %c0_16 = arith.constant 0 : index
    %c0_17 = arith.constant 0 : index
    %89 = vector.load %arg5[%c0_16, %c0_17] : memref<16x48xf32, #tpu.memory_space<vmem>>, vector<16x48xf32>
    %cst_18 = arith.constant 0.000000e+00 : f32
    %90 = vector.broadcast %cst_18 : f32 to vector<64x48xf32>
    %c1 = arith.constant 1 : index
    %c0_19 = arith.constant 0 : index
    %91 = vector.load %arg15[%c1, %c0_19] : memref<80x48xf32, #tpu.memory_space<vmem>>, vector<64x48xf32>
    %92 = vector.extract_strided_slice %89 {offsets = [0, 0], sizes = [1, 48], strides = [1, 1]} : vector<16x48xf32> to vector<1x48xf32>
    %93 = vector.broadcast %92 : vector<1x48xf32> to vector<64x48xf32>
    %94 = arith.mulf %91, %93 : vector<64x48xf32>
    %95 = arith.addf %90, %94 : vector<64x48xf32>
    %c2 = arith.constant 2 : index
    %c0_20 = arith.constant 0 : index
    %96 = vector.load %arg15[%c2, %c0_20] : memref<80x48xf32, #tpu.memory_space<vmem>>, vector<64x48xf32>
    %97 = vector.extract_strided_slice %89 {offsets = [1, 0], sizes = [1, 48], strides = [1, 1]} : vector<16x48xf32> to vector<1x48xf32>
    %98 = vector.broadcast %97 : vector<1x48xf32> to vector<64x48xf32>
    %99 = arith.mulf %96, %98 : vector<64x48xf32>
    %100 = arith.addf %95, %99 : vector<64x48xf32>
    %c3 = arith.constant 3 : index
    %c0_21 = arith.constant 0 : index
    %101 = vector.load %arg15[%c3, %c0_21] : memref<80x48xf32, #tpu.memory_space<vmem>>, vector<64x48xf32>
    %102 = vector.extract_strided_slice %89 {offsets = [2, 0], sizes = [1, 48], strides = [1, 1]} : vector<16x48xf32> to vector<1x48xf32>
    %103 = vector.broadcast %102 : vector<1x48xf32> to vector<64x48xf32>
    %104 = arith.mulf %101, %103 : vector<64x48xf32>
    %105 = arith.addf %100, %104 : vector<64x48xf32>
    %c4 = arith.constant 4 : index
    %c0_22 = arith.constant 0 : index
    %106 = vector.load %arg15[%c4, %c0_22] : memref<80x48xf32, #tpu.memory_space<vmem>>, vector<64x48xf32>
    %107 = vector.extract_strided_slice %89 {offsets = [3, 0], sizes = [1, 48], strides = [1, 1]} : vector<16x48xf32> to vector<1x48xf32>
    %108 = vector.broadcast %107 : vector<1x48xf32> to vector<64x48xf32>
    %109 = arith.mulf %106, %108 : vector<64x48xf32>
    %110 = arith.addf %105, %109 : vector<64x48xf32>
    %c5 = arith.constant 5 : index
    %c0_23 = arith.constant 0 : index
    %111 = vector.load %arg15[%c5, %c0_23] : memref<80x48xf32, #tpu.memory_space<vmem>>, vector<64x48xf32>
    %112 = vector.extract_strided_slice %89 {offsets = [4, 0], sizes = [1, 48], strides = [1, 1]} : vector<16x48xf32> to vector<1x48xf32>
    %113 = vector.broadcast %112 : vector<1x48xf32> to vector<64x48xf32>
    %114 = arith.mulf %111, %113 : vector<64x48xf32>
    %115 = arith.addf %110, %114 : vector<64x48xf32>
    %c6 = arith.constant 6 : index
    %c0_24 = arith.constant 0 : index
    %116 = vector.load %arg15[%c6, %c0_24] : memref<80x48xf32, #tpu.memory_space<vmem>>, vector<64x48xf32>
    %117 = vector.extract_strided_slice %89 {offsets = [5, 0], sizes = [1, 48], strides = [1, 1]} : vector<16x48xf32> to vector<1x48xf32>
    %118 = vector.broadcast %117 : vector<1x48xf32> to vector<64x48xf32>
    %119 = arith.mulf %116, %118 : vector<64x48xf32>
    %120 = arith.addf %115, %119 : vector<64x48xf32>
    %c7 = arith.constant 7 : index
    %c0_25 = arith.constant 0 : index
    %121 = vector.load %arg15[%c7, %c0_25] : memref<80x48xf32, #tpu.memory_space<vmem>>, vector<64x48xf32>
    %122 = vector.extract_strided_slice %89 {offsets = [6, 0], sizes = [1, 48], strides = [1, 1]} : vector<16x48xf32> to vector<1x48xf32>
    %123 = vector.broadcast %122 : vector<1x48xf32> to vector<64x48xf32>
    %124 = arith.mulf %121, %123 : vector<64x48xf32>
    %125 = arith.addf %120, %124 : vector<64x48xf32>
    %c8 = arith.constant 8 : index
    %c0_26 = arith.constant 0 : index
    %126 = vector.load %arg15[%c8, %c0_26] : memref<80x48xf32, #tpu.memory_space<vmem>>, vector<64x48xf32>
    %127 = vector.extract_strided_slice %89 {offsets = [7, 0], sizes = [1, 48], strides = [1, 1]} : vector<16x48xf32> to vector<1x48xf32>
    %128 = vector.broadcast %127 : vector<1x48xf32> to vector<64x48xf32>
    %129 = arith.mulf %126, %128 : vector<64x48xf32>
    %130 = arith.addf %125, %129 : vector<64x48xf32>
    %c9 = arith.constant 9 : index
    %c0_27 = arith.constant 0 : index
    %131 = vector.load %arg15[%c9, %c0_27] : memref<80x48xf32, #tpu.memory_space<vmem>>, vector<64x48xf32>
    %132 = vector.extract_strided_slice %89 {offsets = [8, 0], sizes = [1, 48], strides = [1, 1]} : vector<16x48xf32> to vector<1x48xf32>
    %133 = vector.broadcast %132 : vector<1x48xf32> to vector<64x48xf32>
    %134 = arith.mulf %131, %133 : vector<64x48xf32>
    %135 = arith.addf %130, %134 : vector<64x48xf32>
    %c10 = arith.constant 10 : index
    %c0_28 = arith.constant 0 : index
    %136 = vector.load %arg15[%c10, %c0_28] : memref<80x48xf32, #tpu.memory_space<vmem>>, vector<64x48xf32>
    %137 = vector.extract_strided_slice %89 {offsets = [9, 0], sizes = [1, 48], strides = [1, 1]} : vector<16x48xf32> to vector<1x48xf32>
    %138 = vector.broadcast %137 : vector<1x48xf32> to vector<64x48xf32>
    %139 = arith.mulf %136, %138 : vector<64x48xf32>
    %140 = arith.addf %135, %139 : vector<64x48xf32>
    %c11 = arith.constant 11 : index
    %c0_29 = arith.constant 0 : index
    %141 = vector.load %arg15[%c11, %c0_29] : memref<80x48xf32, #tpu.memory_space<vmem>>, vector<64x48xf32>
    %142 = vector.extract_strided_slice %89 {offsets = [10, 0], sizes = [1, 48], strides = [1, 1]} : vector<16x48xf32> to vector<1x48xf32>
    %143 = vector.broadcast %142 : vector<1x48xf32> to vector<64x48xf32>
    %144 = arith.mulf %141, %143 : vector<64x48xf32>
    %145 = arith.addf %140, %144 : vector<64x48xf32>
    %c12 = arith.constant 12 : index
    %c0_30 = arith.constant 0 : index
    %146 = vector.load %arg15[%c12, %c0_30] : memref<80x48xf32, #tpu.memory_space<vmem>>, vector<64x48xf32>
    %147 = vector.extract_strided_slice %89 {offsets = [11, 0], sizes = [1, 48], strides = [1, 1]} : vector<16x48xf32> to vector<1x48xf32>
    %148 = vector.broadcast %147 : vector<1x48xf32> to vector<64x48xf32>
    %149 = arith.mulf %146, %148 : vector<64x48xf32>
    %150 = arith.addf %145, %149 : vector<64x48xf32>
    %c13 = arith.constant 13 : index
    %c0_31 = arith.constant 0 : index
    %151 = vector.load %arg15[%c13, %c0_31] : memref<80x48xf32, #tpu.memory_space<vmem>>, vector<64x48xf32>
    %152 = vector.extract_strided_slice %89 {offsets = [12, 0], sizes = [1, 48], strides = [1, 1]} : vector<16x48xf32> to vector<1x48xf32>
    %153 = vector.broadcast %152 : vector<1x48xf32> to vector<64x48xf32>
    %154 = arith.mulf %151, %153 : vector<64x48xf32>
    %155 = arith.addf %150, %154 : vector<64x48xf32>
    %c14 = arith.constant 14 : index
    %c0_32 = arith.constant 0 : index
    %156 = vector.load %arg15[%c14, %c0_32] : memref<80x48xf32, #tpu.memory_space<vmem>>, vector<64x48xf32>
    %157 = vector.extract_strided_slice %89 {offsets = [13, 0], sizes = [1, 48], strides = [1, 1]} : vector<16x48xf32> to vector<1x48xf32>
    %158 = vector.broadcast %157 : vector<1x48xf32> to vector<64x48xf32>
    %159 = arith.mulf %156, %158 : vector<64x48xf32>
    %160 = arith.addf %155, %159 : vector<64x48xf32>
    %c15 = arith.constant 15 : index
    %c0_33 = arith.constant 0 : index
    %161 = vector.load %arg15[%c15, %c0_33] : memref<80x48xf32, #tpu.memory_space<vmem>>, vector<64x48xf32>
    %162 = vector.extract_strided_slice %89 {offsets = [14, 0], sizes = [1, 48], strides = [1, 1]} : vector<16x48xf32> to vector<1x48xf32>
    %163 = vector.broadcast %162 : vector<1x48xf32> to vector<64x48xf32>
    %164 = arith.mulf %161, %163 : vector<64x48xf32>
    %165 = arith.addf %160, %164 : vector<64x48xf32>
    %c16_34 = arith.constant 16 : index
    %c0_35 = arith.constant 0 : index
    %166 = vector.load %arg15[%c16_34, %c0_35] : memref<80x48xf32, #tpu.memory_space<vmem>>, vector<64x48xf32>
    %167 = vector.extract_strided_slice %89 {offsets = [15, 0], sizes = [1, 48], strides = [1, 1]} : vector<16x48xf32> to vector<1x48xf32>
    %168 = vector.broadcast %167 : vector<1x48xf32> to vector<64x48xf32>
    %169 = arith.mulf %166, %168 : vector<64x48xf32>
    %170 = arith.addf %165, %169 : vector<64x48xf32>
    %c0_36 = arith.constant 0 : index
    %c0_37 = arith.constant 0 : index
    %171 = vector.load %arg6[%c0_36, %c0_37] : memref<1x48xf32, #tpu.memory_space<vmem>>, vector<1x48xf32>
    %172 = vector.broadcast %171 : vector<1x48xf32> to vector<64x48xf32>
    %173 = arith.addf %170, %172 : vector<64x48xf32>
    %cst_38 = arith.constant 0.000000e+00 : f32
    %174 = vector.broadcast %cst_38 : f32 to vector<64x48xf32>
    %175 = arith.subf %174, %173 : vector<64x48xf32>
    %176 = math.exp %175 : vector<64x48xf32>
    %cst_39 = arith.constant 1.000000e+00 : f32
    %177 = vector.broadcast %cst_39 : f32 to vector<64x48xf32>
    %178 = arith.addf %177, %176 : vector<64x48xf32>
    %cst_40 = arith.constant 1.000000e+00 : f32
    %179 = vector.broadcast %cst_40 : f32 to vector<64x48xf32>
    %180 = arith.divf %179, %178 : vector<64x48xf32>
    %181 = arith.mulf %173, %180 : vector<64x48xf32>
    %c0_41 = arith.constant 0 : index
    %c0_42 = arith.constant 0 : index
    %182 = vector.load %arg7[%c0_41, %c0_42] : memref<48x65xf32, #tpu.memory_space<vmem>>, vector<48x65xf32>
    %cst_43 = arith.constant dense<0.000000e+00> : vector<64x65xf32>
    %183 = tpu.matmul %181, %182, %cst_43 {dimension_numbers = #tpu.dot_dimension_numbers<[1], [0], [0], [1], [0, 0, 1, 1], [], []>} : vector<64x48xf32>, vector<48x65xf32>, vector<64x65xf32> -> vector<64x65xf32>
    %184 = vector.extract_strided_slice %183 {offsets = [0, 0], sizes = [64, 32], strides = [1, 1]} : vector<64x65xf32> to vector<64x32xf32>
    %185 = vector.extract_strided_slice %183 {offsets = [63, 32], sizes = [1, 32], strides = [1, 1]} : vector<64x65xf32> to vector<1x32xf32>
    %186 = vector.extract_strided_slice %183 {offsets = [0, 64], sizes = [64, 1], strides = [1, 1]} : vector<64x65xf32> to vector<64x1xf32>
    %c0_44 = arith.constant 0 : index
    %c0_45 = arith.constant 0 : index
    %187 = vector.load %arg8[%c0_44, %c0_45] : memref<1x48xf32, #tpu.memory_space<vmem>>, vector<1x48xf32>
    %cst_46 = arith.constant 0.000000e+00 : f32
    %188 = vector.broadcast %cst_46 : f32 to vector<64x48xf32>
    %c0_47 = arith.constant 0 : index
    %c0_48 = arith.constant 0 : index
    %189 = vector.load %arg9[%c0_47, %c0_48] : memref<1x48xf32, #tpu.memory_space<vmem>>, vector<1x48xf32>
    %190 = vector.broadcast %189 : vector<1x48xf32> to vector<64x48xf32>
    %191 = arith.addf %188, %190 : vector<64x48xf32>
    %192 = vector.broadcast %186 : vector<64x1xf32> to vector<64x48xf32>
    %193 = vector.broadcast %187 : vector<1x48xf32> to vector<64x48xf32>
    %194 = arith.mulf %192, %193 : vector<64x48xf32>
    %195 = arith.addf %191, %194 : vector<64x48xf32>
    %cst_49 = arith.constant 2.000000e+01 : f32
    %196 = vector.broadcast %cst_49 : f32 to vector<64x48xf32>
    %197 = arith.cmpf ogt, %195, %196 : vector<64x48xf32>
    %cst_50 = arith.constant 2.000000e+01 : f32
    %198 = vector.broadcast %cst_50 : f32 to vector<64x48xf32>
    %199 = arith.minimumf %195, %198 : vector<64x48xf32>
    %200 = math.exp %199 : vector<64x48xf32>
    %cst_51 = arith.constant 1.000000e+00 : f32
    %201 = vector.broadcast %cst_51 : f32 to vector<64x48xf32>
    %202 = arith.addf %201, %200 : vector<64x48xf32>
    %203 = math.log %202 : vector<64x48xf32>
    %204 = arith.select %197, %195, %203 : vector<64x48xi1>, vector<64x48xf32>
    %205 = vector.extract_strided_slice %181 {offsets = [63, 0], sizes = [1, 48], strides = [1, 1]} : vector<64x48xf32> to vector<1x48xf32>
    %c0_52 = arith.constant 0 : index
    %c0_53 = arith.constant 0 : index
    %206 = vector.load %arg16[%c0_52, %c0_53] : memref<64x48xf32, #tpu.memory_space<vmem>>, vector<64x48xf32>
    tpu.vector_store %arg16[%c0_52, %c0_53], %204 {strides = array<i32>} : memref<64x48xf32, #tpu.memory_space<vmem>>, vector<64x48xf32>,
    %207 = arith.mulf %204, %181 : vector<64x48xf32>
    %c0_54 = arith.constant 0 : index
    %c0_55 = arith.constant 0 : index
    %208 = vector.load %arg17[%c0_54, %c0_55] : memref<64x48xf32, #tpu.memory_space<vmem>>, vector<64x48xf32>
    tpu.vector_store %arg17[%c0_54, %c0_55], %207 {strides = array<i32>} : memref<64x48xf32, #tpu.memory_space<vmem>>, vector<64x48xf32>,
    %209 = vector.broadcast %185 : vector<1x32xf32> to vector<64x32xf32>
    %210 = arith.mulf %184, %209 : vector<64x32xf32>
    %c0_56 = arith.constant 0 : index
    %c0_57 = arith.constant 0 : index
    %211 = vector.load %arg18[%c0_56, %c0_57] : memref<64x32xf32, #tpu.memory_space<vmem>>, vector<64x32xf32>
    tpu.vector_store %arg18[%c0_56, %c0_57], %210 {strides = array<i32>} : memref<64x32xf32, #tpu.memory_space<vmem>>, vector<64x32xf32>,
    %c0_58 = arith.constant 0 : index
    %c0_59 = arith.constant 0 : index
    %212 = vector.load %arg10[%c0_58, %c0_59] : memref<1x1536xf32, #tpu.memory_space<vmem>>, vector<1x1536xf32>
    %213 = math.exp %212 : vector<1x1536xf32>
    %cst_60 = arith.constant 0.000000e+00 : f32
    %214 = vector.broadcast %cst_60 : f32 to vector<1x1536xf32>
    %215 = arith.subf %214, %213 : vector<1x1536xf32>
    %216 = tpu.iota {dimensions = array<i32: 0>} : vector<16x16xi32>
    %217 = tpu.iota {dimensions = array<i32: 1>} : vector<16x16xi32>
    %218 = arith.cmpi sgt, %217, %216 : vector<16x16xi32>
    %219 = arith.extui %218 : vector<16x16xi1> to vector<16x16xi32>
    %220 = arith.sitofp %219 : vector<16x16xi32> to vector<16x16xf32>
    %cst_61 = arith.constant 0.000000e+00 : f32
    %221 = vector.broadcast %cst_61 : f32 to vector<1x1536xf32>
    %cst_62 = arith.constant 0.000000e+00 : f32
    %222 = vector.broadcast %cst_62 : f32 to vector<1x48xf32>
    %c0_i32 = arith.constant 0 : i32
    %c4_i32 = arith.constant 4 : i32
    %223 = arith.addi %c0_i32, %c4_i32 : i32
    %c1_i32 = arith.constant 1 : i32
    %224:2 = scf.for %arg19 = %c0_i32 to %223 step %c1_i32 iter_args(%arg20 = %221, %arg21 = %222) -> (vector<1x1536xf32>, vector<1x48xf32>)  : i32 {
      %c3_i32 = arith.constant 3 : i32
      %311 = arith.subi %c3_i32, %arg19 : i32
      %c16_i32 = arith.constant 16 : i32
      %312 = arith.muli %311, %c16_i32 : i32
      %313 = tpu.assume_multiple %312, 16 : i32
      %314 = arith.index_cast %313 : i32 to index
      %c0_78 = arith.constant 0 : index
      %315 = vector.load %arg16[%314, %c0_78] : memref<64x48xf32, #tpu.memory_space<vmem>>, vector<16x48xf32>
      %316 = arith.index_cast %313 : i32 to index
      %c0_79 = arith.constant 0 : index
      %317 = vector.load %arg17[%316, %c0_79] : memref<64x48xf32, #tpu.memory_space<vmem>>, vector<16x48xf32>
      %318 = arith.index_cast %313 : i32 to index
      %c0_80 = arith.constant 0 : index
      %319 = vector.load %arg18[%318, %c0_80] : memref<64x32xf32, #tpu.memory_space<vmem>>, vector<16x32xf32>
      %cst_81 = arith.constant dense<0.000000e+00> : vector<16x48xf32>
      %320 = tpu.matmul %220, %315, %cst_81 {dimension_numbers = #tpu.dot_dimension_numbers<[1], [0], [0], [1], [0, 0, 1, 1], [], []>} : vector<16x16xf32>, vector<16x48xf32>, vector<16x48xf32> -> vector<16x48xf32>
      %321 = vector.broadcast %arg21 : vector<1x48xf32> to vector<16x48xf32>
      %322 = arith.addf %320, %321 : vector<16x48xf32>
      %323 = tpu.concatenate %322, %322, %322, %322, %322, %322, %322, %322, %322, %322, %322, %322, %322, %322, %322, %322 in 1 : vector<16x48xf32>, vector<16x48xf32>, vector<16x48xf32>, vector<16x48xf32>, vector<16x48xf32>, vector<16x48xf32>, vector<16x48xf32>, vector<16x48xf32>, vector<16x48xf32>, vector<16x48xf32>, vector<16x48xf32>, vector<16x48xf32>, vector<16x48xf32>, vector<16x48xf32>, vector<16x48xf32>, vector<16x48xf32> -> vector<16x768xf32>
      %324 = tpu.concatenate %322, %322, %322, %322, %322, %322, %322, %322, %322, %322, %322, %322, %322, %322, %322, %322 in 1 : vector<16x48xf32>, vector<16x48xf32>, vector<16x48xf32>, vector<16x48xf32>, vector<16x48xf32>, vector<16x48xf32>, vector<16x48xf32>, vector<16x48xf32>, vector<16x48xf32>, vector<16x48xf32>, vector<16x48xf32>, vector<16x48xf32>, vector<16x48xf32>, vector<16x48xf32>, vector<16x48xf32>, vector<16x48xf32> -> vector<16x768xf32>
      %325 = tpu.concatenate %323, %324 in 1 : vector<16x768xf32>, vector<16x768xf32> -> vector<16x1536xf32>
      %326 = vector.extract_strided_slice %319 {offsets = [0, 0], sizes = [16, 1], strides = [1, 1]} : vector<16x32xf32> to vector<16x1xf32>
      %327 = vector.broadcast %326 : vector<16x1xf32> to vector<16x48xf32>
      %328 = arith.mulf %317, %327 : vector<16x48xf32>
      %329 = vector.extract_strided_slice %319 {offsets = [0, 1], sizes = [16, 1], strides = [1, 1]} : vector<16x32xf32> to vector<16x1xf32>
      %330 = vector.broadcast %329 : vector<16x1xf32> to vector<16x48xf32>
      %331 = arith.mulf %317, %330 : vector<16x48xf32>
      %332 = vector.extract_strided_slice %319 {offsets = [0, 2], sizes = [16, 1], strides = [1, 1]} : vector<16x32xf32> to vector<16x1xf32>
      %333 = vector.broadcast %332 : vector<16x1xf32> to vector<16x48xf32>
      %334 = arith.mulf %317, %333 : vector<16x48xf32>
      %335 = vector.extract_strided_slice %319 {offsets = [0, 3], sizes = [16, 1], strides = [1, 1]} : vector<16x32xf32> to vector<16x1xf32>
      %336 = vector.broadcast %335 : vector<16x1xf32> to vector<16x48xf32>
      %337 = arith.mulf %317, %336 : vector<16x48xf32>
      %338 = vector.extract_strided_slice %319 {offsets = [0, 4], sizes = [16, 1], strides = [1, 1]} : vector<16x32xf32> to vector<16x1xf32>
      %339 = vector.broadcast %338 : vector<16x1xf32> to vector<16x48xf32>
      %340 = arith.mulf %317, %339 : vector<16x48xf32>
      %341 = vector.extract_strided_slice %319 {offsets = [0, 5], sizes = [16, 1], strides = [1, 1]} : vector<16x32xf32> to vector<16x1xf32>
      %342 = vector.broadcast %341 : vector<16x1xf32> to vector<16x48xf32>
      %343 = arith.mulf %317, %342 : vector<16x48xf32>
      %344 = vector.extract_strided_slice %319 {offsets = [0, 6], sizes = [16, 1], strides = [1, 1]} : vector<16x32xf32> to vector<16x1xf32>
      %345 = vector.broadcast %344 : vector<16x1xf32> to vector<16x48xf32>
      %346 = arith.mulf %317, %345 : vector<16x48xf32>
      %347 = vector.extract_strided_slice %319 {offsets = [0, 7], sizes = [16, 1], strides = [1, 1]} : vector<16x32xf32> to vector<16x1xf32>
      %348 = vector.broadcast %347 : vector<16x1xf32> to vector<16x48xf32>
      %349 = arith.mulf %317, %348 : vector<16x48xf32>
      %350 = vector.extract_strided_slice %319 {offsets = [0, 8], sizes = [16, 1], strides = [1, 1]} : vector<16x32xf32> to vector<16x1xf32>
      %351 = vector.broadcast %350 : vector<16x1xf32> to vector<16x48xf32>
      %352 = arith.mulf %317, %351 : vector<16x48xf32>
      %353 = vector.extract_strided_slice %319 {offsets = [0, 9], sizes = [16, 1], strides = [1, 1]} : vector<16x32xf32> to vector<16x1xf32>
      %354 = vector.broadcast %353 : vector<16x1xf32> to vector<16x48xf32>
      %355 = arith.mulf %317, %354 : vector<16x48xf32>
      %356 = vector.extract_strided_slice %319 {offsets = [0, 10], sizes = [16, 1], strides = [1, 1]} : vector<16x32xf32> to vector<16x1xf32>
      %357 = vector.broadcast %356 : vector<16x1xf32> to vector<16x48xf32>
      %358 = arith.mulf %317, %357 : vector<16x48xf32>
      %359 = vector.extract_strided_slice %319 {offsets = [0, 11], sizes = [16, 1], strides = [1, 1]} : vector<16x32xf32> to vector<16x1xf32>
      %360 = vector.broadcast %359 : vector<16x1xf32> to vector<16x48xf32>
      %361 = arith.mulf %317, %360 : vector<16x48xf32>
      %362 = vector.extract_strided_slice %319 {offsets = [0, 12], sizes = [16, 1], strides = [1, 1]} : vector<16x32xf32> to vector<16x1xf32>
      %363 = vector.broadcast %362 : vector<16x1xf32> to vector<16x48xf32>
      %364 = arith.mulf %317, %363 : vector<16x48xf32>
      %365 = vector.extract_strided_slice %319 {offsets = [0, 13], sizes = [16, 1], strides = [1, 1]} : vector<16x32xf32> to vector<16x1xf32>
      %366 = vector.broadcast %365 : vector<16x1xf32> to vector<16x48xf32>
      %367 = arith.mulf %317, %366 : vector<16x48xf32>
      %368 = vector.extract_strided_slice %319 {offsets = [0, 14], sizes = [16, 1], strides = [1, 1]} : vector<16x32xf32> to vector<16x1xf32>
      %369 = vector.broadcast %368 : vector<16x1xf32> to vector<16x48xf32>
      %370 = arith.mulf %317, %369 : vector<16x48xf32>
      %371 = vector.extract_strided_slice %319 {offsets = [0, 15], sizes = [16, 1], strides = [1, 1]} : vector<16x32xf32> to vector<16x1xf32>
      %372 = vector.broadcast %371 : vector<16x1xf32> to vector<16x48xf32>
      %373 = arith.mulf %317, %372 : vector<16x48xf32>
      %374 = vector.extract_strided_slice %319 {offsets = [0, 16], sizes = [16, 1], strides = [1, 1]} : vector<16x32xf32> to vector<16x1xf32>
      %375 = vector.broadcast %374 : vector<16x1xf32> to vector<16x48xf32>
      %376 = arith.mulf %317, %375 : vector<16x48xf32>
      %377 = vector.extract_strided_slice %319 {offsets = [0, 17], sizes = [16, 1], strides = [1, 1]} : vector<16x32xf32> to vector<16x1xf32>
      %378 = vector.broadcast %377 : vector<16x1xf32> to vector<16x48xf32>
      %379 = arith.mulf %317, %378 : vector<16x48xf32>
      %380 = vector.extract_strided_slice %319 {offsets = [0, 18], sizes = [16, 1], strides = [1, 1]} : vector<16x32xf32> to vector<16x1xf32>
      %381 = vector.broadcast %380 : vector<16x1xf32> to vector<16x48xf32>
      %382 = arith.mulf %317, %381 : vector<16x48xf32>
      %383 = vector.extract_strided_slice %319 {offsets = [0, 19], sizes = [16, 1], strides = [1, 1]} : vector<16x32xf32> to vector<16x1xf32>
      %384 = vector.broadcast %383 : vector<16x1xf32> to vector<16x48xf32>
      %385 = arith.mulf %317, %384 : vector<16x48xf32>
      %386 = vector.extract_strided_slice %319 {offsets = [0, 20], sizes = [16, 1], strides = [1, 1]} : vector<16x32xf32> to vector<16x1xf32>
      %387 = vector.broadcast %386 : vector<16x1xf32> to vector<16x48xf32>
      %388 = arith.mulf %317, %387 : vector<16x48xf32>
      %389 = vector.extract_strided_slice %319 {offsets = [0, 21], sizes = [16, 1], strides = [1, 1]} : vector<16x32xf32> to vector<16x1xf32>
      %390 = vector.broadcast %389 : vector<16x1xf32> to vector<16x48xf32>
      %391 = arith.mulf %317, %390 : vector<16x48xf32>
      %392 = vector.extract_strided_slice %319 {offsets = [0, 22], sizes = [16, 1], strides = [1, 1]} : vector<16x32xf32> to vector<16x1xf32>
      %393 = vector.broadcast %392 : vector<16x1xf32> to vector<16x48xf32>
      %394 = arith.mulf %317, %393 : vector<16x48xf32>
      %395 = vector.extract_strided_slice %319 {offsets = [0, 23], sizes = [16, 1], strides = [1, 1]} : vector<16x32xf32> to vector<16x1xf32>
      %396 = vector.broadcast %395 : vector<16x1xf32> to vector<16x48xf32>
      %397 = arith.mulf %317, %396 : vector<16x48xf32>
      %398 = vector.extract_strided_slice %319 {offsets = [0, 24], sizes = [16, 1], strides = [1, 1]} : vector<16x32xf32> to vector<16x1xf32>
      %399 = vector.broadcast %398 : vector<16x1xf32> to vector<16x48xf32>
      %400 = arith.mulf %317, %399 : vector<16x48xf32>
      %401 = vector.extract_strided_slice %319 {offsets = [0, 25], sizes = [16, 1], strides = [1, 1]} : vector<16x32xf32> to vector<16x1xf32>
      %402 = vector.broadcast %401 : vector<16x1xf32> to vector<16x48xf32>
      %403 = arith.mulf %317, %402 : vector<16x48xf32>
      %404 = vector.extract_strided_slice %319 {offsets = [0, 26], sizes = [16, 1], strides = [1, 1]} : vector<16x32xf32> to vector<16x1xf32>
      %405 = vector.broadcast %404 : vector<16x1xf32> to vector<16x48xf32>
      %406 = arith.mulf %317, %405 : vector<16x48xf32>
      %407 = vector.extract_strided_slice %319 {offsets = [0, 27], sizes = [16, 1], strides = [1, 1]} : vector<16x32xf32> to vector<16x1xf32>
      %408 = vector.broadcast %407 : vector<16x1xf32> to vector<16x48xf32>
      %409 = arith.mulf %317, %408 : vector<16x48xf32>
      %410 = vector.extract_strided_slice %319 {offsets = [0, 28], sizes = [16, 1], strides = [1, 1]} : vector<16x32xf32> to vector<16x1xf32>
      %411 = vector.broadcast %410 : vector<16x1xf32> to vector<16x48xf32>
      %412 = arith.mulf %317, %411 : vector<16x48xf32>
      %413 = vector.extract_strided_slice %319 {offsets = [0, 29], sizes = [16, 1], strides = [1, 1]} : vector<16x32xf32> to vector<16x1xf32>
      %414 = vector.broadcast %413 : vector<16x1xf32> to vector<16x48xf32>
      %415 = arith.mulf %317, %414 : vector<16x48xf32>
      %416 = vector.extract_strided_slice %319 {offsets = [0, 30], sizes = [16, 1], strides = [1, 1]} : vector<16x32xf32> to vector<16x1xf32>
      %417 = vector.broadcast %416 : vector<16x1xf32> to vector<16x48xf32>
      %418 = arith.mulf %317, %417 : vector<16x48xf32>
      %419 = vector.extract_strided_slice %319 {offsets = [0, 31], sizes = [16, 1], strides = [1, 1]} : vector<16x32xf32> to vector<16x1xf32>
      %420 = vector.broadcast %419 : vector<16x1xf32> to vector<16x48xf32>
      %421 = arith.mulf %317, %420 : vector<16x48xf32>
      %422 = tpu.concatenate %328, %331, %334, %337, %340, %343, %346, %349, %352, %355, %358, %361, %364, %367, %370, %373 in 1 : vector<16x48xf32>, vector<16x48xf32>, vector<16x48xf32>, vector<16x48xf32>, vector<16x48xf32>, vector<16x48xf32>, vector<16x48xf32>, vector<16x48xf32>, vector<16x48xf32>, vector<16x48xf32>, vector<16x48xf32>, vector<16x48xf32>, vector<16x48xf32>, vector<16x48xf32>, vector<16x48xf32>, vector<16x48xf32> -> vector<16x768xf32>
      %423 = tpu.concatenate %376, %379, %382, %385, %388, %391, %394, %397, %400, %403, %406, %409, %412, %415, %418, %421 in 1 : vector<16x48xf32>, vector<16x48xf32>, vector<16x48xf32>, vector<16x48xf32>, vector<16x48xf32>, vector<16x48xf32>, vector<16x48xf32>, vector<16x48xf32>, vector<16x48xf32>, vector<16x48xf32>, vector<16x48xf32>, vector<16x48xf32>, vector<16x48xf32>, vector<16x48xf32>, vector<16x48xf32>, vector<16x48xf32> -> vector<16x768xf32>
      %424 = tpu.concatenate %422, %423 in 1 : vector<16x768xf32>, vector<16x768xf32> -> vector<16x1536xf32>
      %425 = vector.broadcast %215 : vector<1x1536xf32> to vector<16x1536xf32>
      %426 = arith.mulf %325, %425 : vector<16x1536xf32>
      %427 = math.exp %426 : vector<16x1536xf32>
      %428 = arith.mulf %427, %424 : vector<16x1536xf32>
      %cst_82 = arith.constant dense<0.000000e+00> : vector<1536xf32>
      %429 = vector.multi_reduction <add>, %428, %cst_82 [0] : vector<16x1536xf32> to vector<1536xf32>
      %430 = vector.shape_cast %429 : vector<1536xf32> to vector<1x1536xf32>
      %431 = arith.addf %arg20, %430 : vector<1x1536xf32>
      %cst_83 = arith.constant dense<0.000000e+00> : vector<48xf32>
      %432 = vector.multi_reduction <add>, %315, %cst_83 [0] : vector<16x48xf32> to vector<48xf32>
      %433 = vector.shape_cast %432 : vector<48xf32> to vector<1x48xf32>
      %434 = arith.addf %arg21, %433 : vector<1x48xf32>
      scf.yield %431, %434 : vector<1x1536xf32>, vector<1x48xf32>
    }
    %c4_i32_63 = arith.constant 4 : i32
    %cst_64 = arith.constant 0.000000e+00 : f32
    %225 = vector.broadcast %cst_64 : f32 to vector<1x48xf32>
    %226 = vector.extract_strided_slice %224#0 {offsets = [0, 0], sizes = [1, 48], strides = [1, 1]} : vector<1x1536xf32> to vector<1x48xf32>
    %227 = arith.addf %225, %226 : vector<1x48xf32>
    %228 = vector.extract_strided_slice %224#0 {offsets = [0, 48], sizes = [1, 48], strides = [1, 1]} : vector<1x1536xf32> to vector<1x48xf32>
    %229 = arith.addf %227, %228 : vector<1x48xf32>
    %230 = vector.extract_strided_slice %224#0 {offsets = [0, 96], sizes = [1, 48], strides = [1, 1]} : vector<1x1536xf32> to vector<1x48xf32>
    %231 = arith.addf %229, %230 : vector<1x48xf32>
    %232 = vector.extract_strided_slice %224#0 {offsets = [0, 144], sizes = [1, 48], strides = [1, 1]} : vector<1x1536xf32> to vector<1x48xf32>
    %233 = arith.addf %231, %232 : vector<1x48xf32>
    %234 = vector.extract_strided_slice %224#0 {offsets = [0, 192], sizes = [1, 48], strides = [1, 1]} : vector<1x1536xf32> to vector<1x48xf32>
    %235 = arith.addf %233, %234 : vector<1x48xf32>
    %236 = vector.extract_strided_slice %224#0 {offsets = [0, 240], sizes = [1, 48], strides = [1, 1]} : vector<1x1536xf32> to vector<1x48xf32>
    %237 = arith.addf %235, %236 : vector<1x48xf32>
    %238 = vector.extract_strided_slice %224#0 {offsets = [0, 288], sizes = [1, 48], strides = [1, 1]} : vector<1x1536xf32> to vector<1x48xf32>
    %239 = arith.addf %237, %238 : vector<1x48xf32>
    %240 = vector.extract_strided_slice %224#0 {offsets = [0, 336], sizes = [1, 48], strides = [1, 1]} : vector<1x1536xf32> to vector<1x48xf32>
    %241 = arith.addf %239, %240 : vector<1x48xf32>
    %242 = vector.extract_strided_slice %224#0 {offsets = [0, 384], sizes = [1, 48], strides = [1, 1]} : vector<1x1536xf32> to vector<1x48xf32>
    %243 = arith.addf %241, %242 : vector<1x48xf32>
    %244 = vector.extract_strided_slice %224#0 {offsets = [0, 432], sizes = [1, 48], strides = [1, 1]} : vector<1x1536xf32> to vector<1x48xf32>
    %245 = arith.addf %243, %244 : vector<1x48xf32>
    %246 = vector.extract_strided_slice %224#0 {offsets = [0, 480], sizes = [1, 48], strides = [1, 1]} : vector<1x1536xf32> to vector<1x48xf32>
    %247 = arith.addf %245, %246 : vector<1x48xf32>
    %248 = vector.extract_strided_slice %224#0 {offsets = [0, 528], sizes = [1, 48], strides = [1, 1]} : vector<1x1536xf32> to vector<1x48xf32>
    %249 = arith.addf %247, %248 : vector<1x48xf32>
    %250 = vector.extract_strided_slice %224#0 {offsets = [0, 576], sizes = [1, 48], strides = [1, 1]} : vector<1x1536xf32> to vector<1x48xf32>
    %251 = arith.addf %249, %250 : vector<1x48xf32>
    %252 = vector.extract_strided_slice %224#0 {offsets = [0, 624], sizes = [1, 48], strides = [1, 1]} : vector<1x1536xf32> to vector<1x48xf32>
    %253 = arith.addf %251, %252 : vector<1x48xf32>
    %254 = vector.extract_strided_slice %224#0 {offsets = [0, 672], sizes = [1, 48], strides = [1, 1]} : vector<1x1536xf32> to vector<1x48xf32>
    %255 = arith.addf %253, %254 : vector<1x48xf32>
    %256 = vector.extract_strided_slice %224#0 {offsets = [0, 720], sizes = [1, 48], strides = [1, 1]} : vector<1x1536xf32> to vector<1x48xf32>
    %257 = arith.addf %255, %256 : vector<1x48xf32>
    %258 = vector.extract_strided_slice %224#0 {offsets = [0, 768], sizes = [1, 48], strides = [1, 1]} : vector<1x1536xf32> to vector<1x48xf32>
    %259 = arith.addf %257, %258 : vector<1x48xf32>
    %260 = vector.extract_strided_slice %224#0 {offsets = [0, 816], sizes = [1, 48], strides = [1, 1]} : vector<1x1536xf32> to vector<1x48xf32>
    %261 = arith.addf %259, %260 : vector<1x48xf32>
    %262 = vector.extract_strided_slice %224#0 {offsets = [0, 864], sizes = [1, 48], strides = [1, 1]} : vector<1x1536xf32> to vector<1x48xf32>
    %263 = arith.addf %261, %262 : vector<1x48xf32>
    %264 = vector.extract_strided_slice %224#0 {offsets = [0, 912], sizes = [1, 48], strides = [1, 1]} : vector<1x1536xf32> to vector<1x48xf32>
    %265 = arith.addf %263, %264 : vector<1x48xf32>
    %266 = vector.extract_strided_slice %224#0 {offsets = [0, 960], sizes = [1, 48], strides = [1, 1]} : vector<1x1536xf32> to vector<1x48xf32>
    %267 = arith.addf %265, %266 : vector<1x48xf32>
    %268 = vector.extract_strided_slice %224#0 {offsets = [0, 1008], sizes = [1, 48], strides = [1, 1]} : vector<1x1536xf32> to vector<1x48xf32>
    %269 = arith.addf %267, %268 : vector<1x48xf32>
    %270 = vector.extract_strided_slice %224#0 {offsets = [0, 1056], sizes = [1, 48], strides = [1, 1]} : vector<1x1536xf32> to vector<1x48xf32>
    %271 = arith.addf %269, %270 : vector<1x48xf32>
    %272 = vector.extract_strided_slice %224#0 {offsets = [0, 1104], sizes = [1, 48], strides = [1, 1]} : vector<1x1536xf32> to vector<1x48xf32>
    %273 = arith.addf %271, %272 : vector<1x48xf32>
    %274 = vector.extract_strided_slice %224#0 {offsets = [0, 1152], sizes = [1, 48], strides = [1, 1]} : vector<1x1536xf32> to vector<1x48xf32>
    %275 = arith.addf %273, %274 : vector<1x48xf32>
    %276 = vector.extract_strided_slice %224#0 {offsets = [0, 1200], sizes = [1, 48], strides = [1, 1]} : vector<1x1536xf32> to vector<1x48xf32>
    %277 = arith.addf %275, %276 : vector<1x48xf32>
    %278 = vector.extract_strided_slice %224#0 {offsets = [0, 1248], sizes = [1, 48], strides = [1, 1]} : vector<1x1536xf32> to vector<1x48xf32>
    %279 = arith.addf %277, %278 : vector<1x48xf32>
    %280 = vector.extract_strided_slice %224#0 {offsets = [0, 1296], sizes = [1, 48], strides = [1, 1]} : vector<1x1536xf32> to vector<1x48xf32>
    %281 = arith.addf %279, %280 : vector<1x48xf32>
    %282 = vector.extract_strided_slice %224#0 {offsets = [0, 1344], sizes = [1, 48], strides = [1, 1]} : vector<1x1536xf32> to vector<1x48xf32>
    %283 = arith.addf %281, %282 : vector<1x48xf32>
    %284 = vector.extract_strided_slice %224#0 {offsets = [0, 1392], sizes = [1, 48], strides = [1, 1]} : vector<1x1536xf32> to vector<1x48xf32>
    %285 = arith.addf %283, %284 : vector<1x48xf32>
    %286 = vector.extract_strided_slice %224#0 {offsets = [0, 1440], sizes = [1, 48], strides = [1, 1]} : vector<1x1536xf32> to vector<1x48xf32>
    %287 = arith.addf %285, %286 : vector<1x48xf32>
    %288 = vector.extract_strided_slice %224#0 {offsets = [0, 1488], sizes = [1, 48], strides = [1, 1]} : vector<1x1536xf32> to vector<1x48xf32>
    %289 = arith.addf %287, %288 : vector<1x48xf32>
    %c0_65 = arith.constant 0 : index
    %c0_66 = arith.constant 0 : index
    %290 = vector.load %arg11[%c0_65, %c0_66] : memref<1x48xf32, #tpu.memory_space<vmem>>, vector<1x48xf32>
    %291 = arith.mulf %205, %290 : vector<1x48xf32>
    %292 = arith.addf %289, %291 : vector<1x48xf32>
    %cst_67 = arith.constant 0.000000e+00 : f32
    %293 = vector.broadcast %cst_67 : f32 to vector<1x48xf32>
    %294 = arith.subf %293, %85 : vector<1x48xf32>
    %295 = math.exp %294 : vector<1x48xf32>
    %cst_68 = arith.constant 1.000000e+00 : f32
    %296 = vector.broadcast %cst_68 : f32 to vector<1x48xf32>
    %297 = arith.addf %296, %295 : vector<1x48xf32>
    %cst_69 = arith.constant 1.000000e+00 : f32
    %298 = vector.broadcast %cst_69 : f32 to vector<1x48xf32>
    %299 = arith.divf %298, %297 : vector<1x48xf32>
    %300 = arith.mulf %85, %299 : vector<1x48xf32>
    %301 = arith.mulf %292, %300 : vector<1x48xf32>
    %c0_70 = arith.constant 0 : index
    %c0_71 = arith.constant 0 : index
    %302 = vector.load %arg12[%c0_70, %c0_71] : memref<1x48xf32, #tpu.memory_space<vmem>>, vector<1x48xf32>
    %303 = arith.mulf %301, %302 : vector<1x48xf32>
    %cst_72 = arith.constant dense<0.000000e+00> : vector<1xf32>
    %304 = vector.multi_reduction <add>, %303, %cst_72 [1] : vector<1x48xf32> to vector<1xf32>
    %305 = vector.shape_cast %304 : vector<1xf32> to vector<1x1xf32>
    %c0_73 = arith.constant 0 : index
    %c0_74 = arith.constant 0 : index
    %306 = vector.load %arg13[%c0_73, %c0_74] : memref<1x1xf32, #tpu.memory_space<vmem>>, vector<1x1xf32>
    %307 = arith.addf %305, %306 : vector<1x1xf32>
    %c0_75 = arith.constant 0 : index
    %c0_76 = arith.constant 0 : index
    %c0_77 = arith.constant 0 : index
    %308 = vector.load %arg14[%c0_75, %c0_76, %c0_77] : memref<1x1x1xf32, #tpu.memory_space<vmem>>, vector<1x1x1xf32>
    %309 = vector.shape_cast %308 : vector<1x1x1xf32> to vector<1x1xf32>
    %310 = vector.shape_cast %307 : vector<1x1xf32> to vector<1x1x1xf32>
    tpu.vector_store %arg14[%c0_75, %c0_76, %c0_77], %310 {strides = array<i32>} : memref<1x1x1xf32, #tpu.memory_space<vmem>>, vector<1x1x1xf32>,
    return
  }
  func.func @transform_0(%arg0: i32) -> (i32, i32, i32) {
    %c0_i32 = arith.constant 0 : i32
    %c0_i32_0 = arith.constant 0 : i32
    %c0_i32_1 = arith.constant 0 : i32
    return %arg0, %c0_i32, %c0_i32_0 : i32, i32, i32
  }
  func.func @transform_1(%arg0: i32) -> (i32, i32) {
    %c0_i32 = arith.constant 0 : i32
    %c0_i32_0 = arith.constant 0 : i32
    %c0_i32_1 = arith.constant 0 : i32
    return %c0_i32, %c0_i32_0 : i32, i32
  }
  func.func @transform_2(%arg0: i32) -> (i32, i32) {
    %c0_i32 = arith.constant 0 : i32
    %c0_i32_0 = arith.constant 0 : i32
    %c0_i32_1 = arith.constant 0 : i32
    return %c0_i32, %c0_i32_0 : i32, i32
  }
  func.func @transform_3(%arg0: i32) -> (i32, i32) {
    %c0_i32 = arith.constant 0 : i32
    %c0_i32_0 = arith.constant 0 : i32
    %c0_i32_1 = arith.constant 0 : i32
    return %c0_i32, %c0_i32_0 : i32, i32
  }
  func.func @transform_4(%arg0: i32) -> (i32, i32) {
    %c0_i32 = arith.constant 0 : i32
    %c0_i32_0 = arith.constant 0 : i32
    %c0_i32_1 = arith.constant 0 : i32
    return %c0_i32, %c0_i32_0 : i32, i32
  }
  func.func @transform_5(%arg0: i32) -> (i32, i32) {
    %c0_i32 = arith.constant 0 : i32
    %c0_i32_0 = arith.constant 0 : i32
    %c0_i32_1 = arith.constant 0 : i32
    return %c0_i32, %c0_i32_0 : i32, i32
  }
  func.func @transform_6(%arg0: i32) -> (i32, i32) {
    %c0_i32 = arith.constant 0 : i32
    %c0_i32_0 = arith.constant 0 : i32
    %c0_i32_1 = arith.constant 0 : i32
    return %c0_i32, %c0_i32_0 : i32, i32
  }
  func.func @transform_7(%arg0: i32) -> (i32, i32) {
    %c0_i32 = arith.constant 0 : i32
    %c0_i32_0 = arith.constant 0 : i32
    %c0_i32_1 = arith.constant 0 : i32
    return %c0_i32, %c0_i32_0 : i32, i32
  }
  func.func @transform_8(%arg0: i32) -> (i32, i32) {
    %c0_i32 = arith.constant 0 : i32
    %c0_i32_0 = arith.constant 0 : i32
    %c0_i32_1 = arith.constant 0 : i32
    return %c0_i32, %c0_i32_0 : i32, i32
  }
  func.func @transform_9(%arg0: i32) -> (i32, i32) {
    %c0_i32 = arith.constant 0 : i32
    %c0_i32_0 = arith.constant 0 : i32
    %c0_i32_1 = arith.constant 0 : i32
    return %c0_i32, %c0_i32_0 : i32, i32
  }
  func.func @transform_10(%arg0: i32) -> (i32, i32) {
    %c0_i32 = arith.constant 0 : i32
    %c0_i32_0 = arith.constant 0 : i32
    %c0_i32_1 = arith.constant 0 : i32
    return %c0_i32, %c0_i32_0 : i32, i32
  }
  func.func @transform_11(%arg0: i32) -> (i32, i32) {
    %c0_i32 = arith.constant 0 : i32
    %c0_i32_0 = arith.constant 0 : i32
    %c0_i32_1 = arith.constant 0 : i32
    return %c0_i32, %c0_i32_0 : i32, i32
  }
  func.func @transform_12(%arg0: i32) -> (i32, i32) {
    %c0_i32 = arith.constant 0 : i32
    %c0_i32_0 = arith.constant 0 : i32
    %c0_i32_1 = arith.constant 0 : i32
    return %c0_i32, %c0_i32_0 : i32, i32
  }
  func.func @transform_13(%arg0: i32) -> (i32, i32, i32) {
    %c0_i32 = arith.constant 0 : i32
    %c0_i32_0 = arith.constant 0 : i32
    %c0_i32_1 = arith.constant 0 : i32
    return %arg0, %c0_i32, %c0_i32_0 : i32, i32, i32
  }
}

</mosaic_0001>

<bundles_post_ra>
// kernel: tpu_custom_call.1
= control target key start
LH: loop header
LB: loop body
LE: loop exit
PB: predicated region body
PF: predicated region fallthrough
CT: control target
= control target key end

     0   :  { %s3751_s27 = smov 0   ;;  %s5460_s0 = inlined_call_operand.vmem [shape: f32[2,64,6], index: 0, kind: input, shape index: {}]   ;;  %s5461_s1 = inlined_call_operand.vmem [shape: f32[1,6], index: 1, kind: input, shape index: {}]   ;;  %s5462_s2 = inlined_call_operand.vmem [shape: f32[6,48], index: 2, kind: input, shape index: {}]   ;;  %s5463_s3 = inlined_call_operand.vmem [shape: f32[6,48], index: 3, kind: input, shape index: {}]   ;;  %s5464_s4 = inlined_call_operand.vmem [shape: f32[16,48], index: 4, kind: input, shape index: {}]   ;;  %s5465_s5 = inlined_call_operand.vmem [shape: f32[1,48], index: 5, kind: input, shape index: {}]   ;;  %s5466_s6 = inlined_call_operand.vmem [shape: f32[48,65], index: 6, kind: input, shape index: {}]   ;;  %s5467_s7 = inlined_call_operand.vmem [shape: f32[1,48], index: 7, kind: input, shape index: {}]   ;;  %s5468_s8 = inlined_call_operand.vmem [shape: f32[1,48], index: 8, kind: input, shape index: {}]   ;;  %s5469_s9 = inlined_call_operand.vmem [shape: f32[1,1536], index: 9, kind: input, shape index: {}]   ;;  %s5470_s10 = inlined_call_operand.vmem [shape: f32[1,48], index: 10, kind: input, shape index: {}]   ;;  %s5471_s11 = inlined_call_operand.vmem [shape: f32[1,48], index: 11, kind: input, shape index: {}]   ;;  %s5472_s12 = inlined_call_operand.<no memory space> [shape: f32[1,1], index: 12, kind: input, shape index: {}]   ;;  %s5473_s13 = inlined_call_operand.vmem [shape: f32[2,1,1], index: 13, kind: output, shape index: {}]  }
   0x1   :  { %v18_v0 = vstv %s5472_s12 }
   0x2   :  { %19 = vst [vmem:[#allocation6] sm:$0x1] %v18_v0 }
   0x3 LB: > { %s3012_s28 = sadd.s32 4294967295, %s3566_s27   ;;  %p3016_p0 = scmp.ge.s32.totalorder %s3566_s27, 1  ;;  %s3566_s27 = sphi %s3751_s27, %s25_s27  }
   0x4   : > { %p389_p1 = scmp.lt.s32.totalorder %s3566_s27, 3 }
   0x6   : > { %p390_p2 = pnand %p3016_p0, %p389_p1 }
   0x8   : > { %393 = sbr.rel (%p390_p2) target bundleno = 1700 (0x6a4), region = 72 }
   0xd   : > { %p431_p3 = scmp.lt.s32.totalorder %s3012_s28, 1  ;;  %vm455_vm0 = vcmask 48128   ;;  %v3624_v25 = vmov 0   ;;  %v3814_v48 = vld [vmem:[%s5461_s1] ss:$0 sm:$0xff]  ;;  %v3625_v57 = vmov 2  }
   0xe   : > { %3275 = vset.pattern.permute.xlu0 %v3624_v25  ;;  %3276 = vset.pattern.permute.xlu1 %v3624_v25  ;;  %v3626_v61 = vmov 1   ;;  %vm875_vm1 = vcmask 392192   ;;  %vm1661_vm4 = vcmask 261120   ;;  %s4670_s21 = smov 0  }
   0xf   : > { %s5590_s28 = smov (!%p431_p3, %s3012_s28), 1 }
  0x10   : > { %s3039_s12 = sshll.u32 %s5590_s28, 6  ;;  %s438_s14 = scalar_lea.vmem %s5473_s13, %s5590_s28 }
  0x11   : > { %s435_s17 = scalar_lea.vmem %s5460_s0, %s3039_s12  ;;  %s3632_s12 = smov 96  }
  0x12   : > { %v3769_v1 = vld [vmem:[%s435_s17 + $0x10] sm:$0xff]  ;;  %v3771_v2 = vld [vmem:[%s435_s17 + $0x18] sm:$0xff]  ;;  %v3773_v3 = vld [vmem:[%s435_s17] sm:$0xff] }
  0x13   : > { %v449_v4 = vmul.f32 %v3769_v1, %v3769_v1  ;;  %v450_v5 = vmul.f32 %v3771_v2, %v3771_v2  ;;  %v447_v6 = vmul.f32 %v3773_v3, %v3773_v3  ;;  %v3781_v7 = vld [vmem:[%s435_s17 + $0x20] sm:$0xff]  ;;  %v3783_v8 = vld [vmem:[%s435_s17 + $0x8] sm:$0xff]  ;;  %v3797_v17 = vld [vmem:[%s435_s17 + $0x30] sm:$0xff] }
  0x14   : > { %v451_v9 = vmul.f32 %v3781_v7, %v3781_v7  ;;  %v3787_v10 = vld [vmem:[%s435_s17 + $0x28] sm:$0xff]  ;;  %v448_v14 = vmul.f32 %v3783_v8, %v3783_v8  ;;  %v3799_v18 = vld [vmem:[%s435_s17 + $0x38] sm:$0xff]  ;;  %v453_v21 = vmul.f32 %v3797_v17, %v3797_v17 }
  0x15   : > { %v462_v11 = vsel %vm455_vm0, %v449_v4, 0.0  ;;  %v456_v12 = vsel %vm455_vm0, %v447_v6, 0.0  ;;  %v465_v13 = vsel %vm455_vm0, %v450_v5, 0.0  ;;  %v452_v16 = vmul.f32 %v3787_v10, %v3787_v10 }
  0x16   : > { %463 = vadd.xlane.f32.xlu0 %v462_v11  ;;  %457 = vadd.xlane.f32.xlu1 %v456_v12  ;;  %v468_v15 = vsel %vm455_vm0, %v451_v9, 0.0  ;;  %v459_v19 = vsel %vm455_vm0, %v448_v14, 0.0  ;;  %v454_v22 = vmul.f32 %v3799_v18, %v3799_v18  ;;  %v474_v23 = vsel %vm455_vm0, %v453_v21, 0.0 }
  0x17   : > { %v471_v20 = vsel %vm455_vm0, %v452_v16, 0.0  ;;  %v3628_v9 = vmov 4   ;;  %v3629_v12 = vmov 5   ;;  %v3630_v16 = vmov 0.0  }
  0x18   : > { %v477_v24 = vsel %vm455_vm0, %v454_v22, 0.0  ;;  %876 = vst.msk [vmem:[#allocation2] sm:$0xff] %vm875_vm1, %v3630_v16  ;;  %877 = vst.msk [vmem:[#allocation2 + $0x8] sm:$0xff] %vm875_vm1, %v3630_v16 }
  0x1a   : > { %466 = vadd.xlane.f32.xlu0 %v465_v13  ;;  %469 = vadd.xlane.f32.xlu1 %v468_v15 }
  0x1e   : > { %460 = vadd.xlane.f32.xlu0 %v459_v19  ;;  %472 = vadd.xlane.f32.xlu1 %v471_v20  ;;  %v569_v20 = vlaneseq }
  0x20   : > { %v3910_v21 = vshrl.u32 %v569_v20, 7 }
  0x22   : > { %475 = vadd.xlane.f32.xlu0 %v474_v23  ;;  %478 = vadd.xlane.f32.xlu1 %v477_v24  ;;  %v3914_v23 = vsub.s32 0, %v3910_v21  ;;  %v3917_v24 = vsub.s32 1, %v3910_v21 }
  0x24   : > { %5498 = vst [vmem:[#allocation7_spill] sm:$0xff] %v3914_v23  ;;  %5499 = vst [vmem:[#allocation8_spill] sm:$0xff] %v3917_v24 }
  0x9f   : > { %v464_v26 = vpop.xlane.xlu0 %463  ;;  %v458_v27 = vpop.xlane.xlu1 %457 }
  0xa0   : > { %v483_v28 = vmul.f32 0.16666667, %v464_v26  ;;  %v481_v36 = vmul.f32 0.16666667, %v458_v27  ;;  %v3924_v27 = vld [vmem:[%s5462_s2] sm:$0x3f] }
  0xa2   : > { %v491_v29 = vadd.f32 1e-05, %v483_v28  ;;  %v489_v42 = vadd.f32 1e-05, %v481_v36  ;;  %v3932_v28 = vrot.slane %v3924_v27, %v3917_v24  ;;  %v1354_v36 = vld [vmem:[%s5466_s6 + $0x18] sm:$0xff] }
  0xa3   : > { %v467_v30 = vpop.xlane.xlu0 %466  ;;  %v470_v31 = vpop.xlane.xlu1 %469 }
  0xa4   : > { %3314 = vrsqrt.f32 %v491_v29  ;;  %v484_v32 = vmul.f32 0.16666667, %v467_v30  ;;  %v485_v43 = vmul.f32 0.16666667, %v470_v31 }
  0xa6   : > { %v492_v33 = vadd.f32 1e-05, %v484_v32  ;;  %v493_v46 = vadd.f32 1e-05, %v485_v43 }
  0xa7   : > { %v461_v34 = vpop.xlane.xlu0 %460  ;;  %v473_v35 = vpop.xlane.xlu1 %472 }
  0xa8   : > { %3316 = vrsqrt.f32 %v492_v33  ;;  %v482_v37 = vmul.f32 0.16666667, %v461_v34  ;;  %v486_v38 = vmul.f32 0.16666667, %v473_v35  ;;  %v1356_v34 = vld [vmem:[%s5466_s6 + $0x28] sm:$0xff]  ;;  %v1355_v35 = vld [vmem:[%s5466_s6 + $0x20] sm:$0xff] }
  0xa9   : > { %3089 = vmatprep.subr.mxu1 %v1356_v34  ;;  %3058 = vmatprep.subr.mxu0 %v1356_v34 }
  0xaa   : > { %v490_v39 = vadd.f32 1e-05, %v482_v37  ;;  %v494_v40 = vadd.f32 1e-05, %v486_v38  ;;  %3095 = vmatpush3.msra.mxu1 %v1356_v34  ;;  %3059 = vmatpush3.msra.mxu0 %v1356_v34  ;;  %v3950_v37 = vsub.s32 2, %v3910_v21 }
  0xab   : > { %v476_v41 = vpop.xlane.xlu0 %475  ;;  %3090 = vmatprep.subr.mxu1 %v1355_v35  ;;  %3060 = vmatprep.subr.mxu0 %v1355_v35 }
  0xac   : > { %3318 = vrsqrt.f32 %v490_v39  ;;  %v487_v44 = vmul.f32 0.16666667, %v476_v41  ;;  %5500 = vst [vmem:[#allocation9_spill] sm:$0xff] %v3950_v37  ;;  %3096 = vmatpush3.msra.mxu1 %v1355_v35  ;;  %3061 = vmatpush3.msra.mxu0 %v1355_v35  ;;  %v3961_v41 = vrot.slane %v3924_v27, %v3950_v37 }
  0xad   : > { %3320 = vrsqrt.f32 %v494_v40  ;;  %v1353_v40 = vld [vmem:[%s5466_s6 + $0x10] sm:$0xff]  ;;  %3091 = vmatprep.subr.mxu1 %v1354_v36  ;;  %3062 = vmatprep.subr.mxu0 %v1354_v36 }
  0xae   : > { %v495_v45 = vadd.f32 1e-05, %v487_v44  ;;  %3322 = vrsqrt.f32 %v489_v42  ;;  %3097 = vmatpush3.msra.mxu1 %v1354_v36  ;;  %3063 = vmatpush3.msra.mxu0 %v1354_v36  ;;  %5501 = vst [vmem:[#allocation10_spill] sm:$0xff] %v3961_v41 }
  0xaf   : > { %3092 = vmatprep.subr.mxu1 %v1353_v40  ;;  %3064 = vmatprep.subr.mxu0 %v1353_v40 }
  0xb0   : > { %3324 = vrsqrt.f32 %v495_v45  ;;  %3098 = vmatpush3.msra.mxu1 %v1353_v40  ;;  %3065 = vmatpush3.msra.mxu0 %v1353_v40  ;;  %v972_v40 = vld [vmem:[#allocation2 + $0x4] sm:$0xff] }
  0xb1   : > { %v3315_v47 = vpop.eup %3314  ;;  %3326 = vrsqrt.f32 %v493_v46 }
  0xb2   : > { %v507_v49 = vmul.f32 %v3315_v47, %v3769_v1 }
  0xb4   : > { %v3818_v50 = vmul.f32 %v3814_v48, %v507_v49 }
  0xb5   : > { %v3317_v51 = vpop.eup %3316 }
  0xb6   : > { %v508_v52 = vmul.f32 %v3317_v51, %v3771_v2  ;;  %541 = vperm.xlu0 %3275, %v3818_v50  }
  0xb8   : > { %v3823_v53 = vmul.f32 %v3814_v48, %v508_v52 }
  0xb9   : > { %v3319_v54 = vpop.eup %3318 }
  0xba   : > { %v3321_v55 = vpop.eup %3320  ;;  %v506_v56 = vmul.f32 %v3319_v54, %v3783_v8  ;;  %3281 = vset.pattern.permute.xlu0 %v3625_v57  ;;  %546 = vperm.xlu1 %3276, %v3823_v53   ;;  %v479_v8 = vpop.xlane.xlu1 %478  ;;  %v1682_v54 = vand.u32 127, %v569_v20  ;;  %v944_v20 = vld [vmem:[#allocation2 + $0x3] sm:$0xff] }
  0xbb   : > { %654 = vperm.xlu0 %3281, %v3823_v53   ;;  %v3323_v59 = vpop.eup %3322  ;;  %v510_v60 = vmul.f32 %v3321_v55, %v3787_v10  ;;  %v488_v10 = vmul.f32 0.16666667, %v479_v8  ;;  %v1352_v55 = vld [vmem:[%s5466_s6 + $0x8] sm:$0xff] }
  0xbc   : > { %v3830_v58 = vmul.f32 %v3814_v48, %v506_v56  ;;  %v505_v63 = vmul.f32 %v3323_v59, %v3773_v3  ;;  %v1351_v56 = vld [vmem:[%s5466_s6] sm:$0xff]  ;;  %3093 = vmatprep.subr.mxu1 %v1352_v55  ;;  %3066 = vmatprep.subr.mxu0 %v1352_v55  ;;  %vm1683_vm2 = vcmp.gt.s32.totalorder %v1682_v54, %v3910_v21 }
  0xbd   : > { %v3325_v62 = vpop.eup %3324  ;;  %v3838_v1 = vmul.f32 %v3814_v48, %v510_v60  ;;  %v496_v11 = vadd.f32 1e-05, %v488_v10  ;;  %3099 = vmatpush3.msra.mxu1 %v1352_v55  ;;  %3067 = vmatpush3.msra.mxu0 %v1352_v55 }
  0xbe   : > { %3277 = vset.pattern.permute.xlu1 %v3626_v61  ;;  %v3327_v0 = vpop.eup %3326  ;;  %v511_v2 = vmul.f32 %v3325_v62, %v3797_v17  ;;  %v3844_v5 = vmul.f32 %v3814_v48, %v505_v63  ;;  %3094 = vmatprep.subr.mxu1 %v1351_v56 }
  0xbf   : > { %3282 = vset.pattern.permute.xlu0 %v3624_v25  ;;  %598 = vperm.xlu1 %3277, %v3818_v50   ;;  %v509_v4 = vmul.f32 %v3327_v0, %v3781_v7  ;;  %v3627_v7 = vmov 3   ;;  %3328 = vrsqrt.f32 %v496_v11 }
  0xc0   : > { %536 = vperm.xlu0 %3282, %v3830_v58   ;;  %v3848_v3 = vmul.f32 %v3814_v48, %v511_v2  ;;  %3068 = vmatprep.subr.mxu0 %v1351_v56 }
  0xc1   : > { %v524_v6 = vmul.f32 %v3814_v48, %v509_v4  ;;  %3100 = vmatpush3.msra.mxu1 %v1351_v56  ;;  %3069 = vmatpush3.msra.mxu0 %v1351_v56  ;;  %v4010_v4 = vsub.s32 3, %v3910_v21 }
  0xc3   : > { %602 = vperm.xlu1 %3277, %v3823_v53   ;;  %5504 = vst [vmem:[#allocation13_spill] sm:$0xff] %v4010_v4 }
  0xc4   : > { %3285 = vset.pattern.permute.xlu0 %v3626_v61 }
  0xc5   : > { %610 = vperm.xlu0 %3285, %v3838_v1  }
  0xc7   : > { %3278 = vset.pattern.permute.xlu1 %v3624_v25 }
  0xc8   : > { %531 = vperm.xlu1 %3278, %v3844_v5  }
  0xc9   : > { %3287 = vset.pattern.permute.xlu0 %v3624_v25 }
  0xca   : > { %561 = vperm.xlu0 %3287, %v3848_v3  }
  0xcc   : > { %551 = vperm.xlu1 %3278, %v524_v6   ;;  %v3329_v13 = vpop.eup %3328 }
  0xcd   : > { %v512_v14 = vmul.f32 %v3329_v13, %v3799_v18 }
  0xce   : > { %3290 = vset.pattern.permute.xlu0 %v3627_v7 }
  0xcf   : > { %710 = vperm.xlu0 %3290, %v524_v6   ;;  %v527_v15 = vmul.f32 %v3814_v48, %v512_v14  ;;  %v4030_v14 = vrot.slane %v3924_v27, %v4010_v4 }
  0xd0   : > { %3279 = vset.pattern.permute.xlu1 %v3626_v61 }
  0xd1   : > { %590 = vperm.xlu1 %3279, %v3844_v5   ;;  %5506 = vst [vmem:[#allocation15_spill] sm:$0xff] %v4030_v14 }
  0xd3   : > { %3292 = vset.pattern.permute.xlu0 %v3628_v9 }
  0xd4   : > { %754 = vperm.xlu0 %3292, %v3818_v50  }
  0xd5   : > { %606 = vperm.xlu1 %3279, %v524_v6  }
  0xd8   : > { %746 = vperm.xlu0 %3292, %v3844_v5  }
  0xd9   : > { %3280 = vset.pattern.permute.xlu1 %v3625_v57 }
  0xda   : > { %650 = vperm.xlu1 %3280, %v3818_v50  }
  0xdc   : > { %3296 = vset.pattern.permute.xlu0 %v3627_v7 }
  0xdd   : > { %698 = vperm.xlu0 %3296, %v3830_v58  }
  0xde   : > { %642 = vperm.xlu1 %3280, %v3844_v5  }
  0xe1   : > { %3299 = vset.pattern.permute.xlu0 %v3629_v12 }
  0xe2   : > { %658 = vperm.xlu1 %3280, %v524_v6   ;;  %810 = vperm.xlu0 %3299, %v3823_v53  }
  0xe6   : > { %3283 = vset.pattern.permute.xlu1 %v3624_v25  ;;  %814 = vperm.xlu0 %3299, %v524_v6  }
  0xe7   : > { %556 = vperm.xlu1 %3283, %v3838_v1  }
  0xea   : > { %3303 = vset.pattern.permute.xlu0 %v3628_v9 }
  0xeb   : > { %766 = vperm.xlu0 %3303, %v3838_v1   ;;  %3284 = vset.pattern.permute.xlu1 %v3626_v61 }
  0xec   : > { %594 = vperm.xlu1 %3284, %v3830_v58  }
  0xef   : > { %3305 = vset.pattern.permute.xlu0 %v3629_v12 }
  0xf0   : > { %818 = vperm.xlu0 %3305, %v3838_v1   ;;  %3286 = vset.pattern.permute.xlu1 %v3627_v7 }
  0xf1   : > { %702 = vperm.xlu1 %3286, %v3818_v50  }
  0xf4   : > { %3307 = vset.pattern.permute.xlu0 %v3626_v61 }
  0xf5   : > { %706 = vperm.xlu1 %3286, %v3823_v53   ;;  %618 = vperm.xlu0 %3307, %v527_v15  }
  0xf9   : > { %3288 = vset.pattern.permute.xlu1 %v3626_v61  ;;  %3310 = vset.pattern.permute.xlu0 %v3628_v9 }
  0xfa   : > { %614 = vperm.xlu1 %3288, %v3848_v3   ;;  %774 = vperm.xlu0 %3310, %v527_v15  }
  0xfe   : > { %3289 = vset.pattern.permute.xlu1 %v3627_v7 }
  0xff   : > { %694 = vperm.xlu1 %3289, %v3844_v5  }
 0x103   : > { %3291 = vset.pattern.permute.xlu1 %v3625_v57 }
 0x104   : > { %646 = vperm.xlu1 %3291, %v3830_v58  }
 0x108   : > { %662 = vperm.xlu1 %3291, %v3838_v1  }
 0x10c   : > { %3293 = vset.pattern.permute.xlu1 %v3628_v9 }
 0x10d   : > { %758 = vperm.xlu1 %3293, %v3823_v53   ;;  %v1680_v53 = vadd.s32 8, %v3910_v21 }
 0x10f   : > { %vm1684_vm3 = vcmp.gt.s32.totalorder %v1682_v54, %v1680_v53 }
 0x111   : > { %3294 = vset.pattern.permute.xlu1 %v3625_v57 }
 0x112   : > { %666 = vperm.xlu1 %3294, %v3848_v3  }
 0x116   : > { %3295 = vset.pattern.permute.xlu1 %v3628_v9 }
 0x117   : > { %762 = vperm.xlu1 %3295, %v524_v6   ;;  %v916_v6 = vld [vmem:[#allocation2 + $0x2] sm:$0xff] }
 0x11b   : > { %3297 = vset.pattern.permute.xlu1 %v3627_v7 }
 0x11c   : > { %714 = vperm.xlu1 %3297, %v3838_v1   ;;  %v4005_v1 = vld [vmem:[%s5464_s4] sm:$0xff] }
 0x11d   : > { %v4020_v8 = vrot.slane %v4005_v1, %v3917_v24 }
 0x11f   : > { %5505 = vst [vmem:[#allocation14_spill] sm:$0xff] %v4020_v8 }
 0x120   : > { %3298 = vset.pattern.permute.xlu1 %v3629_v12 }
 0x121   : > { %806 = vperm.xlu1 %3298, %v3818_v50  }
 0x125   : > { %3300 = vset.pattern.permute.xlu1 %v3627_v7 }
 0x126   : > { %718 = vperm.xlu1 %3300, %v3848_v3  }
 0x12a   : > { %3301 = vset.pattern.permute.xlu1 %v3629_v12 }
 0x12b   : > { %798 = vperm.xlu1 %3301, %v3844_v5  }
 0x12f   : > { %3302 = vset.pattern.permute.xlu1 %v3628_v9 }
 0x130   : > { %750 = vperm.xlu1 %3302, %v3830_v58  }
 0x131   : > { %v3952_v38 = vpop.permute.xlu0 %541 }
 0x134   : > { %770 = vperm.xlu1 %3302, %v3848_v3  }
 0x135   : > { %v3900_v17 = vpop.permute.xlu1 %546 }
 0x136   : > { %v655_v44 = vpop.permute.xlu0 %654 }
 0x138   : > { %3304 = vset.pattern.permute.xlu1 %v3629_v12 }
 0x139   : > { %802 = vperm.xlu1 %3304, %v3830_v58   ;;  %v3992_v58 = vsel %vm1684_vm3, 1.0, %v3630_v16 }
 0x13a   : > { %v3904_v18 = vpop.permute.xlu1 %598  ;;  %5503 = vst [vmem:[#allocation12_spill] sm:$0xff] %v3992_v58 }
 0x13b   : > { %v3968_v47 = vpop.permute.xlu0 %536 }
 0x13d   : > { %822 = vperm.xlu1 %3304, %v3848_v3   ;;  %v888_v3 = vld [vmem:[#allocation2 + $0x1] sm:$0xff] }
 0x13e   : > { %v3907_v19 = vpop.permute.xlu1 %602 }
 0x13f   : > { %v628_v2 = vmul.f32 %v3932_v28, %v3907_v19 }
 0x140   : > { %v3972_v49 = vpop.permute.xlu0 %610 }
 0x141   : > { %3306 = vset.pattern.permute.xlu1 %v3624_v25  ;;  %v3928_v25 = vrot.slane %v3924_v27, %v3914_v23 }
 0x142   : > { %566 = vperm.xlu1 %3306, %v527_v15  }
 0x143   : > { %v532_v22 = vpop.permute.xlu1 %531  ;;  %v576_v9 = vmul.f32 %v3928_v25, %v3900_v17  ;;  %v4040_v17 = vrot.slane %v4005_v1, %v3950_v37 }
 0x144   : > { %v573_v30 = vmul.f32 %v3928_v25, %v532_v22  ;;  %v680_v22 = vmul.f32 %v3961_v41, %v655_v44 }
 0x145   : > { %v3976_v51 = vpop.permute.xlu0 %561  ;;  %v636_v13 = vadd.f32 %v628_v2, %v576_v9 }
 0x146   : > { %3308 = vset.pattern.permute.xlu1 %v3625_v57  ;;  %v3989_v57 = vsel %vm1683_vm2, 1.0, %v3630_v16  ;;  %v4036_v16 = vsub.s32 5, %v3910_v21 }
 0x147   : > { %670 = vperm.xlu1 %3308, %v527_v15   ;;  %v3919_v26 = vpop.permute.xlu1 %551  ;;  %5502 = vst [vmem:[#allocation11_spill] sm:$0xff] %v3989_v57  ;;  %v688_v36 = vadd.f32 %v680_v22, %v636_v13 }
 0x148   : > { %5508 = vst [vmem:[#allocation17_spill] sm:$0xff] %v4036_v16  ;;  %v4051_v34 = vrot.slane %v3924_v27, %v4036_v16 }
 0x14a   : > { %v711_v60 = vpop.permute.xlu0 %710 }
 0x14b   : > { %3309 = vset.pattern.permute.xlu1 %v3627_v7  ;;  %v4016_v7 = vrot.slane %v4005_v1, %v3914_v23 }
 0x14c   : > { %722 = vperm.xlu1 %3309, %v527_v15   ;;  %v591_v29 = vpop.permute.xlu1 %590 }
 0x14d   : > { %v625_v31 = vmul.f32 %v3932_v28, %v591_v29  ;;  %v900_v11 = vmul.f32 %v4016_v7, %v888_v3 }
 0x14f   : > { %v633_v32 = vadd.f32 %v625_v31, %v573_v30  ;;  %v3996_v62 = vpop.permute.xlu0 %754  ;;  %v956_v31 = vmul.f32 %v4040_v17, %v944_v20 }
 0x150   : > { %3311 = vset.pattern.permute.xlu1 %v3629_v12  ;;  %v3938_v33 = vpop.permute.xlu1 %606  ;;  %v928_v12 = vmul.f32 %v4020_v8, %v916_v6  ;;  %v1000_v6 = vld [vmem:[#allocation2 + $0x5] sm:$0xff] }
 0x151   : > { %826 = vperm.xlu1 %3311, %v527_v15   ;;  %v4033_v15 = vsub.s32 4, %v3910_v21  ;;  %v629_v44 = vmul.f32 %v3932_v28, %v3938_v33 }
 0x152   : > { %v936_v30 = vadd.f32 %v928_v12, %v900_v11 }
 0x153   : > { %v4000_v0 = vpop.permute.xlu0 %746  ;;  %5507 = vst [vmem:[#allocation16_spill] sm:$0xff] %v4033_v15  ;;  %v4068_v9 = vrot.slane %v4005_v1, %v4033_v15 }
 0x154   : > { %v964_v55 = vadd.f32 %v956_v31, %v936_v30  ;;  %v4079_v30 = vsub.s32 6, %v3910_v21  ;;  %v627_v31 = vmul.f32 %v3932_v28, %v3904_v18 }
 0x155   : > { %v3954_v39 = vpop.permute.xlu1 %650  ;;  %v1012_v22 = vmul.f32 %v4068_v9, %v1000_v6 }
 0x156   : > { %5509 = vst [vmem:[#allocation18_spill] sm:$0xff] %v4079_v30 }
 0x158   : > { %v4024_v10 = vpop.permute.xlu0 %698 }
 0x159   : > { %v643_v42 = vpop.permute.xlu1 %642 }
 0x15a   : > { %v677_v43 = vmul.f32 %v3961_v41, %v643_v42  ;;  %v4055_v42 = vrot.slane %v4005_v1, %v4010_v4 }
 0x15c   : > { %v3964_v45 = vadd.f32 %v677_v43, %v633_v32  ;;  %v4047_v32 = vrot.slane %v3924_v27, %v4033_v15  ;;  %v984_v56 = vmul.f32 %v4055_v42, %v972_v40  ;;  %v577_v27 = vmul.f32 %v3928_v25, %v3919_v26 }
 0x15d   : > { %v3966_v46 = vpop.permute.xlu1 %658  ;;  %v811_v35 = vpop.permute.xlu0 %810 }
 0x15e   : > { %v681_v2 = vmul.f32 %v3961_v41, %v3966_v46  ;;  %v637_v33 = vadd.f32 %v629_v44, %v577_v27  ;;  %v992_v20 = vadd.f32 %v984_v56, %v964_v55  ;;  %v4076_v46 = vrot.slane %v4005_v1, %v4036_v16 }
 0x15f   : > { %v679_v55 = vmul.f32 %v3961_v41, %v3954_v39 }
 0x160   : > { %v689_v26 = vadd.f32 %v681_v2, %v637_v33  ;;  %v1020_v44 = vadd.f32 %v1012_v22, %v992_v20 }
 0x161   : > { %v815_v11 = vpop.permute.xlu0 %814 }
 0x162   : > { %v3970_v48 = vpop.permute.xlu1 %556 }
 0x163   : > { %v578_v40 = vmul.f32 %v3928_v25, %v3970_v48  ;;  %v4097_v48 = vrot.slane %v4005_v1, %v4079_v30 }
 0x166   : > { %v767_v56 = vpop.permute.xlu0 %766 }
 0x167   : > { %v3974_v50 = vpop.permute.xlu1 %594 }
 0x16c   : > { %v3978_v52 = vpop.permute.xlu1 %702 }
 0x16d   : > { %v731_v39 = vmul.f32 %v4030_v14, %v3978_v52  ;;  %v819_v52 = vpop.permute.xlu0 %818 }
 0x170   : > { %v707_v59 = vpop.permute.xlu1 %706 }
 0x171   : > { %v732_v29 = vmul.f32 %v4030_v14, %v707_v59  ;;  %v836_v59 = vmul.f32 %v4051_v34, %v811_v35  ;;  %v733_v35 = vmul.f32 %v4030_v14, %v711_v60 }
 0x173   : > { %v740_v53 = vadd.f32 %v732_v29, %v688_v36  ;;  %v1028_v29 = vld [vmem:[#allocation2 + $0x6] sm:$0xff]  ;;  %v630_v36 = vmul.f32 %v3932_v28, %v3972_v49  ;;  %v741_v18 = vadd.f32 %v733_v35, %v689_v26 }
 0x174   : > { %v1056_v49 = vld [vmem:[#allocation2 + $0x7] sm:$0xff] }
 0x175   : > { %v3994_v61 = vpop.permute.xlu1 %614  ;;  %v638_v6 = vadd.f32 %v630_v36, %v578_v40  ;;  %v1068_v22 = vmul.f32 %v4097_v48, %v1056_v49  ;;  %v887_v26 = vld [vmem:[%s5464_s4 + $0x8] sm:$0xff]  ;;  %v838_v49 = vmul.f32 %v4051_v34, %v819_v52 }
 0x176   : > { %v4119_v40 = vrot.slane %v887_v26, %v3950_v37 }
 0x17a   : > { %v3998_v63 = vpop.permute.xlu1 %694 }
 0x17f   : > { %v4012_v5 = vpop.permute.xlu1 %646 }
 0x183   : > { %v663_v19 = vpop.permute.xlu1 %662 }
 0x184   : > { %v682_v27 = vmul.f32 %v3961_v41, %v663_v19 }
 0x188   : > { %v759_v43 = vpop.permute.xlu1 %758 }
 0x189   : > { %v784_v54 = vmul.f32 %v4047_v32, %v759_v43 }
 0x18b   : > { %v792_v3 = vadd.f32 %v784_v54, %v740_v53  ;;  %v1040_v53 = vmul.f32 %v4076_v46, %v1028_v29  ;;  %v575_v54 = vmul.f32 %v3928_v25, %v3952_v38  ;;  %v837_v38 = vmul.f32 %v4051_v34, %v815_v11 }
 0x18c   : > { %v4111_v11 = vrot.slane %v887_v26, %v3914_v23 }
 0x18d   : > { %v844_v12 = vadd.f32 %v836_v59, %v792_v3  ;;  %v4070_v13 = vpop.permute.xlu1 %666  ;;  %v4100_v59 = vsub.s32 7, %v3910_v21  ;;  %v635_v2 = vadd.f32 %v627_v31, %v575_v54  ;;  %v1048_v19 = vadd.f32 %v1040_v53, %v1020_v44  ;;  %v1084_v31 = vld [vmem:[#allocation2 + $0x8] sm:$0xff] }
 0x18e   : > { %v690_v21 = vadd.f32 %v682_v27, %v638_v6  ;;  %v786_v44 = vmul.f32 %v4047_v32, %v767_v56  ;;  %v4126_v54 = vrot.slane %v887_v26, %v4010_v4  ;;  %v626_v27 = vmul.f32 %v3932_v28, %v3974_v50  ;;  %v619_v6 = vpop.permute.xlu0 %618 }
 0x18f   : > { %881 = vst.msk [vmem:[#allocation2 + $0x28] sm:$0xff] %vm875_vm1, %v844_v12  ;;  %5510 = vst [vmem:[#allocation19_spill] sm:$0xff] %v4100_v59  ;;  %v687_v33 = vadd.f32 %v679_v55, %v635_v2  ;;  %v4116_v36 = vrot.slane %v4005_v1, %v4100_v59  ;;  %v783_v55 = vmul.f32 %v4047_v32, %v3996_v62  ;;  %v4143_v62 = vld [vmem:[%s5463_s3] sm:$0x3f] }
 0x190   : > { %v574_v1 = vmul.f32 %v3928_v25, %v3968_v47  ;;  %v729_v47 = vmul.f32 %v4030_v14, %v3998_v63  ;;  %v678_v50 = vmul.f32 %v3961_v41, %v4012_v5  ;;  %v855_v63 = vrot.slane %v4143_v62, 2 }
 0x191   : > { %v739_v35 = vadd.f32 %v731_v39, %v687_v33  ;;  %v867_v5 = vrot.slane %v4143_v62, 5 }
 0x192   : > { %v763_v43 = vpop.permute.xlu1 %762 }
 0x193   : > { %v785_v60 = vmul.f32 %v4047_v32, %v763_v43  ;;  %v4122_v43 = vrot.slane %v887_v26, %v3917_v24  ;;  %v791_v39 = vadd.f32 %v783_v55, %v739_v35 }
 0x195   : > { %v793_v3 = vadd.f32 %v785_v60, %v741_v18  ;;  %v1076_v18 = vadd.f32 %v1068_v22, %v1048_v19  ;;  %v1096_v60 = vmul.f32 %v4116_v36, %v1084_v31  ;;  %v4153_v22 = vrot.slane %v887_v26, %v4079_v30 }
 0x197   : > { %v845_v12 = vadd.f32 %v837_v38, %v793_v3  ;;  %v715_v20 = vpop.permute.xlu1 %714  ;;  %v4137_v38 = vrot.slane %v887_v26, %v4033_v15  ;;  %v4161_v31 = vadd.f32 %v1096_v60, %v1076_v18  ;;  %v737_v60 = vadd.f32 %v729_v47, %v3964_v45 }
 0x198   : > { %v734_v29 = vmul.f32 %v4030_v14, %v715_v20  ;;  %v4150_v20 = vrot.slane %v887_v26, %v4036_v16  ;;  %v730_v45 = vmul.f32 %v4030_v14, %v4024_v10  ;;  %v4188_v47 = vmul.f32 %v3932_v28, %v619_v6 }
 0x199   : > { %882 = vst.msk [vmem:[#allocation2 + $0x30] sm:$0xff] %vm875_vm1, %v845_v12  ;;  %v3631_v12 = vmov 64  }
 0x19a   : > { %v742_v53 = vadd.f32 %v734_v29, %v690_v21  ;;  %3313 = vset.pattern.permute.xlu1 %v3631_v12  ;;  %3312 = vset.pattern.permute.xlu0 %v3631_v12  ;;  %v4156_v21 = vrot.slane %v887_v26, %v4100_v59  ;;  %v634_v29 = vadd.f32 %v626_v27, %v574_v1 }
 0x19b   : > { %v631_v26 = vmul.f32 %v3932_v28, %v3994_v61  ;;  %v775_v61 = vpop.permute.xlu0 %774  ;;  %v781_v12 = vmul.f32 %v4047_v32, %v4000_v0  ;;  %5511 = vst [vmem:[#allocation20_spill] sm:$0xff] %v4188_v47 }
 0x19c   : > { %v794_v2 = vadd.f32 %v786_v44, %v742_v53  ;;  %v807_v56 = vpop.permute.xlu1 %806  ;;  %v579_v53 = vmul.f32 %v3928_v25, %v3976_v51  ;;  %v686_v27 = vadd.f32 %v678_v50, %v634_v29  ;;  %v683_v51 = vmul.f32 %v3961_v41, %v4070_v13 }
 0x19d   : > { %v835_v3 = vmul.f32 %v4051_v34, %v807_v56  ;;  %v4193_v29 = vmul.f32 %v855_v63, %v619_v6  ;;  %v4199_v10 = vmul.f32 %v4047_v32, %v775_v61  ;;  %v4201_v28 = vmul.f32 %v867_v5, %v775_v61 }
 0x19e   : > { %v846_v33 = vadd.f32 %v838_v49, %v794_v2  ;;  %v639_v13 = vadd.f32 %v631_v26, %v579_v53  ;;  %v789_v2 = vadd.f32 %v781_v12, %v737_v60  ;;  %v4196_v0 = vadd.f32 %v730_v45, %v686_v27 }
 0x19f   : > { %v843_v19 = vadd.f32 %v835_v3, %v791_v39  ;;  %5513 = vst [vmem:[#allocation22_spill] sm:$0xff] %v4199_v10  ;;  %5514 = vst [vmem:[#allocation23_spill] sm:$0xff] %v4201_v28 }
 0x1a0   : > { %883 = vst.msk [vmem:[#allocation2 + $0x38] sm:$0xff] %vm875_vm1, %v846_v33  ;;  %v893_v52 = vld [vmem:[#allocation2 + $0x29] sm:$0xff]  ;;  %v691_v30 = vadd.f32 %v683_v51, %v639_v13 }
 0x1a1   : > { %v4163_v35 = vld [vmem:[#allocation2 + $0x2a] sm:$0xff]  ;;  %880 = vst.msk [vmem:[#allocation2 + $0x20] sm:$0xff] %vm875_vm1, %v843_v19  ;;  %v719_v55 = vpop.permute.xlu1 %718  ;;  %v905_v1 = vmul.f32 %v4016_v7, %v893_v52 }
 0x1a2   : > { %v4165_v44 = vld [vmem:[#allocation2 + $0x2b] sm:$0xff]  ;;  %v933_v18 = vmul.f32 %v4020_v8, %v4163_v35  ;;  %v735_v27 = vmul.f32 %v4030_v14, %v719_v55  ;;  %v4223_v55 = vmul.f32 %v4111_v11, %v893_v52  ;;  %v4235_v52 = vmul.f32 %v4122_v43, %v4163_v35 }
 0x1a3   : > { %v977_v56 = vld [vmem:[#allocation2 + $0x2c] sm:$0xff]  ;;  %v961_v33 = vmul.f32 %v4040_v17, %v4165_v44 }
 0x1a4   : > { %v941_v3 = vadd.f32 %v933_v18, %v905_v1  ;;  %v4191_v19 = vld [vmem:[#allocation2 + $0x28] sm:$0xff]  ;;  %v989_v18 = vmul.f32 %v4055_v42, %v977_v56 }
 0x1a5   : > { %5512 = vst [vmem:[#allocation21_spill] sm:$0xff] %v4191_v19  ;;  %v1005_v39 = vld [vmem:[#allocation2 + $0x2d] sm:$0xff]  ;;  %v4206_v60 = vmul.f32 %v4116_v36, %v4191_v19 }
 0x1a6   : > { %v969_v1 = vadd.f32 %v961_v33, %v941_v3  ;;  %v799_v49 = vpop.permute.xlu1 %798  ;;  %v1033_v16 = vld [vmem:[#allocation2 + $0x2e] sm:$0xff] }
 0x1a7   : > { %v1061_v50 = vld [vmem:[#allocation2 + $0x2f] sm:$0xff]  ;;  %v833_v53 = vmul.f32 %v4051_v34, %v799_v49  ;;  %v1017_v49 = vmul.f32 %v4068_v9, %v1005_v39  ;;  %v1045_v4 = vmul.f32 %v4076_v46, %v1033_v16  ;;  %v4257_v35 = vmul.f32 %v4150_v20, %v1033_v16  ;;  %v1062_v28 = vld [vmem:[#allocation2 + $0x37] sm:$0xff] }
 0x1a8   : > { %v894_v6 = vld [vmem:[#allocation2 + $0x31] sm:$0xff]  ;;  %v997_v26 = vadd.f32 %v989_v18, %v969_v1  ;;  %v4209_v33 = vld [vmem:[#allocation2 + $0x21] sm:$0xff]  ;;  %v1073_v24 = vmul.f32 %v4097_v48, %v1061_v50 }
 0x1a9   : > { %v922_v63 = vld [vmem:[#allocation2 + $0x32] sm:$0xff]  ;;  %5515 = vst [vmem:[#allocation24_spill] sm:$0xff] %v4209_v33  ;;  %v906_v5 = vmul.f32 %v4016_v7, %v894_v6  ;;  %v4212_v61 = vld [vmem:[#allocation2 + $0x22] sm:$0xff]  ;;  %v841_v45 = vadd.f32 %v833_v53, %v789_v2  ;;  %v904_v13 = vmul.f32 %v4016_v7, %v4209_v33  ;;  %5525 = vst [vmem:[#allocation34_spill] sm:$0xff] %v4257_v35 }
 0x1aa   : > { %v1089_v3 = vld [vmem:[#allocation2 + $0x30] sm:$0xff]  ;;  %5516 = vst [vmem:[#allocation25_spill] sm:$0xff] %v4212_v61  ;;  %v934_v51 = vmul.f32 %v4020_v8, %v922_v63  ;;  %v4215_v12 = vld [vmem:[#allocation2 + $0x23] sm:$0xff]  ;;  %v932_v1 = vmul.f32 %v4020_v8, %v4212_v61  ;;  %v1025_v15 = vadd.f32 %v1017_v49, %v997_v26  ;;  %v4237_v26 = vadd.f32 %v735_v27, %v691_v30  ;;  %v4271_v10 = vld [vmem:[#allocation2 + $0x38] sm:$0xff] }
 0x1ab   : > { %5517 = vst [vmem:[#allocation26_spill] sm:$0xff] %v4215_v12  ;;  %v950_v18 = vld [vmem:[#allocation2 + $0x33] sm:$0xff]  ;;  %v1101_v37 = vmul.f32 %v4116_v36, %v1089_v3  ;;  %878 = vst.msk [vmem:[#allocation2 + $0x10] sm:$0xff] %vm875_vm1, %v841_v45  ;;  %v751_v2 = vpop.permute.xlu1 %750  ;;  %v960_v58 = vmul.f32 %v4040_v17, %v4215_v12  ;;  %v4231_v57 = vld [vmem:[#allocation2 + $0x24] sm:$0xff]  ;;  %v4243_v45 = vmul.f32 %v4119_v40, %v4165_v44 }
 0x1ac   : > { %v940_v53 = vadd.f32 %v932_v1, %v904_v13  ;;  %v942_v23 = vadd.f32 %v934_v51, %v906_v5  ;;  %5518 = vst [vmem:[#allocation27_spill] sm:$0xff] %v4231_v57  ;;  %v4239_v49 = vld [vmem:[#allocation2 + $0x25] sm:$0xff]  ;;  %v1053_v59 = vadd.f32 %v1045_v4, %v1025_v15  ;;  %v4246_v5 = vmul.f32 %v4126_v54, %v977_v56  ;;  %v1006_v27 = vld [vmem:[#allocation2 + $0x35] sm:$0xff] }
 0x1ad   : > { %5519 = vst [vmem:[#allocation28_spill] sm:$0xff] %v4239_v49  ;;  %5520 = vst [vmem:[#allocation29_spill] sm:$0xff] %v4243_v45  ;;  %v962_v51 = vmul.f32 %v4040_v17, %v950_v18  ;;  %v4249_v1 = vld [vmem:[#allocation2 + $0x26] sm:$0xff]  ;;  %v4254_v30 = vmul.f32 %v4137_v38, %v1005_v39  ;;  %v782_v4 = vmul.f32 %v4047_v32, %v751_v2  ;;  %v1034_v2 = vld [vmem:[#allocation2 + $0x36] sm:$0xff] }
 0x1ae   : > { %5521 = vst [vmem:[#allocation30_spill] sm:$0xff] %v4246_v5  ;;  %v968_v13 = vadd.f32 %v960_v58, %v940_v53  ;;  %5522 = vst [vmem:[#allocation31_spill] sm:$0xff] %v4249_v1  ;;  %v4251_v19 = vld [vmem:[#allocation2 + $0x27] sm:$0xff]  ;;  %v988_v15 = vmul.f32 %v4055_v42, %v4231_v57  ;;  %v1081_v44 = vadd.f32 %v1073_v24, %v1053_v59  ;;  %v978_v58 = vld [vmem:[#allocation2 + $0x34] sm:$0xff] }
 0x1af   : > { %5523 = vst [vmem:[#allocation32_spill] sm:$0xff] %v4251_v19  ;;  %5524 = vst [vmem:[#allocation33_spill] sm:$0xff] %v4254_v30  ;;  %v4263_v56 = vmul.f32 %v4153_v22, %v1061_v50  ;;  %v771_v53 = vpop.permute.xlu1 %770  ;;  %v970_v12 = vadd.f32 %v962_v51, %v942_v23  ;;  %v1016_v39 = vmul.f32 %v4068_v9, %v4239_v49 }
 0x1b0   : > { %v1122_v61 = vmul.f32 %v4111_v11, %v894_v6  ;;  %v4269_v16 = vmul.f32 %v4156_v21, %v1089_v3  ;;  %v996_v24 = vadd.f32 %v988_v15, %v968_v13  ;;  %v1044_v59 = vmul.f32 %v4076_v46, %v4249_v1 }
 0x1b1   : > { %5526 = vst [vmem:[#allocation35_spill] sm:$0xff] %v4263_v56  ;;  %v1072_v50 = vmul.f32 %v4097_v48, %v4251_v19  ;;  %v1109_v23 = vadd.f32 %v1101_v37, %v1081_v44  ;;  %v1143_v51 = vmul.f32 %v4122_v43, %v922_v63  ;;  %v1164_v49 = vmul.f32 %v4119_v40, %v950_v18 }
 0x1b2   : > { %5527 = vst [vmem:[#allocation36_spill] sm:$0xff] %v4269_v16  ;;  %v990_v6 = vmul.f32 %v4055_v42, %v978_v58  ;;  %v1018_v3 = vmul.f32 %v4068_v9, %v1006_v27  ;;  %v790_v57 = vadd.f32 %v782_v4, %v4196_v0  ;;  %v889_v16 = vld [vmem:[#allocation2 + $0x9] sm:$0xff]  ;;  %v1046_v15 = vmul.f32 %v4076_v46, %v1034_v2 }
 0x1b3   : > { %v917_v56 = vld [vmem:[#allocation2 + $0xa] sm:$0xff]  ;;  %v4284_v1 = vmul.f32 %v4097_v48, %v1062_v28  ;;  %v4288_v37 = vmul.f32 %v4116_v36, %v4271_v10  ;;  %v901_v63 = vmul.f32 %v4016_v7, %v889_v16  ;;  %v1117_v44 = vmul.f32 %v4111_v11, %v889_v16 }
 0x1b4   : > { %v945_v13 = vld [vmem:[#allocation2 + $0xb] sm:$0xff]  ;;  %v929_v18 = vmul.f32 %v4020_v8, %v917_v56  ;;  %v998_v19 = vadd.f32 %v990_v6, %v970_v12  ;;  %v803_v0 = vpop.permute.xlu1 %802  ;;  %v1024_v35 = vadd.f32 %v1016_v39, %v996_v24  ;;  %v1130_v14 = vadd.f32 %v1122_v61, %v1109_v23 }
 0x1b5   : > { %5528 = vst [vmem:[#allocation37_spill] sm:$0xff] %v4288_v37  ;;  %v973_v4 = vld [vmem:[#allocation2 + $0xc] sm:$0xff]  ;;  %v1185_v30 = vmul.f32 %v4126_v54, %v978_v58  ;;  %v1206_v5 = vmul.f32 %v4137_v38, %v1006_v27  ;;  %v787_v47 = vmul.f32 %v4047_v32, %v771_v53  ;;  %v834_v45 = vmul.f32 %v4051_v34, %v803_v0 }
 0x1b6   : > { %v937_v37 = vadd.f32 %v929_v18, %v901_v63  ;;  %v957_v41 = vmul.f32 %v4040_v17, %v945_v13  ;;  %v1001_v33 = vld [vmem:[#allocation2 + $0xd] sm:$0xff]  ;;  %v1125_v8 = vadd.f32 %v1117_v44, %v4161_v31  ;;  %v1138_v12 = vmul.f32 %v4122_v43, %v917_v56 }
 0x1b7   : > { %v4301_v16 = vmul.f32 %v4150_v20, %v1034_v2  ;;  %v4304_v61 = vmul.f32 %v4153_v22, %v1062_v28  ;;  %v842_v58 = vadd.f32 %v834_v45, %v790_v57  ;;  %v985_v32 = vmul.f32 %v4055_v42, %v973_v4  ;;  %v1029_v24 = vld [vmem:[#allocation2 + $0xe] sm:$0xff] }
 0x1b8   : > { %v965_v27 = vadd.f32 %v957_v41, %v937_v37  ;;  %v1026_v53 = vadd.f32 %v1018_v3, %v998_v19  ;;  %v823_v39 = vpop.permute.xlu1 %822  ;;  %v1146_v23 = vadd.f32 %v1138_v12, %v1125_v8  ;;  %v1159_v6 = vmul.f32 %v4119_v40, %v945_v13  ;;  %v1057_v41 = vld [vmem:[#allocation2 + $0xf] sm:$0xff] }
 0x1b9   : > { %v1052_v63 = vadd.f32 %v1044_v59, %v1024_v35  ;;  %v1151_v31 = vadd.f32 %v1143_v51, %v1130_v14  ;;  %v795_v56 = vadd.f32 %v787_v47, %v4237_v26  ;;  %879 = vst.msk [vmem:[#allocation2 + $0x18] sm:$0xff] %vm875_vm1, %v842_v58  ;;  %v839_v2 = vmul.f32 %v4051_v34, %v823_v39  ;;  %v1085_v45 = vld [vmem:[#allocation2 + $0x10] sm:$0xff] }
 0x1ba   : > { %v993_v28 = vadd.f32 %v985_v32, %v965_v27  ;;  %v1013_v57 = vmul.f32 %v4068_v9, %v1001_v33  ;;  %v1167_v37 = vadd.f32 %v1159_v6, %v1146_v23  ;;  %v1180_v19 = vmul.f32 %v4126_v54, %v973_v4 }
 0x1bb   : > { %v1080_v3 = vadd.f32 %v1072_v50, %v1052_v63  ;;  %v1172_v8 = vadd.f32 %v1164_v49, %v1151_v31  ;;  %v847_v18 = vadd.f32 %v839_v2, %v795_v56  ;;  %v1041_v14 = vmul.f32 %v4076_v46, %v1029_v24 }
 0x1bc   : > { %v1021_v13 = vadd.f32 %v1013_v57, %v993_v28  ;;  %v1054_v35 = vadd.f32 %v1046_v15, %v1026_v53  ;;  %v1188_v47 = vadd.f32 %v1180_v19, %v1167_v37  ;;  %v1201_v26 = vmul.f32 %v4137_v38, %v1001_v33  ;;  %v5531_v19 = vld [vmem:[#allocation24_spill] sm:$0xff] }
 0x1bd   : > { %v1108_v59 = vadd.f32 %v4206_v60, %v1080_v3  ;;  %v1193_v51 = vadd.f32 %v1185_v30, %v1172_v8  ;;  %884 = vst.msk [vmem:[#allocation2 + $0x40] sm:$0xff] %vm875_vm1, %v847_v18  ;;  %v567_v44 = vpop.permute.xlu1 %566  ;;  %v1069_v12 = vmul.f32 %v4097_v48, %v1057_v41  ;;  %v1097_v50 = vmul.f32 %v4116_v36, %v1085_v45  ;;  %v4325_v30 = vld [vmem:[#allocation2 + $0x20] sm:$0xff] }
 0x1be   : > { %v1049_v0 = vadd.f32 %v1041_v14, %v1021_v13  ;;  %v1269_v49 = vmul.f32 %v4156_v21, %v4271_v10  ;;  %v5529_v4 = vrot.slane %v4143_v62, 1  ;;  %v1209_v58 = vadd.f32 %v1201_v26, %v1188_v47  ;;  %v5534_v13 = vld [vmem:[#allocation29_spill] sm:$0xff] }
 0x1bf   : > { %v1222_v33 = vmul.f32 %v4150_v20, %v1029_v24  ;;  %v1129_v60 = vadd.f32 %v4223_v55, %v1108_v59  ;;  %v580_v27 = vmul.f32 %v3928_v25, %v567_v44  ;;  %v1243_v53 = vmul.f32 %v4153_v22, %v1057_v41  ;;  %v5530_v55 = vld [vmem:[#allocation14_spill] sm:$0xff]  ;;  %v5536_v59 = vld [vmem:[#allocation20_spill] sm:$0xff] }
 0x1c0   : > { %v853_v15 = vmul.f32 %v5529_v4, %v567_v44  ;;  %v1077_v32 = vadd.f32 %v1069_v12, %v1049_v0  ;;  %v1082_v39 = vadd.f32 %v4284_v1, %v1054_v35  ;;  %v890_v10 = vld [vmem:[#allocation2 + $0x11] sm:$0xff]  ;;  %v1214_v56 = vadd.f32 %v1206_v5, %v1193_v51  ;;  %v5532_v5 = vld [vmem:[#allocation10_spill] sm:$0xff]  ;;  %v5535_v35 = vld [vmem:[#allocation37_spill] sm:$0xff] }
 0x1c1   : > { %v918_v6 = vld [vmem:[#allocation2 + $0x12] sm:$0xff]  ;;  %v1230_v63 = vadd.f32 %v1222_v33, %v1209_v58  ;;  %v1150_v31 = vadd.f32 %v4235_v52, %v1129_v60  ;;  %v902_v24 = vmul.f32 %v4016_v7, %v890_v10  ;;  %v4336_v25 = vmul.f32 %v4116_v36, %v4325_v30  ;;  %v4357_v58 = vld [vmem:[%s5465_s5] ss:$0 sm:$0xff]  ;;  %v5537_v33 = vld [vmem:[#allocation30_spill] sm:$0xff] }
 0x1c2   : > { %v858_v23 = vadd.f32 %v4193_v29, %v853_v15  ;;  %v930_v2 = vmul.f32 %v5530_v55, %v918_v6  ;;  %v1105_v28 = vadd.f32 %v1097_v50, %v1077_v32  ;;  %v671_v57 = vpop.permute.xlu1 %670  ;;  %v946_v41 = vld [vmem:[#allocation2 + $0x13] sm:$0xff]  ;;  %v1118_v1 = vmul.f32 %v4111_v11, %v890_v10  ;;  %v5538_v10 = vld [vmem:[#allocation33_spill] sm:$0xff] }
 0x1c3   : > { %v1251_v29 = vadd.f32 %v1243_v53, %v1230_v63  ;;  %v1264_v37 = vmul.f32 %v4156_v21, %v1085_v45  ;;  %v4342_v52 = vmul.f32 %v4111_v11, %v5531_v19  ;;  %v684_v3 = vmul.f32 %v5532_v5, %v671_v57  ;;  %v4349_v26 = vld [vmem:[#allocation2 + $0x19] sm:$0xff]  ;;  %v5541_v19 = vld [vmem:[#allocation34_spill] sm:$0xff] }
 0x1c4   : > { %v5533_v8 = vrot.slane %v4143_v62, 3  ;;  %v1171_v14 = vadd.f32 %v5534_v13, %v1150_v31  ;;  %v1110_v47 = vadd.f32 %v5535_v35, %v1082_v39  ;;  %v640_v51 = vadd.f32 %v5536_v59, %v580_v27  ;;  %v895_v45 = vld [vmem:[#allocation2 + $0x39] sm:$0xff]  ;;  %v5542_v59 = vld [vmem:[#allocation35_spill] sm:$0xff] }
 0x1c5   : > { %v938_v44 = vadd.f32 %v930_v2, %v902_v24  ;;  %v1272_v0 = vadd.f32 %v1264_v37, %v1251_v29  ;;  %v1235_v12 = vadd.f32 %v4301_v16, %v1214_v56  ;;  %v958_v4 = vmul.f32 %v4040_v17, %v946_v41  ;;  %v923_v31 = vld [vmem:[#allocation2 + $0x3a] sm:$0xff]  ;;  %v5539_v2 = vld [vmem:[#allocation15_spill] sm:$0xff] }
 0x1c6   : > { %v861_v18 = vmul.f32 %v5533_v8, %v671_v57  ;;  %v1126_v15 = vadd.f32 %v1118_v1, %v1105_v28  ;;  %v1192_v60 = vadd.f32 %v5537_v33, %v1171_v14  ;;  %v1139_v32 = vmul.f32 %v4122_v43, %v918_v6  ;;  %v919_v29 = vld [vmem:[#allocation2 + $0x1a] sm:$0xff] }
 0x1c7   : > { %v1160_v27 = vmul.f32 %v4119_v40, %v946_v41  ;;  %v4363_v53 = vadd.f32 %v4357_v58, %v1272_v0  ;;  %v903_v16 = vmul.f32 %v4016_v7, %v4349_v26  ;;  %v692_v39 = vadd.f32 %v684_v3, %v640_v51 }
 0x1c8   : > { %v862_v50 = vadd.f32 %v861_v18, %v858_v23  ;;  %v723_v23 = vpop.permute.xlu1 %722  ;;  %v1213_v63 = vadd.f32 %v5538_v10, %v1192_v60  ;;  %v1123_v56 = vmul.f32 %v4111_v11, %v895_v45  ;;  %v1256_v24 = vadd.f32 %v4304_v61, %v1235_v12  ;;  %v974_v18 = vld [vmem:[#allocation2 + $0x14] sm:$0xff] }
 0x1c9   : > { %v736_v28 = vmul.f32 %v5539_v2, %v723_v23  ;;  %v5540_v6 = vrot.slane %v4143_v62, 4  ;;  %v966_v41 = vadd.f32 %v958_v4, %v938_v44  ;;  %v1295_v1 = vsub.f32 0.0, %v4363_v53  ;;  %v1002_v4 = vld [vmem:[#allocation2 + $0x15] sm:$0xff] }
 0x1ca   : > { %v1147_v37 = vadd.f32 %v1139_v32, %v1126_v15  ;;  %v1234_v5 = vadd.f32 %v5541_v19, %v1213_v63  ;;  %v907_v3 = vmul.f32 %v4016_v7, %v895_v45  ;;  %v1277_v8 = vadd.f32 %v1269_v49, %v1256_v24  ;;  %v5543_v15 = vld [vmem:[#allocation22_spill] sm:$0xff]  ;;  %v5544_v60 = vld [vmem:[#allocation23_spill] sm:$0xff] }
 0x1cb   : > { %v865_v57 = vmul.f32 %v5540_v6, %v723_v23  ;;  %v744_v13 = vadd.f32 %v736_v28, %v692_v39  ;;  %v1303_v35 = vmul.f32 1.442695, %v1295_v1  ;;  %v935_v61 = vmul.f32 %v5530_v55, %v923_v31  ;;  %v1030_v63 = vld [vmem:[#allocation2 + $0x16] sm:$0xff] }
 0x1cc   : > { %v1255_v51 = vadd.f32 %v5542_v59, %v1234_v5  ;;  %v1131_v0 = vadd.f32 %v1123_v56, %v1110_v47  ;;  %v4379_v44 = vadd.f32 %v4357_v58, %v1277_v8  ;;  %v931_v12 = vmul.f32 %v5530_v55, %v919_v29  ;;  %v827_v49 = vpop.permute.xlu1 %826  ;;  %v5546_v47 = vld [vmem:[#allocation36_spill] sm:$0xff] }
 0x1cd   : > { %v866_v14 = vadd.f32 %v865_v57, %v862_v50  ;;  %v796_v33 = vadd.f32 %v5543_v15, %v744_v13  ;;  %3330 = vpow2.f32 %v1303_v35  ;;  %v986_v45 = vmul.f32 %v4055_v42, %v974_v18  ;;  %v1086_v1 = vld [vmem:[#allocation2 + $0x18] sm:$0xff] }
 0x1ce   : > { %v840_v50 = vmul.f32 %v4051_v34, %v827_v49  ;;  %v5545_v32 = vrot.slane %v4143_v62, 6  ;;  %v1276_v23 = vadd.f32 %v5546_v47, %v1255_v51  ;;  %v1300_v10 = vsub.f32 0.0, %v4379_v44  ;;  %v1058_v62 = vld [vmem:[#allocation2 + $0x17] sm:$0xff] }
 0x1cf   : > { %v870_v7 = vadd.f32 %v5544_v60, %v866_v14  ;;  %v1168_v55 = vadd.f32 %v1160_v27, %v1147_v37  ;;  %v1144_v56 = vmul.f32 %v4122_v43, %v923_v31  ;;  %v994_v24 = vadd.f32 %v986_v45, %v966_v41  ;;  %v951_v27 = vld [vmem:[#allocation2 + $0x3b] sm:$0xff] }
 0x1d0   : > { %v873_v39 = vmul.f32 %v5545_v32, %v827_v49  ;;  %v1014_v2 = vmul.f32 %v4068_v9, %v1002_v4  ;;  %v848_v28 = vadd.f32 %v840_v50, %v796_v33  ;;  %v4395_v57 = vadd.f32 %v4357_v58, %v1276_v23  ;;  %v1007_v60 = vld [vmem:[#allocation2 + $0x3d] sm:$0xff] }
 0x1d1   : > { %v1313_v34 = vmul.f32 1.442695, %v1300_v10  ;;  %v943_v19 = vadd.f32 %v935_v61, %v907_v3  ;;  %v1152_v5 = vadd.f32 %v1144_v56, %v1131_v0  ;;  %v1042_v13 = vmul.f32 %v4076_v46, %v1030_v63  ;;  %v979_v61 = vld [vmem:[#allocation2 + $0x3c] sm:$0xff] }
 0x1d2   : > { %v4392_v6 = vadd.f32 %v873_v39, %v870_v7  ;;  %v1022_v8 = vadd.f32 %v1014_v2, %v994_v24  ;;  %885 = vst.msk [vmem:[#allocation2 + $0x48] sm:$0xff] %vm875_vm1, %v848_v28  ;;  %v1299_v31 = vsub.f32 0.0, %v4395_v57  ;;  %v939_v41 = vadd.f32 %v931_v12, %v903_v16  ;;  %v1035_v49 = vld [vmem:[#allocation2 + $0x3e] sm:$0xff] }
 0x1d3   : > { %3332 = vpow2.f32 %v1313_v34  ;;  %v1181_v37 = vmul.f32 %v4126_v54, %v974_v18  ;;  %v1070_v35 = vmul.f32 %v4097_v48, %v1058_v62  ;;  %v1098_v59 = vmul.f32 %v4116_v36, %v1086_v1  ;;  %v1063_v45 = vld [vmem:[#allocation2 + $0x3f] sm:$0xff] }
 0x1d4   : > { %v1050_v14 = vadd.f32 %v1042_v13, %v1022_v8  ;;  %v1119_v3 = vmul.f32 %v4111_v11, %v4349_v26  ;;  %v1311_v51 = vmul.f32 1.442695, %v1299_v31  ;;  %v1202_v15 = vmul.f32 %v4137_v38, %v1002_v4  ;;  %v947_v39 = vld [vmem:[#allocation2 + $0x1b] sm:$0xff] }
 0x1d5   : > { %v1189_v0 = vadd.f32 %v1181_v37, %v1168_v55  ;;  %v963_v33 = vmul.f32 %v4040_v17, %v951_v27  ;;  %v1140_v16 = vmul.f32 %v4122_v43, %v919_v29  ;;  %v1223_v18 = vmul.f32 %v4150_v20, %v1030_v63  ;;  %v1091_v10 = vld [vmem:[#allocation2 + $0x40] sm:$0xff] }
 0x1d6   : > { %v1078_v7 = vadd.f32 %v1070_v35, %v1050_v14  ;;  %v1244_v12 = vmul.f32 %v4153_v22, %v1058_v62  ;;  %3334 = vpow2.f32 %v1311_v51  ;;  %v991_v32 = vmul.f32 %v4055_v42, %v979_v61 }
 0x1d7   : > { %v1210_v50 = vadd.f32 %v1202_v15, %v1189_v0  ;;  %v971_v26 = vadd.f32 %v963_v33, %v943_v19  ;;  %v1265_v4 = vmul.f32 %v4156_v21, %v1086_v1  ;;  %v1019_v23 = vmul.f32 %v4068_v9, %v1007_v60  ;;  %v975_v19 = vld [vmem:[#allocation2 + $0x1c] sm:$0xff] }
 0x1d8   : > { %v1106_v47 = vadd.f32 %v1098_v59, %v1078_v7  ;;  %v1165_v29 = vmul.f32 %v4119_v40, %v951_v27  ;;  %v1047_v56 = vmul.f32 %v4076_v46, %v1035_v49  ;;  %v1075_v24 = vmul.f32 %v4097_v48, %v1063_v45 }
 0x1d9   : > { %v1231_v55 = vadd.f32 %v1223_v18, %v1210_v50  ;;  %v999_v63 = vadd.f32 %v991_v32, %v971_v26  ;;  %v1186_v34 = vmul.f32 %v4126_v54, %v979_v61  ;;  %v959_v62 = vmul.f32 %v4040_v17, %v947_v39  ;;  %v1112_v37 = vld [vmem:[#allocation2 + $0x41] sm:$0xff] }
 0x1da   : > { %v1127_v2 = vadd.f32 %v1119_v3, %v1106_v47  ;;  %v1173_v28 = vadd.f32 %v1165_v29, %v1152_v5  ;;  %v3331_v8 = vpop.eup %3330  ;;  %v1103_v31 = vmul.f32 %v4116_v36, %v1091_v10  ;;  %v1207_v27 = vmul.f32 %v4137_v38, %v1007_v60  ;;  %v1003_v3 = vld [vmem:[#allocation2 + $0x1d] sm:$0xff] }
 0x1db   : > { %v1252_v1 = vadd.f32 %v1244_v12, %v1231_v55  ;;  %v1027_v13 = vadd.f32 %v1019_v23, %v999_v63  ;;  %v1319_v14 = vadd.f32 1.0, %v3331_v8  ;;  %v1228_v59 = vmul.f32 %v4150_v20, %v1035_v49  ;;  %v1133_v61 = vld [vmem:[#allocation2 + $0x42] sm:$0xff] }
 0x1dc   : > { %v1194_v35 = vadd.f32 %v1186_v34, %v1173_v28  ;;  %v967_v51 = vadd.f32 %v959_v62, %v939_v41  ;;  %v1249_v17 = vmul.f32 %v4153_v22, %v1063_v45  ;;  %v987_v15 = vmul.f32 %v4055_v42, %v975_v19  ;;  %v1031_v18 = vld [vmem:[#allocation2 + $0x1e] sm:$0xff] }
 0x1dd   : > { %v1273_v5 = vadd.f32 %v1265_v4, %v1252_v1  ;;  %v1055_v0 = vadd.f32 %v1047_v56, %v1027_v13  ;;  %3336 = vrcp.f32 %v1319_v14  ;;  %v1148_v33 = vadd.f32 %v1140_v16, %v1127_v2  ;;  %v1059_v42 = vld [vmem:[#allocation2 + $0x1f] sm:$0xff] }
 0x1de   : > { %v1124_v36 = vmul.f32 %v4111_v11, %v1112_v37  ;;  %v1215_v7 = vadd.f32 %v1207_v27, %v1194_v35  ;;  %v995_v49 = vadd.f32 %v987_v15, %v967_v51  ;;  %v1015_v41 = vmul.f32 %v4068_v9, %v1003_v3  ;;  %v1154_v29 = vld [vmem:[#allocation2 + $0x43] sm:$0xff] }
 0x1df   : > { %v4425_v60 = vadd.f32 %v4357_v58, %v1273_v5  ;;  %v1083_v12 = vadd.f32 %v1075_v24, %v1055_v0  ;;  %v1145_v26 = vmul.f32 %v4122_v43, %v1133_v61  ;;  %v1270_v45 = vmul.f32 %v4156_v21, %v1091_v10  ;;  %v1175_v13 = vld [vmem:[#allocation2 + $0x44] sm:$0xff] }
 0x1e0   : > { %v3333_v50 = vpop.eup %3332  ;;  %v1236_v32 = vadd.f32 %v1228_v59, %v1215_v7  ;;  %v1161_v16 = vmul.f32 %v4119_v40, %v947_v39  ;;  %v1023_v4 = vadd.f32 %v1015_v41, %v995_v49  ;;  %v1043_v23 = vmul.f32 %v4076_v46, %v1031_v18  ;;  %v1217_v61 = vld [vmem:[#allocation2 + $0x46] sm:$0xff] }
 0x1e1   : > { %v1296_v11 = vsub.f32 0.0, %v4425_v60  ;;  %v1111_v47 = vadd.f32 %v1103_v31, %v1083_v12  ;;  %v1324_v55 = vadd.f32 1.0, %v3333_v50  ;;  %v1182_v9 = vmul.f32 %v4126_v54, %v975_v19  ;;  %v5547_v15 = vld [vmem:[#allocation25_spill] sm:$0xff] }
 0x1e2   : > { %v1257_v63 = vadd.f32 %v1249_v17, %v1236_v32  ;;  %v1169_v56 = vadd.f32 %v1161_v16, %v1148_v33  ;;  %v1051_v28 = vadd.f32 %v1043_v23, %v1023_v4  ;;  %v1071_v10 = vmul.f32 %v4097_v48, %v1059_v42  ;;  %v1196_v48 = vld [vmem:[#allocation2 + $0x45] sm:$0xff] }
 0x1e3   : > { %v1305_v24 = vmul.f32 1.442695, %v1296_v11  ;;  %v1132_v2 = vadd.f32 %v1124_v36, %v1111_v47  ;;  %v3335_v34 = vpop.eup %3334  ;;  %v1203_v8 = vmul.f32 %v4137_v38, %v1003_v3  ;;  %v1166_v1 = vmul.f32 %v4119_v40, %v1154_v29  ;;  %v1238_v49 = vld [vmem:[#allocation2 + $0x47] sm:$0xff]  ;;  %v5549_v47 = vld [vmem:[#allocation27_spill] sm:$0xff] }
 0x1e4   : > { %v1278_v62 = vadd.f32 %v1270_v45, %v1257_v63  ;;  %v1190_v39 = vadd.f32 %v1182_v9, %v1169_v56  ;;  %v1323_v46 = vadd.f32 1.0, %v3335_v34  ;;  %v1079_v37 = vadd.f32 %v1071_v10, %v1051_v28  ;;  %v1259_v16 = vld [vmem:[#allocation2 + $0x48] sm:$0xff] }
 0x1e5   : > { %3338 = vpow2.f32 %v1305_v24  ;;  %v1153_v31 = vadd.f32 %v1145_v26, %v1132_v2  ;;  %v1224_v14 = vmul.f32 %v4150_v20, %v1031_v18  ;;  %v1187_v51 = vmul.f32 %v4126_v54, %v1175_v13  ;;  %v5548_v26 = vld [vmem:[#allocation26_spill] sm:$0xff]  ;;  %v5551_v2 = vld [vmem:[#allocation31_spill] sm:$0xff] }
 0x1e6   : > { %3340 = vrcp.f32 %v1324_v55  ;;  %v4438_v19 = vadd.f32 %v4357_v58, %v1278_v62  ;;  %v1211_v27 = vadd.f32 %v1203_v8, %v1190_v39  ;;  %v1107_v35 = vadd.f32 %v4336_v25, %v1079_v37  ;;  %v5550_v55 = vld [vmem:[#allocation28_spill] sm:$0xff] }
 0x1e7   : > { %3342 = vrcp.f32 %v1323_v46  ;;  %v1174_v59 = vadd.f32 %v1166_v1, %v1153_v31  ;;  %v1245_v0 = vmul.f32 %v4153_v22, %v1059_v42  ;;  %v1141_v33 = vmul.f32 %v4122_v43, %v5547_v15  ;;  %v5552_v1 = vld [vmem:[#allocation32_spill] sm:$0xff]  ;;  %v5553_v31 = vld [vmem:[#allocation21_spill] sm:$0xff] }
 0x1e8   : > { %v1301_v3 = vsub.f32 0.0, %v4438_v19  ;;  %v1232_v5 = vadd.f32 %v1224_v14, %v1211_v27  ;;  %v1128_v17 = vadd.f32 %v4342_v52, %v1107_v35  ;;  %v1208_v7 = vmul.f32 %v4137_v38, %v1196_v48 }
 0x1e9   : > { %v1195_v36 = vadd.f32 %v1187_v51, %v1174_v59  ;;  %v1266_v25 = vmul.f32 %v4156_v21, %v4325_v30  ;;  %v1162_v32 = vmul.f32 %v4119_v40, %v5548_v26  ;;  %v1229_v52 = vmul.f32 %v4150_v20, %v1217_v61 }
 0x1ea   : > { %v1315_v18 = vmul.f32 1.442695, %v1301_v3  ;;  %v1253_v12 = vadd.f32 %v1245_v0, %v1232_v5  ;;  %v3337_v41 = vpop.eup %3336  ;;  %v1149_v50 = vadd.f32 %v1141_v33, %v1128_v17  ;;  %v1183_v4 = vmul.f32 %v4126_v54, %v5549_v47 }
 0x1eb   : > { %v1216_v45 = vadd.f32 %v1208_v7, %v1195_v36  ;;  %v4455_v42 = vmul.f32 %v3337_v41, %v4363_v53  ;;  %v1250_v23 = vmul.f32 %v4153_v22, %v1238_v49  ;;  %v1204_v53 = vmul.f32 %v4137_v38, %v5550_v55 }
 0x1ec   : > { %3344 = vpow2.f32 %v1315_v18  ;;  %v1274_v43 = vadd.f32 %v1266_v25, %v1253_v12  ;;  %v1170_v11 = vadd.f32 %v1162_v32, %v1149_v50  ;;  %v1271_v56 = vmul.f32 %v4156_v21, %v1259_v16 }
 0x1ed   : > { %v1237_v30 = vadd.f32 %v1229_v52, %v1216_v45  ;;  %3070 = vmatprep.mubr.msk.f32.mxu0 %vm875_vm1, %v4455_v42  ;;  %v1225_v54 = vmul.f32 %v4150_v20, %v5551_v2  ;;  %v1246_v13 = vmul.f32 %v4153_v22, %v5552_v1  ;;  %v1267_v37 = vmul.f32 %v4156_v21, %v5553_v31 }
 0x1ee   : > { %v1289_v40 = vadd.f32 %v4357_v58, %v1274_v43  ;;  %v1191_v29 = vadd.f32 %v1183_v4, %v1170_v11  ;;  %v5554_v43 = vld [vmem:[#allocation19_spill] sm:$0xff]  ;;  %v1670_v4 = vld [vmem:[%s5469_s9] sm:$0xff] }
 0x1ef   : > { %v1258_v63 = vadd.f32 %v1250_v23, %v1237_v30  ;;  %v1671_v30 = vld [vmem:[%s5469_s9 + $0x8] sm:$0xf]  ;;  %v1672_v23 = vmul.f32 1.442695, %v1670_v4 }
 0x1f0   : > { %v1297_v9 = vsub.f32 0.0, %v1289_v40  ;;  %v1212_v24 = vadd.f32 %v1204_v53, %v1191_v29 }
 0x1f1   : > { %v1279_v28 = vadd.f32 %v1271_v56, %v1258_v63  ;;  %v4546_v56 = vld [vmem:[%s5467_s7] ss:$0 sm:$0xff] }
 0x1f2   : > { %v3339_v10 = vpop.eup %3338  ;;  %v1307_v34 = vmul.f32 1.442695, %v1297_v9  ;;  %v1233_v8 = vadd.f32 %v1225_v54, %v1212_v24  ;;  %v4551_v9 = vld [vmem:[%s5468_s8] ss:$0 sm:$0xff] }
 0x1f3   : > { %v3341_v62 = vpop.eup %3340  ;;  %v1320_v39 = vadd.f32 1.0, %v3339_v10  ;;  %v1294_v46 = vadd.f32 %v4357_v58, %v1279_v28 }
 0x1f4   : > { %v3343_v38 = vpop.eup %3342  ;;  %3346 = vpow2.f32 %v1307_v34  ;;  %v1254_v20 = vadd.f32 %v1246_v13, %v1233_v8  ;;  %v4477_v48 = vmul.f32 %v3341_v62, %v4379_v44 }
 0x1f5   : > { %v4474_v27 = vmul.f32 %v3343_v38, %v4395_v57  ;;  %3348 = vrcp.f32 %v1320_v39  ;;  %v1302_v14 = vsub.f32 0.0, %v1294_v46 }
 0x1f6   : > { %v1275_v22 = vadd.f32 %v1267_v37, %v1254_v20 }
 0x1f7   : > { %3076 = vmatprep.mubr.msk.f32.mxu1 %vm875_vm1, %v4474_v27  ;;  %v1317_v35 = vmul.f32 1.442695, %v1302_v14 }
 0x1f8   : > { %3077 = vmatmul.mubr.msk.f32.vlgmr.msra.gmra.mxu1 %vm875_vm1, %v4477_v48  ;;  %v1290_v21 = vadd.f32 %v4357_v58, %v1275_v22 }
 0x1f9   : > { %v3345_v59 = vpop.eup %3344  ;;  %3350 = vpow2.f32 %v1317_v35 }
 0x1fa   : > { %v1325_v57 = vadd.f32 1.0, %v3345_v59  ;;  %v1298_v51 = vsub.f32 0.0, %v1290_v21 }
 0x1fc   : > { %3352 = vrcp.f32 %v1325_v57  ;;  %v1309_v3 = vmul.f32 1.442695, %v1298_v51 }
 0x1fe   : > { %3354 = vpow2.f32 %v1309_v3 }
 0x201   : > { %v3347_v5 = vpop.eup %3346 }
 0x202   : > { %v3349_v44 = vpop.eup %3348  ;;  %v1321_v0 = vadd.f32 1.0, %v3347_v5 }
 0x203   : > { %v4485_v61 = vmul.f32 %v3349_v44, %v4425_v60 }
 0x204   : > { %3356 = vrcp.f32 %v1321_v0 }
 0x205   : > { %3071 = vmatmul.mubr.msk.f32.vlgmr.msra.gmra.mxu0 %vm875_vm1, %v4485_v61 }
 0x206   : > { %v3351_v17 = vpop.eup %3350 }
 0x207   : > { %v1326_v15 = vadd.f32 1.0, %v3351_v17 }
 0x209   : > { %v3353_v33 = vpop.eup %3352  ;;  %3358 = vrcp.f32 %v1326_v15 }
 0x20a   : > { %v4490_v58 = vmul.f32 %v3353_v33, %v4438_v19 }
 0x20b   : > { %v3355_v36 = vpop.eup %3354 }
 0x20c   : > { %3079 = vmatprep.mubr.msk.f32.mxu1 %vm875_vm1, %v4490_v58  ;;  %v1322_v7 = vadd.f32 1.0, %v3355_v36 }
 0x20e   : > { %3360 = vrcp.f32 %v1322_v7 }
 0x20f   : > { %3362 = vpow2.f32 %v1672_v23 }
 0x211   : > { %v3357_v18 = vpop.eup %3356 }
 0x212   : > { %v4494_v60 = vmul.f32 %v3357_v18, %v1289_v40  ;;  %v1674_v40 = vmul.f32 1.442695, %v1671_v30 }
 0x214   : > { %3073 = vmatprep.mubr.msk.f32.mxu0 %vm875_vm1, %v4494_v60  ;;  %3364 = vpow2.f32 %v1674_v40 }
 0x216   : > { %v3359_v12 = vpop.eup %3358 }
 0x217   : > { %v4498_v25 = vmul.f32 %v3359_v12, %v1294_v46 }
 0x219   : > { %3080 = vmatmul.mubr.msk.f32.gmra.mxu1 %vm875_vm1, %v4498_v25 }
 0x21b   : > { %v3361_v19 = vpop.eup %3360 }
 0x21c   : > { %v4502_v49 = vmul.f32 %v3361_v19, %v1290_v21  ;;  %v3363_v29 = vpop.eup %3362 }
 0x21d   : > { %v4539_v53 = vsub.f32 0.0, %v3363_v29 }
 0x21e   : > { %3074 = vmatmul.mubr.msk.f32.gmra.mxu0 %vm875_vm1, %v4502_v49 }
 0x221   : > { %v3365_v55 = vpop.eup %3364 }
 0x222   : > { %v4541_v63 = vsub.f32 0.0, %v3365_v55 }
 0x2b8   : > { %v4506_v41 = vpop.f32.mrf.mxu1 }
 0x2b9   : > { %1522 = vperm.xlu1 %3313, %v4506_v41  }
 0x2ba   : > { %v4515_v32 = vpop.f32.mrf.mxu1 }
 0x2c5   : > { %v4509_v50 = vpop.f32.mrf.mxu0 }
 0x2c6   : > { %1502 = vperm.xlu0 %3312, %v4509_v50  }
 0x2c7   : > { %v4512_v26 = vpop.f32.mrf.mxu0 }
 0x2c8   : > { %1497 = vperm.xlu1 %3313, %v4512_v26  }
 0x2ca   : > { %1517 = vperm.xlu0 %3312, %v4515_v32  }
 0x2d9   : > { %v4518_v45 = vpop.f32.mrf.mxu1 }
 0x2da   : > { %v1648_v16 = vrot.slane %v4518_v45, %v5554_v43 }
 0x2db   : > { %v4520_v52 = vpop.f32.mrf.mxu1 }
 0x2dc   : > { %1527 = vperm.xlu0 %3312, %v4520_v52  }
 0x2de   : > { %v4525_v11 = vpop.f32.mrf.mxu0 }
 0x2df   : > { %1512 = vperm.xlu1 %3313, %v4525_v11  }
 0x2e0   : > { %1650 = vrot.lane.b32.xlu0 %v1648_v16, %s3632_s12  ;;  %v4529_v47 = vpop.f32.mrf.mxu0 }
 0x2e3   : > { %1507 = vperm.xlu1 %3313, %v4529_v47  }
 0x2e7   : > { %1532 = vperm.xlu1 %3313, %v4518_v45  }
 0x334   : > { %v1523_v24 = vpop.permute.xlu1 %1522 }
 0x335   : > { %v1546_v2 = vmul.f32 %v4546_v56, %v1523_v24 }
 0x337   : > { %v1554_v54 = vadd.f32 %v4551_v9, %v1546_v2 }
 0x339   : > { %v1570_v28 = vmin.f32 %v1554_v54, 20.0  ;;  %vm1562_vm5 = vcmp.gt.f32.partialorder %v1554_v54, 20.0 }
 0x33b   : > { %v1583_v10 = vmul.f32 1.442695, %v1570_v28 }
 0x33d   : > { %3366 = vpow2.f32 %v1583_v10 }
 0x341   : > { %v1503_v34 = vpop.permute.xlu0 %1502 }
 0x342   : > { %v1542_v62 = vmul.f32 %v4546_v56, %v1503_v34 }
 0x343   : > { %v1498_v39 = vpop.permute.xlu1 %1497 }
 0x344   : > { %v4557_v8 = vadd.f32 %v4551_v9, %v1542_v62  ;;  %v1541_v1 = vmul.f32 %v4546_v56, %v1498_v39 }
 0x345   : > { %v1518_v13 = vpop.permute.xlu0 %1517 }
 0x346   : > { %v1566_v46 = vmin.f32 %v4557_v8, 20.0  ;;  %v4562_v38 = vadd.f32 %v4551_v9, %v1541_v1  ;;  %v1545_v31 = vmul.f32 %v4546_v56, %v1518_v13  ;;  %vm1558_vm6 = vcmp.gt.f32.partialorder %v4557_v8, 20.0 }
 0x348   : > { %v1575_v37 = vmul.f32 1.442695, %v1566_v46  ;;  %v1565_v20 = vmin.f32 %v4562_v38, 20.0  ;;  %v4567_v14 = vadd.f32 %v4551_v9, %v1545_v31  ;;  %vm1557_vm7 = vcmp.gt.f32.partialorder %v4562_v38, 20.0 }
 0x34a   : > { %v3367_v22 = vpop.eup %3366  ;;  %3368 = vpow2.f32 %v1575_v37  ;;  %v1573_v35 = vmul.f32 1.442695, %v1565_v20  ;;  %v1569_v59 = vmin.f32 %v4567_v14, 20.0  ;;  %vm1561_vm8 = vcmp.gt.f32.partialorder %v4567_v14, 20.0 }
 0x34b   : > { %v1594_v21 = vadd.f32 1.0, %v3367_v22 }
 0x34c   : > { %3370 = vpow2.f32 %v1573_v35  ;;  %v1581_v57 = vmul.f32 1.442695, %v1569_v59 }
 0x34d   : > { %3372 = vlog2.f32 %v1594_v21 }
 0x34e   : > { %3374 = vpow2.f32 %v1581_v57 }
 0x357   : > { %v3369_v51 = vpop.eup %3368  ;;  %v1528_v3 = vpop.permute.xlu0 %1527 }
 0x358   : > { %v1590_v5 = vadd.f32 1.0, %v3369_v51  ;;  %v1547_v44 = vmul.f32 %v4546_v56, %v1528_v3 }
 0x359   : > { %v3371_v0 = vpop.eup %3370 }
 0x35a   : > { %v3373_v17 = vpop.eup %3372  ;;  %3376 = vlog2.f32 %v1590_v5  ;;  %v1589_v15 = vadd.f32 1.0, %v3371_v0  ;;  %v4572_v33 = vadd.f32 %v4551_v9, %v1547_v44  ;;  %v1513_v18 = vpop.permute.xlu1 %1512 }
 0x35b   : > { %v3375_v36 = vpop.eup %3374  ;;  %v1608_v7 = vmul.f32 0.6931472, %v3373_v17  ;;  %v1651_v12 = vpop.permute.xlu0 %1650  ;;  %v1544_v43 = vmul.f32 %v4546_v56, %v1513_v18 }
 0x35c   : > { %3378 = vlog2.f32 %v1589_v15  ;;  %v1593_v19 = vadd.f32 1.0, %v3375_v36  ;;  %v1571_v4 = vmin.f32 %v4572_v33, 20.0  ;;  %v1653_v30 = vmul.f32 %v1651_v12, %v4512_v26 }
 0x35d   : > { %v1618_v16 = vsel %vm1562_vm5, %v1554_v54, %v1608_v7  ;;  %v1654_v23 = vmul.f32 %v4509_v50, %v1651_v12  ;;  %v4581_v29 = vadd.f32 %v4551_v9, %v1544_v43  ;;  %v1655_v55 = vmul.f32 %v1651_v12, %v4529_v47 }
 0x35e   : > { %1626 = vst.msk [vmem:[#allocation3 + $0x28] sm:$0xff] %vm875_vm1, %v1618_v16  ;;  %v1634_v40 = vmul.f32 %v1618_v16, %v4477_v48  ;;  %3380 = vlog2.f32 %v1593_v19  ;;  %v1508_v24 = vpop.permute.xlu1 %1507  ;;  %v1585_v2 = vmul.f32 1.442695, %v1571_v4  ;;  %v1656_v54 = vmul.f32 %v4525_v11, %v1651_v12 }
 0x35f   : > { %v1657_v28 = vmul.f32 %v1651_v12, %v4515_v32  ;;  %v1658_v26 = vmul.f32 %v4506_v41, %v1651_v12  ;;  %1662 = vst.msk [vmem:[#allocation5] sm:$0xff] %vm1661_vm4, %v1653_v30  ;;  %1663 = vst.msk [vmem:[#allocation5 + $0x8] sm:$0xff] %vm1661_vm4, %v1654_v23  ;;  %v1568_v48 = vmin.f32 %v4581_v29, 20.0  ;;  %v1543_v50 = vmul.f32 %v4546_v56, %v1508_v24 }
 0x360   : > { %1642 = vst.msk [vmem:[#allocation4 + $0x28] sm:$0xff] %vm875_vm1, %v1634_v40  ;;  %v1659_v47 = vmul.f32 %v1651_v12, %v4520_v52  ;;  %3382 = vpow2.f32 %v1585_v2  ;;  %v1660_v11 = vmul.f32 %v4518_v45, %v1651_v12  ;;  %vm1563_vm9 = vcmp.gt.f32.partialorder %v4572_v33, 20.0 }
 0x361   : > { %1664 = vst.msk [vmem:[#allocation5 + $0x10] sm:$0xff] %vm1661_vm4, %v1655_v55  ;;  %1665 = vst.msk [vmem:[#allocation5 + $0x18] sm:$0xff] %vm1661_vm4, %v1656_v54  ;;  %v1579_v41 = vmul.f32 1.442695, %v1568_v48  ;;  %v4599_v32 = vadd.f32 %v4551_v9, %v1543_v50  ;;  %vm1560_vm10 = vcmp.gt.f32.partialorder %v4581_v29, 20.0  ;;  %v4644_v30 = vmov 0.0  }
 0x362   : > { %1666 = vst.msk [vmem:[#allocation5 + $0x20] sm:$0xff] %vm1661_vm4, %v1657_v28  ;;  %1667 = vst.msk [vmem:[#allocation5 + $0x28] sm:$0xff] %vm1661_vm4, %v1658_v26  ;;  %v1533_v10 = vpop.permute.xlu1 %1532  ;;  %v4646_v23 = vmov 0.0   ;;  %v4648_v40 = vmov 0.0   ;;  %v4654_v55 = vmov 0.0   ;;  %v4656_v24 = vmov 0.0  }
 0x363   : > { %1668 = vst.msk [vmem:[#allocation5 + $0x30] sm:$0xff] %vm1661_vm4, %v1659_v47  ;;  %1669 = vst.msk [vmem:[#allocation5 + $0x38] sm:$0xff] %vm1661_vm4, %v1660_v11  ;;  %3384 = vpow2.f32 %v1579_v41  ;;  %v1567_v52 = vmin.f32 %v4599_v32, 20.0  ;;  %v1548_v45 = vmul.f32 %v4546_v56, %v1533_v10  ;;  %vm1559_vm11 = vcmp.gt.f32.partialorder %v4599_v32, 20.0 }
 0x364   : > { %v4658_v2 = vmov 0.0   ;;  %v4660_v54 = vmov 0.0   ;;  %v4662_v28 = vmov 0.0   ;;  %v4664_v26 = vmov 0.0  }
 0x365   : > { %v1577_v34 = vmul.f32 1.442695, %v1567_v52  ;;  %v4606_v62 = vadd.f32 %v4551_v9, %v1548_v45  ;;  %v4666_v48 = vmov 0.0   ;;  %v4668_v50 = vmov 0.0  }
 0x367   : > { %v3377_v39 = vpop.eup %3376  ;;  %3386 = vpow2.f32 %v1577_v34  ;;  %v1572_v13 = vmin.f32 %v4606_v62, 20.0  ;;  %vm1564_vm12 = vcmp.gt.f32.partialorder %v4606_v62, 20.0 }
 0x368   : > { %v1600_v1 = vmul.f32 0.6931472, %v3377_v39 }
 0x369   : > { %v3379_v46 = vpop.eup %3378  ;;  %v1587_v20 = vmul.f32 1.442695, %v1572_v13 }
 0x36a   : > { %v1614_v31 = vsel %vm1558_vm6, %v4557_v8, %v1600_v1  ;;  %v1598_v37 = vmul.f32 0.6931472, %v3379_v46 }
 0x36b   : > { %v3381_v22 = vpop.eup %3380  ;;  %1622 = vst.msk [vmem:[#allocation3 + $0x8] sm:$0xff] %vm875_vm1, %v1614_v31  ;;  %v1630_v56 = vmul.f32 %v1614_v31, %v4485_v61  ;;  %3388 = vpow2.f32 %v1587_v20 }
 0x36c   : > { %v1613_v9 = vsel %vm1557_vm7, %v4562_v38, %v1598_v37  ;;  %v1606_v35 = vmul.f32 0.6931472, %v3381_v22 }
 0x36d   : > { %1638 = vst.msk [vmem:[#allocation4 + $0x8] sm:$0xff] %vm875_vm1, %v1630_v56  ;;  %1621 = vst.msk [vmem:[#allocation3] sm:$0xff] %vm875_vm1, %v1613_v9  ;;  %v1629_v59 = vmul.f32 %v1613_v9, %v4455_v42  ;;  %v3383_v8 = vpop.eup %3382 }
 0x36e   : > { %v1617_v21 = vsel %vm1561_vm8, %v4567_v14, %v1606_v35  ;;  %v1595_v38 = vadd.f32 1.0, %v3383_v8 }
 0x36f   : > { %1637 = vst.msk [vmem:[#allocation4] sm:$0xff] %vm875_vm1, %v1629_v59  ;;  %1625 = vst.msk [vmem:[#allocation3 + $0x20] sm:$0xff] %vm875_vm1, %v1617_v21  ;;  %v1633_v61 = vmul.f32 %v1617_v21, %v4474_v27 }
 0x370   : > { %v3385_v57 = vpop.eup %3384  ;;  %3390 = vlog2.f32 %v1595_v38 }
 0x371   : > { %1641 = vst.msk [vmem:[#allocation4 + $0x20] sm:$0xff] %vm875_vm1, %v1633_v61  ;;  %v1592_v51 = vadd.f32 1.0, %v3385_v57 }
 0x373   : > { %3392 = vlog2.f32 %v1592_v51 }
 0x374   : > { %v3387_v3 = vpop.eup %3386 }
 0x375   : > { %v1591_v42 = vadd.f32 1.0, %v3387_v3 }
 0x377   : > { %3394 = vlog2.f32 %v1591_v42 }
 0x378   : > { %v3389_v5 = vpop.eup %3388 }
 0x379   : > { %v1596_v44 = vadd.f32 1.0, %v3389_v5 }
 0x37b   : > { %3396 = vlog2.f32 %v1596_v44 }
 0x37d   : > { %v3391_v14 = vpop.eup %3390 }
 0x37e   : > { %v1610_v0 = vmul.f32 0.6931472, %v3391_v14 }
 0x380   : > { %v3393_v17 = vpop.eup %3392  ;;  %v1619_v27 = vsel %vm1563_vm9, %v4572_v33, %v1610_v0 }
 0x381   : > { %v1604_v15 = vmul.f32 0.6931472, %v3393_v17  ;;  %1627 = vst.msk [vmem:[#allocation3 + $0x30] sm:$0xff] %vm875_vm1, %v1619_v27  ;;  %v1635_v36 = vmul.f32 %v1619_v27, %v4490_v58 }
 0x383   : > { %v1616_v7 = vsel %vm1560_vm10, %v4581_v29, %v1604_v15  ;;  %1643 = vst.msk [vmem:[#allocation4 + $0x30] sm:$0xff] %vm875_vm1, %v1635_v36  ;;  %v4652_v29 = vmov 0.0  }
 0x384   : > { %v3395_v18 = vpop.eup %3394  ;;  %1624 = vst.msk [vmem:[#allocation3 + $0x18] sm:$0xff] %vm875_vm1, %v1616_v7  ;;  %v1632_v12 = vmul.f32 %v1616_v7, %v4502_v49 }
 0x385   : > { %v1602_v19 = vmul.f32 0.6931472, %v3395_v18 }
 0x386   : > { %1640 = vst.msk [vmem:[#allocation4 + $0x18] sm:$0xff] %vm875_vm1, %v1632_v12 }
 0x387   : > { %v1615_v33 = vsel %vm1559_vm11, %v4599_v32, %v1602_v19 }
 0x388   : > { %v3397_v43 = vpop.eup %3396  ;;  %1623 = vst.msk [vmem:[#allocation3 + $0x10] sm:$0xff] %vm875_vm1, %v1615_v33  ;;  %v1631_v58 = vmul.f32 %v1615_v33, %v4494_v60  ;;  %v4650_v60 = vmov 0.0  }
 0x389   : > { %v1612_v16 = vmul.f32 0.6931472, %v3397_v43 }
 0x38a   : > { %1639 = vst.msk [vmem:[#allocation4 + $0x10] sm:$0xff] %vm875_vm1, %v1631_v58 }
 0x38b   : > { %v1620_v4 = vsel %vm1564_vm12, %v4606_v62, %v1612_v16 }
 0x38c   : > { %1628 = vst.msk [vmem:[#allocation3 + $0x38] sm:$0xff] %vm875_vm1, %v1620_v4  ;;  %v1636_v49 = vmul.f32 %v1620_v4, %v4498_v25 }
 0x38e   : > { %1644 = vst.msk [vmem:[#allocation4 + $0x38] sm:$0xff] %vm875_vm1, %v1636_v49 }
 0x38f LB: >> { %vm1719_vm13 = vcmask 130048   ;;  %v3633_v47 = vmov 0   ;;  %v5555_v11 = vld [vmem:[#allocation11_spill] sm:$0xff]  ;;  %s1708_s22 = ssub.s32 3, %s3622_s21  ;;  %v3634_v39 = vmov 1   ;;  %v5556_v1 = vld [vmem:[#allocation12_spill] sm:$0xff]  ;;  %s3622_s21 = sphi %s4670_s21, %s1694_s21   ;;  %v3618_v50 = vphi %v4668_v50, %v5588_v50   ;;  %v3614_v48 = vphi %v4666_v48, %v5587_v48   ;;  %v3610_v26 = vphi %v4664_v26, %v5586_v26   ;;  %v3606_v28 = vphi %v4662_v28, %v5585_v28   ;;  %v3602_v54 = vphi %v4660_v54, %v5584_v54   ;;  %v3598_v2 = vphi %v4658_v2, %v5583_v2   ;;  %v3594_v24 = vphi %v4656_v24, %v5582_v24   ;;  %v3590_v55 = vphi %v4654_v55, %v5581_v55   ;;  %v3586_v29 = vphi %v4652_v29, %v5580_v29   ;;  %v3582_v60 = vphi %v4650_v60, %v5579_v60   ;;  %v3578_v40 = vphi %v4648_v40, %v5578_v40   ;;  %v3574_v23 = vphi %v4646_v23, %v5577_v23   ;;  %v3570_v30 = vphi %v4644_v30, %v5576_v30  }
 0x390   : >> { %3399 = vset.pattern.permute.xlu1 %v3633_v47  ;;  %3086 = vmatprep.mubr.msk.f32.mxu0 %vm1719_vm13, %v5555_v11  ;;  %s4717_s23 = sshll.u32 %s1708_s22, 4  ;;  %v3635_v13 = vmov 2   ;;  %v3636_v46 = vmov 3   ;;  %v3637_v31 = vmov 4   ;;  %v3638_v37 = vmov 6   ;;  %s3662_s29 = smov 96  }
 0x391   : >> { %3398 = vset.pattern.permute.xlu0 %v3633_v47  ;;  %s1716_s24 = scalar_lea.vmem [#allocation5], %s4717_s23  ;;  %s1710_s25 = scalar_lea.vmem [#allocation3], %s4717_s23  ;;  %v3639_v20 = vmov 7   ;;  %v3640_v22 = vmov 5   ;;  %v3641_v56 = vmov 9   ;;  %v3642_v9 = vmov 10  }
 0x392   : >> { %v4720_v41 = vld [vmem:[%s1716_s24 + $0x8] sm:$0xff]  ;;  %v4726_v34 = vld [vmem:[%s1716_s24] sm:$0xff]  ;;  %v3643_v35 = vmov 12   ;;  %v3644_v59 = vmov 13   ;;  %v3645_v8 = vmov 8   ;;  %v3646_v21 = vmov 15  }
 0x393   : >> { %v1712_v32 = vld [vmem:[%s1710_s25 + $0x8] sm:$0xff]  ;;  %v1711_v10 = vld [vmem:[%s1710_s25] sm:$0xff]  ;;  %1870 = vperm.xlu1 %3399, %v4720_v41   ;;  %1865 = vperm.xlu0 %3398, %v4726_v34   ;;  %v3647_v61 = vmov 16   ;;  %v3648_v57 = vmov 18   ;;  %v3649_v42 = vmov 19   ;;  %v3650_v5 = vmov 11  }
 0x394   : >> { %3082 = vmatprep.subr.mxu0 %v1712_v32  ;;  %v2720_v52 = vsel %vm875_vm1, %v1712_v32, 0.0  ;;  %v2719_v45 = vsel %vm875_vm1, %v1711_v10, 0.0  ;;  %v3651_v14 = vmov 21   ;;  %v3652_v27 = vmov 22   ;;  %s1713_s26 = scalar_lea.vmem [#allocation4], %s4717_s23  ;;  %s3666_s30 = smov 48  }
 0x395   : >> { %3083 = vmatpush3.msra.mxu0 %v1712_v32  ;;  %v4728_v62 = vadd.f32 %v2720_v52, %v2719_v45  ;;  %v3653_v36 = vmov 24   ;;  %v3654_v7 = vmov 14   ;;  %v3655_v18 = vmov 25   ;;  %v4792_v47 = vld [vmem:[%s1713_s26] sm:$0xff]  ;;  %s3667_s15 = smov 16   ;;  %s3668_s16 = smov 64  }
 0x396   : >> { %3084 = vmatprep.subr.mxu0 %v1711_v10  ;;  %v3656_v12 = vmov 27   ;;  %v3657_v19 = vmov 28   ;;  %v3658_v33 = vmov 30   ;;  %v3659_v43 = vmov 17   ;;  %s3669_s17 = smov 112   ;;  %s3670_s18 = smov 32  }
 0x397   : >> { %3085 = vmatpush3.msra.mxu0 %v1711_v10  ;;  %3400 = vset.pattern.permute.xlu1 %v3634_v39  ;;  %v2722_v38 = vrot.slane %v4728_v62, 4  ;;  %v3660_v58 = vmov 31   ;;  %v3661_v4 = vmov 20   ;;  %v3663_v52 = vmov 23   ;;  %s3671_s19 = smov 80   ;;  %s1694_s21 = sadd.s32 1, %s3622_s21  }
 0x398   : >> { %3087 = vmatmul.mubr.msk.f32.vlgmr.msra.gmra.mxu0 %vm1719_vm13, %v5556_v1  ;;  %1876 = vperm.xlu1 %3400, %v4726_v34   ;;  %vm1847_vm14 = vcmask 785408   ;;  %vm1860_vm15 = vcmask 654336   ;;  %vm1852_vm0 = vcmask 523264   ;;  %vm1855_vm2 = vcmask 916480   ;;  %p5332_p4 = scmp.ge.s32.totalorder %s1694_s21, 4  }
 0x399   : >> { %3401 = vset.pattern.permute.xlu0 %v3634_v39  ;;  %v2723_v51 = vadd.f32 %v2722_v38, %v4728_v62  ;;  %s3672_s22 = smov (%p5332_p4), 32   ;;  %s3673_s23 = smov (%p5332_p4), 80   ;;  %vm2913_vm3 = vcmask (%p5332_p4), 0  }
 0x39a   : >> { %1880 = vperm.xlu0 %3401, %v4720_v41   ;;  %s3674_s24 = smov (%p5332_p4), 112   ;;  %s3675_s25 = smov (%p5332_p4), 16  }
 0x39b   : >> { %v2724_v3 = vrot.slane %v2723_v51, 2  ;;  %s3676_s21 = smov (%p5332_p4), 64  }
 0x39c   : >> { %3402 = vset.pattern.permute.xlu1 %v3635_v13  ;;  %v3664_v13 = vmov 26  }
 0x39d   : >> { %1886 = vperm.xlu1 %3402, %v4726_v34   ;;  %v2725_v44 = vadd.f32 %v2724_v3, %v2723_v51 }
 0x39e   : >> { %3403 = vset.pattern.permute.xlu0 %v3636_v46 }
 0x39f   : >> { %1896 = vperm.xlu0 %3403, %v4726_v34   ;;  %v2726_v0 = vrot.slane %v2725_v44, 1 }
 0x3a1   : >> { %1890 = vperm.xlu1 %3402, %v4720_v41   ;;  %v2727_v17 = vadd.f32 %v2726_v0, %v2725_v44 }
 0x3a3   : >> { %3406 = vset.pattern.permute.xlu0 %v3637_v31  ;;  %v4765_v15 = vadd.f32 %v3570_v30, %v2727_v17  }
 0x3a4   : >> { %1910 = vperm.xlu0 %3406, %v4720_v41  }
 0x3a5   : >> { %3404 = vset.pattern.permute.xlu1 %v3636_v46 }
 0x3a6   : >> { %1900 = vperm.xlu1 %3404, %v4720_v41  }
 0x3a8   : >> { %3408 = vset.pattern.permute.xlu0 %v3638_v37 }
 0x3a9   : >> { %1926 = vperm.xlu0 %3408, %v4726_v34  }
 0x3aa   : >> { %3405 = vset.pattern.permute.xlu1 %v3637_v31 }
 0x3ab   : >> { %1906 = vperm.xlu1 %3405, %v4726_v34  }
 0x3ad   : >> { %3411 = vset.pattern.permute.xlu0 %v3639_v20 }
 0x3ae   : >> { %1940 = vperm.xlu0 %3411, %v4720_v41  }
 0x3af   : >> { %3407 = vset.pattern.permute.xlu1 %v3640_v22 }
 0x3b0   : >> { %1916 = vperm.xlu1 %3407, %v4726_v34  }
 0x3b2   : >> { %3413 = vset.pattern.permute.xlu0 %v3641_v56 }
 0x3b3   : >> { %1956 = vperm.xlu0 %3413, %v4726_v34  }
 0x3b4   : >> { %1920 = vperm.xlu1 %3407, %v4720_v41  }
 0x3b7   : >> { %3416 = vset.pattern.permute.xlu0 %v3642_v9 }
 0x3b8   : >> { %1970 = vperm.xlu0 %3416, %v4720_v41   ;;  %3409 = vset.pattern.permute.xlu1 %v3638_v37 }
 0x3b9   : >> { %1930 = vperm.xlu1 %3409, %v4720_v41  }
 0x3bc   : >> { %3418 = vset.pattern.permute.xlu0 %v3643_v35 }
 0x3bd   : >> { %1986 = vperm.xlu0 %3418, %v4726_v34   ;;  %3410 = vset.pattern.permute.xlu1 %v3639_v20 }
 0x3be   : >> { %1936 = vperm.xlu1 %3410, %v4726_v34  }
 0x3c1   : >> { %3421 = vset.pattern.permute.xlu0 %v3644_v59 }
 0x3c2   : >> { %2000 = vperm.xlu0 %3421, %v4720_v41   ;;  %3412 = vset.pattern.permute.xlu1 %v3645_v8 }
 0x3c3   : >> { %1946 = vperm.xlu1 %3412, %v4726_v34  }
 0x3c6   : >> { %3423 = vset.pattern.permute.xlu0 %v3646_v21 }
 0x3c7   : >> { %2016 = vperm.xlu0 %3423, %v4726_v34   ;;  %1950 = vperm.xlu1 %3412, %v4720_v41  }
 0x3cb   : >> { %3426 = vset.pattern.permute.xlu0 %v3647_v61  ;;  %3414 = vset.pattern.permute.xlu1 %v3641_v56  ;;  %v3665_v56 = vmov 29  }
 0x3cc   : >> { %2030 = vperm.xlu0 %3426, %v4720_v41   ;;  %1960 = vperm.xlu1 %3414, %v4720_v41  }
 0x3d0   : >> { %3428 = vset.pattern.permute.xlu0 %v3648_v57  ;;  %3415 = vset.pattern.permute.xlu1 %v3642_v9 }
 0x3d1   : >> { %2046 = vperm.xlu0 %3428, %v4726_v34   ;;  %1966 = vperm.xlu1 %3415, %v4726_v34  }
 0x3d5   : >> { %3431 = vset.pattern.permute.xlu0 %v3649_v42  ;;  %3417 = vset.pattern.permute.xlu1 %v3650_v5 }
 0x3d6   : >> { %2060 = vperm.xlu0 %3431, %v4720_v41   ;;  %1976 = vperm.xlu1 %3417, %v4726_v34  }
 0x3da   : >> { %3433 = vset.pattern.permute.xlu0 %v3651_v14  ;;  %1980 = vperm.xlu1 %3417, %v4720_v41  }
 0x3db   : >> { %2076 = vperm.xlu0 %3433, %v4726_v34  }
 0x3de   : >> { %3419 = vset.pattern.permute.xlu1 %v3643_v35 }
 0x3df   : >> { %3436 = vset.pattern.permute.xlu0 %v3652_v27  ;;  %1990 = vperm.xlu1 %3419, %v4720_v41  }
 0x3e0   : >> { %2090 = vperm.xlu0 %3436, %v4720_v41  }
 0x3e3   : >> { %3420 = vset.pattern.permute.xlu1 %v3644_v59 }
 0x3e4   : >> { %3438 = vset.pattern.permute.xlu0 %v3653_v36  ;;  %1996 = vperm.xlu1 %3420, %v4726_v34  }
 0x3e5   : >> { %2106 = vperm.xlu0 %3438, %v4726_v34  }
 0x3e8   : >> { %3422 = vset.pattern.permute.xlu1 %v3654_v7 }
 0x3e9   : >> { %3441 = vset.pattern.permute.xlu0 %v3655_v18  ;;  %2006 = vperm.xlu1 %3422, %v4726_v34  }
 0x3ea   : >> { %2120 = vperm.xlu0 %3441, %v4720_v41  }
 0x3ed   : >> { %2010 = vperm.xlu1 %3422, %v4720_v41  }
 0x3ee   : >> { %3443 = vset.pattern.permute.xlu0 %v3656_v12 }
 0x3ef   : >> { %2136 = vperm.xlu0 %3443, %v4726_v34  }
 0x3f1   : >> { %3424 = vset.pattern.permute.xlu1 %v3646_v21 }
 0x3f2   : >> { %2020 = vperm.xlu1 %3424, %v4720_v41  }
 0x3f3   : >> { %3446 = vset.pattern.permute.xlu0 %v3657_v19 }
 0x3f4   : >> { %2150 = vperm.xlu0 %3446, %v4720_v41  }
 0x3f6   : >> { %3425 = vset.pattern.permute.xlu1 %v3647_v61 }
 0x3f7   : >> { %2026 = vperm.xlu1 %3425, %v4726_v34  }
 0x3f8   : >> { %3448 = vset.pattern.permute.xlu0 %v3658_v33 }
 0x3f9   : >> { %2166 = vperm.xlu0 %3448, %v4726_v34  }
 0x3fb   : >> { %3427 = vset.pattern.permute.xlu1 %v3659_v43 }
 0x3fc   : >> { %2036 = vperm.xlu1 %3427, %v4726_v34  }
 0x3fd   : >> { %3451 = vset.pattern.permute.xlu0 %v3660_v58 }
 0x3fe   : >> { %2180 = vperm.xlu0 %3451, %v4720_v41  }
 0x400   : >> { %2040 = vperm.xlu1 %3427, %v4720_v41  }
 0x404   : >> { %3429 = vset.pattern.permute.xlu1 %v3648_v57 }
 0x405   : >> { %2050 = vperm.xlu1 %3429, %v4720_v41  }
 0x409   : >> { %3430 = vset.pattern.permute.xlu1 %v3649_v42  ;;  %v4843_v42 = vld [vmem:[%s1713_s26 + $0x8] sm:$0xff]  ;;  %s3677_s26 = smov (%p5332_p4), 48  }
 0x40a   : >> { %2056 = vperm.xlu1 %3430, %v4726_v34  }
 0x40e   : >> { %v4785_v16 = vpop.permute.xlu1 %1870  ;;  %3432 = vset.pattern.permute.xlu1 %v3661_v4  ;;  %v4822_v22 = vpop.permute.xlu0 %1865 }
 0x40f   : >> { %2066 = vperm.xlu1 %3432, %v4726_v34  }
 0x413   : >> { %2070 = vperm.xlu1 %3432, %v4720_v41   ;;  %v1877_v49 = vpop.permute.xlu1 %1876 }
 0x414   : >> { %v1883_v51 = vmul.f32 %v1877_v49, %v4792_v47 }
 0x415   : >> { %v1881_v35 = vpop.permute.xlu0 %1880 }
 0x417   : >> { %3434 = vset.pattern.permute.xlu1 %v3651_v14 }
 0x418   : >> { %2080 = vperm.xlu1 %3434, %v4720_v41   ;;  %v1887_v11 = vpop.permute.xlu1 %1886 }
 0x419   : >> { %v1893_v32 = vmul.f32 %v1887_v11, %v4792_v47 }
 0x41a   : >> { %v1897_v8 = vpop.permute.xlu0 %1896 }
 0x41b   : >> { %2195 = vrot.lane.b32.xlu0 %v1893_v32, %s3662_s29 }
 0x41c   : >> { %3435 = vset.pattern.permute.xlu1 %v3652_v27  ;;  %v1891_v10 = vpop.permute.xlu1 %1890 }
 0x41d   : >> { %2086 = vperm.xlu1 %3435, %v4726_v34   ;;  %v1894_v17 = vmul.f32 %v1891_v10, %v4843_v42 }
 0x41f   : >> { %v1911_v38 = vpop.permute.xlu0 %1910 }
 0x421   : >> { %3437 = vset.pattern.permute.xlu1 %v3663_v52  ;;  %v4798_v45 = vpop.permute.xlu1 %1900 }
 0x422   : >> { %2096 = vperm.xlu1 %3437, %v4726_v34   ;;  %v1904_v10 = vmul.f32 %v4798_v45, %v4843_v42 }
 0x424   : >> { %v1927_v14 = vpop.permute.xlu0 %1926 }
 0x425   : >> { %v1933_v52 = vmul.f32 %v1927_v14, %v4792_v47 }
 0x426   : >> { %2100 = vperm.xlu1 %3437, %v4720_v41   ;;  %v4802_v62 = vpop.permute.xlu1 %1906 }
 0x427   : >> { %v1913_v4 = vmul.f32 %v4802_v62, %v4792_v47 }
 0x429   : >> { %v1941_v27 = vpop.permute.xlu0 %1940 }
 0x42a   : >> { %3439 = vset.pattern.permute.xlu1 %v3653_v36 }
 0x42b   : >> { %2110 = vperm.xlu1 %3439, %v4720_v41   ;;  %v4805_v39 = vpop.permute.xlu1 %1916 }
 0x42c   : >> { %v1923_v32 = vmul.f32 %v4805_v39, %v4792_v47 }
 0x42f   : >> { %3440 = vset.pattern.permute.xlu1 %v3655_v18  ;;  %v4807_v1 = vpop.permute.xlu1 %1920 }
 0x430   : >> { %2116 = vperm.xlu1 %3440, %v4726_v34   ;;  %v1924_v45 = vmul.f32 %v4807_v1, %v4843_v42  ;;  %v1944_v1 = vmul.f32 %v1941_v27, %v4843_v42 }
 0x434   : >> { %3442 = vset.pattern.permute.xlu1 %v3664_v13  ;;  %v4810_v46 = vpop.permute.xlu1 %1930 }
 0x435   : >> { %2126 = vperm.xlu1 %3442, %v4726_v34  }
 0x439   : >> { %2130 = vperm.xlu1 %3442, %v4720_v41   ;;  %v4814_v31 = vpop.permute.xlu1 %1936 }
 0x43a   : >> { %v1943_v39 = vmul.f32 %v4814_v31, %v4792_v47  ;;  %v1934_v31 = vmul.f32 %v4810_v46, %v4843_v42 }
 0x43d   : >> { %3444 = vset.pattern.permute.xlu1 %v3656_v12 }
 0x43e   : >> { %2140 = vperm.xlu1 %3444, %v4720_v41   ;;  %v4817_v37 = vpop.permute.xlu1 %1946 }
 0x442   : >> { %3445 = vset.pattern.permute.xlu1 %v3657_v19  ;;  %v4819_v20 = vpop.permute.xlu1 %1950 }
 0x443   : >> { %2146 = vperm.xlu1 %3445, %v4726_v34  }
 0x447   : >> { %3447 = vset.pattern.permute.xlu1 %v3665_v56  ;;  %v4824_v9 = vpop.permute.xlu1 %1960  ;;  %v1914_v56 = vmul.f32 %v1911_v38, %v4843_v42 }
 0x448   : >> { %2156 = vperm.xlu1 %3447, %v4726_v34  }
 0x44c   : >> { %2160 = vperm.xlu1 %3447, %v4720_v41   ;;  %v4828_v59 = vpop.permute.xlu1 %1966 }
 0x44d   : >> { %v1973_v38 = vmul.f32 %v4828_v59, %v4792_v47  ;;  %v1964_v59 = vmul.f32 %v4824_v9, %v4843_v42 }
 0x450   : >> { %3449 = vset.pattern.permute.xlu1 %v3658_v33  ;;  %v1903_v33 = vmul.f32 %v1897_v8, %v4792_v47 }
 0x451   : >> { %2170 = vperm.xlu1 %3449, %v4720_v41   ;;  %v4832_v21 = vpop.permute.xlu1 %1976  ;;  %v1884_v41 = vmul.f32 %v1881_v35, %v4843_v42 }
 0x452   : >> { %v1983_v14 = vmul.f32 %v4832_v21, %v4792_v47 }
 0x455   : >> { %3450 = vset.pattern.permute.xlu1 %v3660_v58  ;;  %v4834_v61 = vpop.permute.xlu1 %1980 }
 0x456   : >> { %2176 = vperm.xlu1 %3450, %v4726_v34  }
 0x458   : >> { %v3088_v57 = vpop.f32.mrf.mxu0 }
 0x459   : >> { %v4839_v3 = vadd.f32 %v3570_v30, %v3088_v57 }
 0x45a   : >> { %v1792_v5 = vpop.f32.mrf.mxu0  ;;  %v4846_v44 = vpop.permute.xlu1 %1990  ;;  %2187 = vrot.lane.b32.xlu1 %v1883_v51, %s3666_s30 }
 0x45b   : >> { %1805 = vrot.lane.b32.xlu0 %v4839_v3, %s3666_s30  ;;  %v4852_v34 = vadd.f32 %v3570_v30, %v1792_v5  ;;  %v1957_v30 = vpop.permute.xlu0 %1956 }
 0x45c   : >> { %v1963_v57 = vmul.f32 %v1957_v30, %v4792_v47 }
 0x45e   : >> { %2189 = vrot.lane.b32.xlu1 %v1884_v41, %s3666_s30 }
 0x45f   : >> { %1803 = vrot.lane.b32.xlu0 %v4852_v34, %s3666_s30  ;;  %v4857_v0 = vpop.permute.xlu1 %1996  ;;  %v1971_v12 = vpop.permute.xlu0 %1970 }
 0x460   : >> { %v1974_v27 = vmul.f32 %v1971_v12, %v4843_v42 }
 0x462   : >> { %2197 = vrot.lane.b32.xlu1 %v1894_v17, %s3662_s29 }
 0x463   : >> { %1815 = vrot.lane.b32.xlu0 %v4852_v34, %s3667_s15  ;;  %v4888_v43 = vpop.permute.xlu0 %1986 }
 0x464   : >> { %v4863_v36 = vpop.permute.xlu1 %2006 }
 0x466   : >> { %1811 = vrot.lane.b32.xlu1 %v4839_v3, %s3662_s29 }
 0x467   : >> { %1821 = vrot.lane.b32.xlu0 %v4852_v34, %s3668_s16  ;;  %v4897_v49 = vpop.permute.xlu0 %2000 }
 0x468   : >> { %v4869_v7 = vpop.permute.xlu1 %2010 }
 0x46a   : >> { %1817 = vrot.lane.b32.xlu1 %v4839_v3, %s3667_s15 }
 0x46b   : >> { %1827 = vrot.lane.b32.xlu0 %v4852_v34, %s3669_s17  ;;  %v4912_v62 = vpop.permute.xlu0 %2016 }
 0x46d   : >> { %v4875_v18 = vpop.permute.xlu1 %2020 }
 0x46e   : >> { %1823 = vrot.lane.b32.xlu1 %v4839_v3, %s3668_s16 }
 0x46f   : >> { %1833 = vrot.lane.b32.xlu0 %v4852_v34, %s3670_s18  ;;  %v4919_v8 = vpop.permute.xlu0 %2030 }
 0x472   : >> { %v4881_v19 = vpop.permute.xlu1 %2026  ;;  %1829 = vrot.lane.b32.xlu1 %v4839_v3, %s3669_s17 }
 0x473   : >> { %1839 = vrot.lane.b32.xlu0 %v4852_v34, %s3671_s19  ;;  %v2047_v5 = vpop.permute.xlu0 %2046 }
 0x474   : >> { %v2053_v17 = vmul.f32 %v2047_v5, %v4792_v47 }
 0x476   : >> { %1835 = vrot.lane.b32.xlu1 %v4839_v3, %s3670_s18 }
 0x477   : >> { %2203 = vrot.lane.b32.xlu0 %v1903_v33, %s3667_s15  ;;  %v4893_v58 = vpop.permute.xlu1 %2036  ;;  %v2061_v30 = vpop.permute.xlu0 %2060 }
 0x47a   : >> { %1841 = vrot.lane.b32.xlu1 %v4839_v3, %s3671_s19 }
 0x47b   : >> { %2211 = vrot.lane.b32.xlu0 %v1913_v4, %s3668_s16  ;;  %v4902_v11 = vpop.permute.xlu1 %2040  ;;  %v2077_v33 = vpop.permute.xlu0 %2076 }
 0x47e   : >> { %1809 = vrot.lane.b32.xlu1 %v4852_v34, %s3662_s29 }
 0x47f   : >> { %2219 = vrot.lane.b32.xlu0 %v1923_v32, %s3669_s17  ;;  %v1984_v32 = vmul.f32 %v4834_v61, %v4843_v42  ;;  %v4958_v9 = vpop.permute.xlu0 %2090 }
 0x480   : >> { %v2051_v13 = vpop.permute.xlu1 %2050 }
 0x482   : >> { %2205 = vrot.lane.b32.xlu1 %v1904_v10, %s3667_s15 }
 0x483   : >> { %2227 = vrot.lane.b32.xlu0 %v1933_v52, %s3670_s18  ;;  %v2054_v52 = vmul.f32 %v2051_v13, %v4843_v42 }
 0x485   : >> { %v2057_v35 = vpop.permute.xlu1 %2056 }
 0x486   : >> { %2213 = vrot.lane.b32.xlu1 %v1914_v56, %s3668_s16  ;;  %v2063_v21 = vmul.f32 %v2057_v35, %v4792_v47  ;;  %v4966_v56 = vpop.permute.xlu0 %2106 }
 0x487   : >> { %2235 = vrot.lane.b32.xlu0 %v1943_v39, %s3671_s19  ;;  %v2064_v39 = vmul.f32 %v2061_v30, %v4843_v42 }
 0x48a   : >> { %v4926_v51 = vpop.permute.xlu1 %2066  ;;  %2221 = vrot.lane.b32.xlu1 %v1924_v45, %s3669_s17  ;;  %v4971_v61 = vpop.permute.xlu0 %2120 }
 0x48b   : >> { %2243 = vrot.lane.b32.xlu0 %v1963_v57, %s3666_s30 }
 0x48e   : >> { %v4934_v41 = vpop.permute.xlu1 %2070  ;;  %2229 = vrot.lane.b32.xlu1 %v1934_v31, %s3670_s18  ;;  %v2137_v57 = vpop.permute.xlu0 %2136 }
 0x48f   : >> { %2251 = vrot.lane.b32.xlu0 %v1973_v38, %s3662_s29  ;;  %v2143_v13 = vmul.f32 %v2137_v57, %v4792_v47 }
 0x492   : >> { %2237 = vrot.lane.b32.xlu1 %v1944_v1, %s3671_s19 }
 0x493   : >> { %2259 = vrot.lane.b32.xlu0 %v1983_v14, %s3667_s15  ;;  %v4944_v46 = vpop.permute.xlu1 %2080  ;;  %v4977_v14 = vpop.permute.xlu0 %2150 }
 0x496   : >> { %2245 = vrot.lane.b32.xlu1 %v1964_v59, %s3666_s30 }
 0x497   : >> { %2335 = vrot.lane.b32.xlu0 %v2053_v17, %s3662_s29  ;;  %v1993_v17 = vmul.f32 %v4888_v43, %v4792_v47  ;;  %v2013_v43 = vmul.f32 %v4863_v36, %v4792_v47 }
 0x498   : >> { %v2087_v4 = vpop.permute.xlu1 %2086 }
 0x49a   : >> { %2253 = vrot.lane.b32.xlu1 %v1974_v27, %s3662_s29  ;;  %v2167_v27 = vpop.permute.xlu0 %2166 }
 0x49b   : >> { %2343 = vrot.lane.b32.xlu0 %v2063_v21, %s3667_s15  ;;  %v2003_v21 = vmul.f32 %v4857_v0, %v4792_v47  ;;  %v2014_v0 = vmul.f32 %v4869_v7, %v4843_v42  ;;  %v2083_v7 = vmul.f32 %v2077_v33, %v4792_v47  ;;  %v1873_v33 = vmul.f32 %v4822_v22, %v4792_v47 }
 0x49d   : >> { %v4956_v10 = vpop.permute.xlu1 %2096 }
 0x49e   : >> { %2261 = vrot.lane.b32.xlu1 %v1984_v32, %s3667_s15  ;;  %v1994_v32 = vmul.f32 %v4846_v44, %v4843_v42  ;;  %v4996_v57 = vpop.permute.xlu0 %2180  ;;  %v2043_v44 = vmul.f32 %v4893_v58, %v4792_v47 }
 0x4a1   : >> { %v4962_v12 = vpop.permute.xlu1 %2100 }
 0x4a2   : >> { %2337 = vrot.lane.b32.xlu1 %v2054_v52, %s3662_s29  ;;  %v5005_v36 = vpop.permute.xlu0 %2195 }
 0x4a6   : >> { %v4968_v35 = vpop.permute.xlu1 %2110  ;;  %2345 = vrot.lane.b32.xlu1 %v2064_v39, %s3667_s15  ;;  %v2004_v39 = vmul.f32 %v4897_v49, %v4843_v42  ;;  %v2073_v49 = vmul.f32 %v4926_v51, %v4792_v47  ;;  %v2093_v51 = vmul.f32 %v2087_v4, %v4792_v47  ;;  %v2094_v4 = vmul.f32 %v4958_v9, %v4843_v42 }
 0x4a7   : >> { %v1874_v9 = vmul.f32 %v4785_v16, %v4843_v42  ;;  %v5557_v16 = vld [vmem:[#allocation7_spill] sm:$0xff] }
 0x4ab   : >> { %v2117_v45 = vpop.permute.xlu1 %2116 }
 0x4b0   : >> { %v2127_v31 = vpop.permute.xlu1 %2126 }
 0x4b1   : >> { %v2133_v38 = vmul.f32 %v2127_v31, %v4792_v47 }
 0x4b3   : >> { %2391 = vrot.lane.b32.xlu0 %v2133_v38, %s3662_s29 }
 0x4b4   : >> { %v2131_v5 = vpop.permute.xlu1 %2130 }
 0x4b5   : >> { %v2134_v1 = vmul.f32 %v2131_v5, %v4843_v42 }
 0x4b7   : >> { %2393 = vrot.lane.b32.xlu1 %v2134_v1, %s3662_s29  ;;  %2399 = vrot.lane.b32.xlu0 %v2143_v13, %s3667_s15  ;;  %v2044_v13 = vmul.f32 %v4902_v11, %v4843_v42  ;;  %v2074_v1 = vmul.f32 %v4934_v41, %v4843_v42 }
 0x4b9   : >> { %v2141_v30 = vpop.permute.xlu1 %2140 }
 0x4ba   : >> { %v2144_v59 = vmul.f32 %v2141_v30, %v4843_v42  ;;  %v2084_v30 = vmul.f32 %v4944_v46, %v4843_v42 }
 0x4bb   : >> { %2267 = vrot.lane.b32.xlu0 %v1993_v17, %s3668_s16 }
 0x4bc   : >> { %2401 = vrot.lane.b32.xlu1 %v2144_v59, %s3667_s15  ;;  %v2123_v59 = vmul.f32 %v2117_v45, %v4792_v47  ;;  %v2124_v45 = vmul.f32 %v4971_v61, %v4843_v42 }
 0x4be   : >> { %v2147_v52 = vpop.permute.xlu1 %2146 }
 0x4bf   : >> { %2275 = vrot.lane.b32.xlu0 %v2003_v21, %s3669_s17 }
 0x4c0   : >> { %2269 = vrot.lane.b32.xlu1 %v1994_v32, %s3668_s16 }
 0x4c3   : >> { %2283 = vrot.lane.b32.xlu0 %v2013_v43, %s3670_s18  ;;  %v2157_v31 = vpop.permute.xlu1 %2156  ;;  %v2153_v43 = vmul.f32 %v2147_v52, %v4792_v47  ;;  %v2154_v52 = vmul.f32 %v4977_v14, %v4843_v42 }
 0x4c4   : >> { %2277 = vrot.lane.b32.xlu1 %v2004_v39, %s3669_s17 }
 0x4c7   : >> { %2327 = vrot.lane.b32.xlu0 %v2043_v44, %s3666_s30  ;;  %v2161_v38 = vpop.permute.xlu1 %2160 }
 0x4c8   : >> { %2285 = vrot.lane.b32.xlu1 %v2014_v0, %s3670_s18  ;;  %v2163_v0 = vmul.f32 %v2157_v31, %v4792_v47  ;;  %v2173_v31 = vmul.f32 %v2167_v27, %v4792_v47  ;;  %v2023_v27 = vmul.f32 %v4912_v62, %v4792_v47  ;;  %v2103_v62 = vmul.f32 %v4956_v10, %v4792_v47 }
 0x4cb   : >> { %2351 = vrot.lane.b32.xlu0 %v2073_v49, %s3668_s16 }
 0x4cc   : >> { %2329 = vrot.lane.b32.xlu1 %v2044_v13, %s3666_s30  ;;  %v2171_v58 = vpop.permute.xlu1 %2170 }
 0x4cd   : >> { %v1806_v5 = vpop.permute.xlu0 %1805 }
 0x4cf   : >> { %2359 = vrot.lane.b32.xlu0 %v2083_v7, %s3669_s17  ;;  %v5064_v7 = vrot.slane %v4539_v53, %v5557_v16 }
 0x4d0   : >> { %2353 = vrot.lane.b32.xlu1 %v2074_v1, %s3668_s16 }
 0x4d1   : >> { %v5019_v17 = vpop.permute.xlu0 %1803  ;;  %v5022_v11 = vpop.permute.xlu1 %2176 }
 0x4d3   : >> { %2367 = vrot.lane.b32.xlu0 %v2093_v51, %s3670_s18  ;;  %v1846_v51 = vsel %vm875_vm1, %v4839_v3, %v1806_v5 }
 0x4d4   : >> { %2361 = vrot.lane.b32.xlu1 %v2084_v30, %s3669_s17 }
 0x4d5   : >> { %v5030_v41 = vpop.permute.xlu0 %1815  ;;  %v2188_v21 = vpop.permute.xlu1 %2187 }
 0x4d6   : >> { %v2297_v32 = vsel %vm875_vm1, %v1873_v33, %v2188_v21  ;;  %v2164_v33 = vmul.f32 %v2161_v38, %v4843_v42  ;;  %v5558_v21 = vld [vmem:[#allocation9_spill] sm:$0xff] }
 0x4d7   : >> { %v5038_v46 = vsel %vm1847_vm14, %v2297_v32, %v5005_v36  ;;  %2383 = vrot.lane.b32.xlu0 %v2123_v59, %s3666_s30 }
 0x4d8   : >> { %2369 = vrot.lane.b32.xlu1 %v2094_v4, %s3670_s18  ;;  %v2478_v4 = vrot.slane %v4539_v53, %v5558_v21 }
 0x4d9   : >> { %v5042_v22 = vpop.permute.xlu0 %1821  ;;  %v2190_v39 = vpop.permute.xlu1 %2189 }
 0x4da   : >> { %v2298_v49 = vsel %vm875_vm1, %v1874_v9, %v2190_v39  ;;  %v2174_v39 = vmul.f32 %v2171_v58, %v4843_v42  ;;  %v2024_v58 = vmul.f32 %v4875_v18, %v4843_v42  ;;  %v2104_v18 = vmul.f32 %v4962_v12, %v4843_v42 }
 0x4db   : >> { %2407 = vrot.lane.b32.xlu0 %v2153_v43, %s3668_s16 }
 0x4dc   : >> { %2385 = vrot.lane.b32.xlu1 %v2124_v45, %s3666_s30 }
 0x4dd   : >> { %v5051_v44 = vpop.permute.xlu0 %1827  ;;  %v5055_v13 = vpop.permute.xlu1 %2197 }
 0x4de   : >> { %v2300_v61 = vsel %vm1847_vm14, %v2298_v49, %v5055_v13 }
 0x4df   : >> { %2415 = vrot.lane.b32.xlu0 %v2163_v0, %s3669_s17 }
 0x4e0   : >> { %2409 = vrot.lane.b32.xlu1 %v2154_v52, %s3668_s16 }
 0x4e1   : >> { %v1834_v1 = vpop.permute.xlu0 %1833  ;;  %v1812_v30 = vpop.permute.xlu1 %1811 }
 0x4e2   : >> { %v1858_v14 = vsel %vm1661_vm4, %v5051_v44, %v1834_v1  ;;  %v5074_v59 = vsel %vm1847_vm14, %v1846_v51, %v1812_v30 }
 0x4e3   : >> { %v2539_v32 = vmul.f32 %v5064_v7, %v5074_v59  ;;  %2423 = vrot.lane.b32.xlu0 %v2173_v31, %s3670_s18 }
 0x4e4   : >> { %2417 = vrot.lane.b32.xlu1 %v2164_v33, %s3669_s17 }
 0x4e5   : >> { %v1840_v3 = vpop.permute.xlu0 %1839  ;;  %v2575_v5 = vmul.f32 1.442695, %v2539_v32  ;;  %v1818_v43 = vpop.permute.xlu1 %1817 }
 0x4e6   : >> { %v5085_v38 = vsel %vm1860_vm15, %v1858_v14, %v1840_v3  ;;  %v1851_v9 = vsel %vm1719_vm13, %v1812_v30, %v1818_v43  ;;  %v2183_v14 = vmul.f32 %v5022_v11, %v4792_v47  ;;  %v5559_v30 = vld [vmem:[#allocation8_spill] sm:$0xff] }
 0x4e7   : >> { %v2529_v45 = vmul.f32 %v2478_v4, %v5085_v38  ;;  %3452 = vpow2.f32 %v2575_v5  ;;  %2291 = vrot.lane.b32.xlu0 %v2023_v27, %s3671_s19  ;;  %v5560_v33 = vmov %v5559_v30 }
 0x4e8   : >> { %2425 = vrot.lane.b32.xlu1 %v2174_v39, %s3670_s18  ;;  %v2184_v39 = vmul.f32 %v4996_v57, %v4843_v42  ;;  %v1845_v57 = vsel %vm875_vm1, %v4852_v34, %v5019_v17 }
 0x4e9   : >> { %v2555_v0 = vmul.f32 1.442695, %v2529_v45  ;;  %v2204_v49 = vpop.permute.xlu0 %2203  ;;  %v1824_v1 = vpop.permute.xlu1 %1823 }
 0x4ea   : >> { %v2301_v52 = vsel %vm1719_vm13, %v5005_v36, %v2204_v49  ;;  %v1854_v31 = vsel %vm1852_vm0, %v1851_v9, %v1824_v1  ;;  %v2474_v36 = vrot.slane %v4539_v53, %v5559_v30 }
 0x4eb   : >> { %3454 = vpow2.f32 %v2555_v0  ;;  %2375 = vrot.lane.b32.xlu0 %v2103_v62, %s3671_s19 }
 0x4ec   : >> { %2293 = vrot.lane.b32.xlu1 %v2024_v58, %s3671_s19 }
 0x4ed   : >> { %v2212_v51 = vpop.permute.xlu0 %2211  ;;  %v1830_v32 = vpop.permute.xlu1 %1829 }
 0x4ee   : >> { %v2303_v10 = vsel %vm1852_vm0, %v2301_v52, %v2212_v51  ;;  %v5109_v3 = vsel %vm1855_vm2, %v1854_v31, %v1830_v32 }
 0x4ef   : >> { %2431 = vrot.lane.b32.xlu0 %v2183_v14, %s3671_s19  ;;  %v2540_v5 = vmul.f32 %v2474_v36, %v5109_v3  ;;  %v5561_v14 = vld [vmem:[#allocation13_spill] sm:$0xff] }
 0x4f0   : >> { %2377 = vrot.lane.b32.xlu1 %v2104_v18, %s3671_s19 }
 0x4f1   : >> { %v2220_v27 = vpop.permute.xlu0 %2219  ;;  %v1836_v43 = vpop.permute.xlu1 %1835  ;;  %v2577_v49 = vmul.f32 1.442695, %v2540_v5 }
 0x4f2   : >> { %v5115_v11 = vsel %vm1855_vm2, %v2303_v10, %v2220_v27  ;;  %v1859_v45 = vsel %vm1661_vm4, %v1830_v32, %v1836_v43  ;;  %v2482_v10 = vrot.slane %v4539_v53, %v5561_v14 }
 0x4f3   : >> { %3456 = vpow2.f32 %v2577_v49 }
 0x4f4   : >> { %v3453_v12 = vpop.eup %3452  ;;  %2433 = vrot.lane.b32.xlu1 %v2184_v39, %s3671_s19 }
 0x4f5   : >> { %v2228_v9 = vpop.permute.xlu0 %2227  ;;  %v2611_v0 = vmul.f32 %v3453_v12, %v2300_v61  ;;  %v1842_v52 = vpop.permute.xlu1 %1841 }
 0x4f6   : >> { %v2307_v62 = vsel %vm1661_vm4, %v2220_v27, %v2228_v9  ;;  %v5123_v1 = vsel %vm1860_vm15, %v1859_v45, %v1842_v52  ;;  %v2542_v52 = vmul.f32 %v2482_v10, %v5074_v59 }
 0x4f7   : >> { %v2541_v58 = vmul.f32 %v2478_v4, %v5123_v1 }
 0x4f8   : >> { %v3455_v31 = vpop.eup %3454 }
 0x4f9   : >> { %v2236_v51 = vpop.permute.xlu0 %2235  ;;  %v1810_v30 = vpop.permute.xlu1 %1809  ;;  %v2579_v27 = vmul.f32 1.442695, %v2541_v58 }
 0x4fa   : >> { %v2309_v61 = vsel %vm1860_vm15, %v2307_v62, %v2236_v51  ;;  %v5133_v18 = vsel %vm1847_vm14, %v1845_v57, %v1810_v30  ;;  %v1850_v4 = vsel %vm1719_vm13, %v1810_v30, %v5030_v41  ;;  %v1953_v41 = vmul.f32 %v4817_v37, %v4792_v47 }
 0x4fb   : >> { %v2601_v32 = vmul.f32 %v3455_v31, %v2309_v61  ;;  %v1853_v5 = vsel %vm1852_vm0, %v1850_v4, %v5042_v22  ;;  %v2527_v34 = vmul.f32 %v5064_v7, %v5133_v18  ;;  %v2530_v17 = vmul.f32 %v2482_v10, %v5133_v18 }
 0x4fc   : >> { %v5144_v43 = vsel %vm1855_vm2, %v1853_v5, %v5051_v44  ;;  %3458 = vpow2.f32 %v2579_v27  ;;  %v2581_v51 = vmul.f32 1.442695, %v2542_v52 }
 0x4fd   : >> { %v2244_v39 = vpop.permute.xlu0 %2243  ;;  %v2528_v45 = vmul.f32 %v2474_v36, %v5144_v43  ;;  %v2206_v12 = vpop.permute.xlu1 %2205  ;;  %v2551_v9 = vmul.f32 1.442695, %v2527_v34  ;;  %v2557_v49 = vmul.f32 1.442695, %v2530_v17 }
 0x4fe   : >> { %v2311_v7 = vsel %vm875_vm1, %v1953_v41, %v2244_v39  ;;  %v2302_v44 = vsel %vm1719_vm13, %v5055_v13, %v2206_v12 }
 0x4ff   : >> { %v2553_v22 = vmul.f32 1.442695, %v2528_v45  ;;  %3460 = vpow2.f32 %v2551_v9 }
 0x500   : >> { %v3457_v30 = vpop.eup %3456 }
 0x501   : >> { %v2252_v62 = vpop.permute.xlu0 %2251  ;;  %3462 = vpow2.f32 %v2553_v22  ;;  %v2214_v58 = vpop.permute.xlu1 %2213 }
 0x502   : >> { %v2313_v36 = vsel %vm1847_vm14, %v2311_v7, %v2252_v62  ;;  %3464 = vpow2.f32 %v2557_v49  ;;  %v2304_v37 = vsel %vm1852_vm0, %v2302_v44, %v2214_v58 }
 0x503   : >> { %3466 = vpow2.f32 %v2581_v51 }
 0x505   : >> { %v2260_v31 = vpop.permute.xlu0 %2259  ;;  %v2222_v61 = vpop.permute.xlu1 %2221 }
 0x506   : >> { %v5156_v57 = vsel %vm1719_vm13, %v2252_v62, %v2260_v31  ;;  %v2306_v4 = vsel %vm1855_vm2, %v2304_v37, %v2222_v61  ;;  %v1954_v37 = vmul.f32 %v4819_v20, %v4843_v42 }
 0x507   : >> { %v2612_v10 = vmul.f32 %v3457_v30, %v2306_v4 }
 0x509   : >> { %v2230_v27 = vpop.permute.xlu1 %2229  ;;  %v3459_v5 = vpop.eup %3458 }
 0x50a   : >> { %v2308_v13 = vsel %vm1661_vm4, %v2222_v61, %v2230_v27 }
 0x50c   : >> { %v3461_v34 = vpop.eup %3460 }
 0x50d   : >> { %v2238_v17 = vpop.permute.xlu1 %2237  ;;  %v2599_v45 = vmul.f32 %v3461_v34, %v5038_v46 }
 0x50e   : >> { %v3463_v39 = vpop.eup %3462  ;;  %v2310_v12 = vsel %vm1860_vm15, %v2308_v13, %v2238_v17 }
 0x50f   : >> { %v3465_v41 = vpop.eup %3464  ;;  %v2600_v9 = vmul.f32 %v3463_v39, %v5115_v11  ;;  %v2613_v49 = vmul.f32 %v3459_v5, %v2310_v12  ;;  %v2623_v22 = vadd.f32 %v2611_v0, %v2599_v45  ;;  %v5562_v45 = vld [vmem:[#allocation16_spill] sm:$0xff] }
 0x510   : >> { %v2602_v7 = vmul.f32 %v3465_v41, %v2313_v36  ;;  %v3467_v13 = vpop.eup %3466  ;;  %v2486_v12 = vrot.slane %v4539_v53, %v5562_v45 }
 0x511   : >> { %v2630_v62 = vadd.f32 %v2612_v10, %v2600_v9  ;;  %v2637_v52 = vadd.f32 %v2613_v49, %v2601_v32  ;;  %v2246_v44 = vpop.permute.xlu1 %2245  ;;  %v2624_v58 = vrot.slane %v2623_v22, 4 }
 0x512   : >> { %v2312_v4 = vsel %vm875_vm1, %v1954_v37, %v2246_v44 }
 0x513   : >> { %v2631_v31 = vrot.slane %v2630_v62, 4  ;;  %v2638_v51 = vrot.slane %v2637_v52, 4  ;;  %v2625_v61 = vadd.f32 %v2624_v58, %v2623_v22  ;;  %v5170_v22 = vpop.permute.xlu0 %2335  ;;  %v2531_v58 = vmul.f32 %v2486_v12, %v5144_v43 }
 0x515   : >> { %v2632_v30 = vadd.f32 %v2631_v31, %v2630_v62  ;;  %v2639_v46 = vadd.f32 %v2638_v51, %v2637_v52  ;;  %v2254_v27 = vpop.permute.xlu1 %2253  ;;  %v2626_v11 = vrot.slane %v2625_v61, 2 }
 0x516   : >> { %v2314_v0 = vsel %vm1847_vm14, %v2312_v4, %v2254_v27 }
 0x517   : >> { %v2633_v36 = vrot.slane %v2632_v30, 2  ;;  %v2640_v10 = vrot.slane %v2639_v46, 2  ;;  %v2614_v32 = vmul.f32 %v3467_v13, %v2314_v0  ;;  %v2627_v5 = vadd.f32 %v2626_v11, %v2625_v61  ;;  %v5184_v13 = vpop.permute.xlu0 %2343 }
 0x518   : >> { %v2543_v0 = vmul.f32 %v2486_v12, %v5109_v3 }
 0x519   : >> { %v2634_v34 = vadd.f32 %v2633_v36, %v2632_v30  ;;  %v2641_v17 = vadd.f32 %v2640_v10, %v2639_v46  ;;  %v2644_v39 = vadd.f32 %v2614_v32, %v2602_v7  ;;  %v2262_v20 = vpop.permute.xlu1 %2261  ;;  %v2628_v41 = vrot.slane %v2627_v5, 1  ;;  %v5566_v10 = vld [vmem:[#allocation18_spill] sm:$0xff] }
 0x51a   : >> { %v2316_v9 = vsel %vm1719_vm13, %v2254_v27, %v2262_v20  ;;  %v2559_v27 = vmul.f32 1.442695, %v2531_v58  ;;  %v2494_v32 = vrot.slane %v4539_v53, %v5566_v10 }
 0x51b   : >> { %v2635_v49 = vrot.slane %v2634_v34, 1  ;;  %v2642_v62 = vrot.slane %v2641_v17, 1  ;;  %v2645_v52 = vrot.slane %v2644_v39, 4  ;;  %v2629_v44 = vadd.f32 %v2628_v41, %v2627_v5  ;;  %v5568_v41 = vld [vmem:[#allocation19_spill] sm:$0xff] }
 0x51c   : >> { %3468 = vpow2.f32 %v2559_v27  ;;  %v2545_v12 = vmul.f32 %v2494_v32, %v5074_v59 }
 0x51d   : >> { %v2636_v37 = vadd.f32 %v2635_v49, %v2634_v34  ;;  %v2643_v31 = vadd.f32 %v2642_v62, %v2641_v17  ;;  %v2646_v51 = vadd.f32 %v2645_v52, %v2644_v39  ;;  %v5174_v50 = vadd.f32 %v3618_v50, %v2629_v44   ;;  %v5182_v4 = vpop.permute.xlu1 %2337 }
 0x51e   : >> { %v2533_v34 = vmul.f32 %v2494_v32, %v5133_v18  ;;  %v2498_v49 = vrot.slane %v4539_v53, %v5568_v41  ;;  %v2587_v58 = vmul.f32 1.442695, %v2545_v12  ;;  %v2033_v12 = vmul.f32 %v4881_v19, %v4792_v47 }
 0x51f   : >> { %v5563_v7 = vmov %v5174_v50  ;;  %v5177_v48 = vadd.f32 %v3614_v48, %v2636_v37   ;;  %v5180_v26 = vadd.f32 %v3610_v26, %v2643_v31   ;;  %v2647_v30 = vrot.slane %v2646_v51, 2 }
 0x520   : >> { %v2563_v45 = vmul.f32 1.442695, %v2533_v34  ;;  %v2534_v62 = vmul.f32 %v2498_v49, %v5144_v43  ;;  %v2034_v19 = vmul.f32 %v4919_v8, %v4843_v42  ;;  %2731 = vrot.lane.b32.xlu0 (%p5332_p4), %v5563_v7, %s3673_s23 }
 0x521   : >> { %v5564_v61 = vmov %v5177_v48  ;;  %v5565_v46 = vmov %v5180_v26  ;;  %v2648_v11 = vadd.f32 %v2647_v30, %v2646_v51  ;;  %v5189_v5 = vpop.permute.xlu1 %2345  ;;  %v2583_v26 = vmul.f32 1.442695, %v2543_v0 }
 0x522   : >> { %v2565_v37 = vmul.f32 1.442695, %v2534_v62  ;;  %v2546_v30 = vmul.f32 %v2498_v49, %v5109_v3  ;;  %2738 = vrot.lane.b32.xlu1 (%p5332_p4), %v5564_v61, %s3672_s22 }
 0x523   : >> { %v2649_v36 = vrot.slane %v2648_v11, 1  ;;  %3470 = vpow2.f32 %v2583_v26 }
 0x524   : >> { %3472 = vpow2.f32 %v2563_v45  ;;  %v2589_v32 = vmul.f32 1.442695, %v2546_v30  ;;  %2736 = vrot.lane.b32.xlu0 (%p5332_p4), %v5563_v7, %s3672_s22 }
 0x525   : >> { %v2650_v50 = vadd.f32 %v2649_v36, %v2648_v11  ;;  %v5191_v48 = vpop.permute.xlu0 %2391  ;;  %3474 = vpow2.f32 %v2587_v58  ;;  %v2506_v36 = vrot.slane %v4541_v63, %v5560_v33 }
 0x526   : >> { %3476 = vpow2.f32 %v2565_v37  ;;  %2743 = vrot.lane.b32.xlu1 (%p5332_p4), %v5564_v61, %s3674_s24 }
 0x527   : >> { %v5195_v28 = vadd.f32 %v3606_v28, %v2650_v50   ;;  %3478 = vpow2.f32 %v2589_v32 }
 0x528   : > { %2747 = vrot.lane.b32.xlu0 (%p5332_p4), %v5564_v61, %s3676_s21 }
 0x529   : >> { %v5567_v17 = vmov %v5195_v28  ;;  %v5197_v39 = vpop.permute.xlu1 %2393  ;;  %v5199_v20 = vpop.permute.xlu0 %2399 }
 0x52a   : >> { %v3469_v51 = vpop.eup %3468  ;;  %2752 = vrot.lane.b32.xlu1 (%p5332_p4), %v5564_v61, %s3675_s25 }
 0x52c   : > { %2754 = vrot.lane.b32.xlu0 (%p5332_p4), %v5565_v46, %s3675_s25 }
 0x52d   : >> { %v2268_v52 = vpop.permute.xlu0 %2267 }
 0x52e   : >> { %v5205_v44 = vpop.permute.xlu1 %2401  ;;  %v2317_v28 = vsel %vm1852_vm0, %v5156_v57, %v2268_v52  ;;  %v2536_v57 = vmul.f32 %v2506_v36, %v5133_v18  ;;  %2760 = vrot.lane.b32.xlu1 (%p5332_p4), %v5565_v46, %s3632_s12 }
 0x530   : >> { %v3471_v34 = vpop.eup %3470  ;;  %v2569_v62 = vmul.f32 1.442695, %v2536_v57  ;;  %2764 = vrot.lane.b32.xlu0 (%p5332_p4), %v5565_v46, %s3677_s26 }
 0x531   : >> { %v5209_v31 = vpop.permute.xlu0 %2275  ;;  %v3473_v18 = vpop.eup %3472 }
 0x532   : >> { %v2319_v27 = vsel %vm1855_vm2, %v2317_v28, %v5209_v31  ;;  %v2270_v11 = vpop.permute.xlu1 %2269  ;;  %3480 = vpow2.f32 %v2569_v62  ;;  %2770 = vrot.lane.b32.xlu1 (%p5332_p4), %v5567_v17, %s3673_s23 }
 0x533   : >> { %v2603_v0 = vmul.f32 %v3469_v51, %v2319_v27  ;;  %v2318_v50 = vsel %vm1852_vm0, %v2316_v9, %v2270_v11  ;;  %v2548_v9 = vmul.f32 %v2506_v36, %v5074_v59  ;;  %v2510_v27 = vrot.slane %v4541_v63, %v5558_v21 }
 0x534   : >> { %v2441_v59 = vsel %vm1719_vm13, %v5170_v22, %v5184_v13  ;;  %2775 = vrot.lane.b32.xlu0 (%p5332_p4), %v5567_v17, %s3672_s22 }
 0x535   : >> { %v5216_v10 = vpop.permute.xlu0 %2283  ;;  %v2593_v57 = vmul.f32 1.442695, %v2548_v9  ;;  %v2549_v8 = vmul.f32 %v2510_v27, %v5109_v3 }
 0x536   : >> { %v5220_v26 = vpop.permute.xlu1 %2277 }
 0x537   : >> { %v2320_v45 = vsel %vm1855_vm2, %v2318_v50, %v5220_v26  ;;  %3482 = vpow2.f32 %v2593_v57 }
 0x538   : >> { %v2615_v41 = vmul.f32 %v3471_v34, %v2320_v45  ;;  %v3475_v34 = vpop.eup %3474 }
 0x539   : >> { %v2328_v49 = vpop.permute.xlu0 %2327  ;;  %v3477_v62 = vpop.eup %3476 }
 0x53a   : >> { %v2651_v52 = vadd.f32 %v2615_v41, %v2603_v0  ;;  %v2437_v58 = vsel %vm875_vm1, %v2033_v12, %v2328_v49  ;;  %v5227_v37 = vpop.permute.xlu1 %2285 }
 0x53b   : >> { %v2439_v28 = vsel %vm1847_vm14, %v2437_v58, %v5170_v22 }
 0x53c   : >> { %v2652_v51 = vrot.slane %v2651_v52, 4  ;;  %v2605_v30 = vmul.f32 %v3473_v18, %v2439_v28  ;;  %v5569_v28 = vld [vmem:[#allocation17_spill] sm:$0xff] }
 0x53d   : >> { %v2352_v11 = vpop.permute.xlu0 %2351 }
 0x53e   : >> { %v2653_v0 = vadd.f32 %v2652_v51, %v2651_v52  ;;  %v2330_v32 = vpop.permute.xlu1 %2329  ;;  %v2443_v12 = vsel %vm1852_vm0, %v2441_v59, %v2352_v11  ;;  %v2537_v52 = vmul.f32 %v2510_v27, %v5144_v43  ;;  %v2490_v51 = vrot.slane %v4539_v53, %v5569_v28 }
 0x53f   : >> { %v2438_v50 = vsel %vm875_vm1, %v2034_v19, %v2330_v32  ;;  %v2595_v19 = vmul.f32 1.442695, %v2549_v8  ;;  %v2442_v11 = vsel %vm1719_vm13, %v5182_v4, %v5189_v5 }
 0x540   : >> { %v2654_v36 = vrot.slane %v2653_v0, 2  ;;  %v2440_v45 = vsel %vm1847_vm14, %v2438_v50, %v5182_v4  ;;  %v2571_v43 = vmul.f32 1.442695, %v2537_v52  ;;  %v2532_v8 = vmul.f32 %v2490_v51, %v5085_v38 }
 0x541   : >> { %v2617_v41 = vmul.f32 %v3475_v34, %v2440_v45  ;;  %v5244_v49 = vpop.permute.xlu0 %2359  ;;  %v2502_v45 = vrot.slane %v4541_v63, %v5557_v16  ;;  %3484 = vpow2.f32 %v2595_v19 }
 0x542   : >> { %v2655_v58 = vadd.f32 %v2654_v36, %v2653_v0  ;;  %v2445_v18 = vsel %vm1855_vm2, %v2443_v12, %v5244_v49  ;;  %v2354_v9 = vpop.permute.xlu1 %2353  ;;  %v2113_v36 = vmul.f32 %v4966_v56, %v4792_v47  ;;  %3486 = vpow2.f32 %v2571_v43 }
 0x543   : >> { %v2665_v22 = vadd.f32 %v2617_v41, %v2605_v30  ;;  %v2606_v13 = vmul.f32 %v3477_v62, %v2445_v18  ;;  %v2444_v0 = vsel %vm1852_vm0, %v2442_v11, %v2354_v9  ;;  %v3479_v30 = vpop.eup %3478  ;;  %v2544_v62 = vmul.f32 %v2490_v51, %v5123_v1 }
 0x544   : >> { %v2656_v3 = vrot.slane %v2655_v58, 1  ;;  %v3481_v47 = vpop.eup %3480  ;;  %v2514_v9 = vrot.slane %v4541_v63, %v5561_v14  ;;  %v2535_v51 = vmul.f32 %v2502_v45, %v5085_v38 }
 0x545   : >> { %v2666_v32 = vrot.slane %v2665_v22, 4  ;;  %v5254_v50 = vpop.permute.xlu0 %2367  ;;  %v2585_v43 = vmul.f32 1.442695, %v2544_v62 }
 0x546   : >> { %v2657_v27 = vadd.f32 %v2656_v3, %v2655_v58  ;;  %v5257_v34 = vpop.permute.xlu1 %2361  ;;  %v2114_v3 = vmul.f32 %v4968_v35, %v4843_v42  ;;  %v2567_v35 = vmul.f32 1.442695, %v2535_v51 }
 0x547   : >> { %v2667_v57 = vadd.f32 %v2666_v32, %v2665_v22  ;;  %v2446_v59 = vsel %vm1855_vm2, %v2444_v0, %v5257_v34  ;;  %v2547_v32 = vmul.f32 %v2502_v45, %v5123_v1 }
 0x548   : >> { %v5264_v54 = vadd.f32 %v3602_v54, %v2657_v27   ;;  %v2618_v5 = vmul.f32 %v3479_v30, %v2446_v59  ;;  %v3483_v59 = vpop.eup %3482 }
 0x549   : >> { %v2668_v12 = vrot.slane %v2667_v57, 2  ;;  %v2384_v41 = vpop.permute.xlu0 %2383  ;;  %v2591_v62 = vmul.f32 1.442695, %v2547_v32 }
 0x54a   : >> { %v5570_v4 = vmov %v5264_v54  ;;  %v2672_v52 = vadd.f32 %v2618_v5, %v2606_v13  ;;  %v2451_v58 = vsel %vm875_vm1, %v2113_v36, %v2384_v41  ;;  %v5271_v18 = vpop.permute.xlu1 %2369  ;;  %v2561_v13 = vmul.f32 1.442695, %v2532_v8 }
 0x54b   : >> { %v2669_v56 = vadd.f32 %v2668_v12, %v2667_v57  ;;  %v2453_v54 = vsel %vm1847_vm14, %v2451_v58, %v5191_v48  ;;  %v2538_v36 = vmul.f32 %v2514_v9, %v5085_v38  ;;  %v2550_v41 = vmul.f32 %v2514_v9, %v5123_v1  ;;  %2777 = vrot.lane.b32.xlu1 (%p5332_p4), %v5570_v4, %s3672_s22 }
 0x54c   : >> { %v2673_v22 = vrot.slane %v2672_v52, 4  ;;  %v2608_v28 = vmul.f32 %v3481_v47, %v2453_v54  ;;  %3488 = vpow2.f32 %v2561_v13  ;;  %v2455_v38 = vsel %vm1719_vm13, %v5191_v48, %v5199_v20  ;;  %2782 = vrot.lane.b32.xlu0 (%p5332_p4), %v5570_v4, %s3674_s24 }
 0x54d   : >> { %v2670_v19 = vrot.slane %v2669_v56, 1  ;;  %v2408_v11 = vpop.permute.xlu0 %2407  ;;  %3490 = vpow2.f32 %v2585_v43  ;;  %v2597_v13 = vmul.f32 1.442695, %v2550_v41 }
 0x54e   : >> { %v2674_v27 = vadd.f32 %v2673_v22, %v2672_v52  ;;  %v2386_v0 = vpop.permute.xlu1 %2385  ;;  %v2457_v22 = vsel %vm1852_vm0, %v2455_v38, %v2408_v11  ;;  %3492 = vpow2.f32 %v2567_v35  ;;  %v3485_v51 = vpop.eup %3484  ;;  %v2447_v38 = vsel %vm1661_vm4, %v5244_v49, %v5254_v50 }
 0x54f   : >> { %v2671_v30 = vadd.f32 %v2670_v19, %v2669_v56  ;;  %v2452_v57 = vsel %vm875_vm1, %v2114_v3, %v2386_v0  ;;  %v2573_v56 = vmul.f32 1.442695, %v2538_v36  ;;  %3494 = vpow2.f32 %v2591_v62  ;;  %2786 = vrot.lane.b32.xlu1 (%p5332_p4), %v5570_v4, %s3676_s21 }
 0x550   : >> { %v2675_v5 = vrot.slane %v2674_v27, 2  ;;  %v2454_v42 = vsel %vm1847_vm14, %v2452_v57, %v5197_v39  ;;  %v2321_v36 = vsel %vm1661_vm4, %v5209_v31, %v5216_v10  ;;  %2791 = vrot.lane.b32.xlu0 (%p5332_p4), %v5570_v4, %s3675_s25  ;;  %vm2907_vm1 = vcmask (%p5332_p4), 385024  }
 0x551   : >> { %v5286_v24 = vadd.f32 %v3594_v24, %v2671_v30   ;;  %v2620_v12 = vmul.f32 %v3483_v59, %v2454_v42  ;;  %v2416_v45 = vpop.permute.xlu0 %2415  ;;  %3496 = vpow2.f32 %v2573_v56 }
 0x552   : >> { %v2676_v52 = vadd.f32 %v2675_v5, %v2674_v27  ;;  %v2410_v58 = vpop.permute.xlu1 %2409  ;;  %v2459_v1 = vsel %vm1855_vm2, %v2457_v22, %v2416_v45  ;;  %3498 = vpow2.f32 %v2597_v13 }
 0x553   : >> { %v5571_v8 = vmov %v5286_v24  ;;  %v2686_v47 = vadd.f32 %v2620_v12, %v2608_v28  ;;  %v2456_v24 = vsel %vm1719_vm13, %v5197_v39, %v5205_v44  ;;  %v3487_v28 = vpop.eup %3486 }
 0x554   : >> { %v2677_v54 = vrot.slane %v2676_v52, 1  ;;  %v2458_v48 = vsel %vm1852_vm0, %v2456_v24, %v2410_v58  ;;  %v2609_v27 = vmul.f32 %v3487_v28, %v2459_v1 }
 0x555   : >> { %v2687_v3 = vrot.slane %v2686_v47, 4  ;;  %v2424_v9 = vpop.permute.xlu0 %2423 }
 0x556   : >> { %v2678_v19 = vadd.f32 %v2677_v54, %v2676_v52  ;;  %v2418_v20 = vpop.permute.xlu1 %2417  ;;  %v2461_v13 = vsel %vm1661_vm4, %v2416_v45, %v2424_v9 }
 0x557   : >> { %v2688_v32 = vadd.f32 %v2687_v3, %v2686_v47  ;;  %v2460_v11 = vsel %vm1855_vm2, %v2458_v48, %v2418_v20 }
 0x558   : >> { %v5300_v55 = vadd.f32 %v3590_v55, %v2678_v19   ;;  %v2621_v39 = vmul.f32 %v3485_v51, %v2460_v11 }
 0x559   : >> { %v2689_v44 = vrot.slane %v2688_v32, 2  ;;  %v2292_v0 = vpop.permute.xlu0 %2291  ;;  %v3489_v41 = vpop.eup %3488 }
 0x55a   : >> { %v5572_v43 = vmov %v5300_v55  ;;  %v2693_v30 = vadd.f32 %v2621_v39, %v2609_v27  ;;  %v2426_v57 = vpop.permute.xlu1 %2425  ;;  %v2323_v35 = vsel %vm1860_vm15, %v2321_v36, %v2292_v0  ;;  %v2322_v55 = vsel %vm1661_vm4, %v5220_v26, %v5227_v37  ;;  %v3491_v58 = vpop.eup %3490 }
 0x55b   : >> { %v2690_v59 = vadd.f32 %v2689_v44, %v2688_v32  ;;  %v2604_v56 = vmul.f32 %v3489_v41, %v2323_v35  ;;  %v3493_v26 = vpop.eup %3492  ;;  %v2448_v37 = vsel %vm1661_vm4, %v5257_v34, %v5271_v18  ;;  %v2462_v44 = vsel %vm1661_vm4, %v2418_v20, %v2426_v57 }
 0x55c   : >> { %v2694_v5 = vrot.slane %v2693_v30, 4  ;;  %v3495_v50 = vpop.eup %3494 }
 0x55d   : >> { %v2691_v42 = vrot.slane %v2690_v59, 1  ;;  %v2376_v12 = vpop.permute.xlu0 %2375 }
 0x55e   : >> { %v2695_v62 = vadd.f32 %v2694_v5, %v2693_v30  ;;  %v2294_v52 = vpop.permute.xlu1 %2293  ;;  %v2449_v54 = vsel %vm1860_vm15, %v2447_v38, %v2376_v12  ;;  %v3497_v27 = vpop.eup %3496 }
 0x55f   : >> { %v2692_v47 = vadd.f32 %v2691_v42, %v2690_v59  ;;  %v2324_v31 = vsel %vm1860_vm15, %v2322_v55, %v2294_v52  ;;  %v2607_v19 = vmul.f32 %v3493_v26, %v2449_v54  ;;  %v3499_v30 = vpop.eup %3498  ;;  %v5586_v26 = vmov %v5565_v46 }
 0x560   : >> { %v2696_v10 = vrot.slane %v2695_v62, 2  ;;  %v2616_v22 = vmul.f32 %v3491_v58, %v2324_v31 }
 0x561   : >> { %v5315_v60 = vadd.f32 %v3582_v60, %v2692_v47   ;;  %v2432_v24 = vpop.permute.xlu0 %2431 }
 0x562   : >> { %v2697_v1 = vadd.f32 %v2696_v10, %v2695_v62  ;;  %v2658_v51 = vadd.f32 %v2616_v22, %v2604_v56  ;;  %v2378_v49 = vpop.permute.xlu1 %2377  ;;  %v2463_v11 = vsel %vm1860_vm15, %v2461_v13, %v2432_v24  ;;  %v5582_v24 = vmov %v5571_v8 }
 0x563   : >> { %v5573_v3 = vmov %v5315_v60  ;;  %v2450_v48 = vsel %vm1860_vm15, %v2448_v37, %v2378_v49  ;;  %v2610_v59 = vmul.f32 %v3497_v27, %v2463_v11 }
 0x564   : >> { %v2698_v28 = vrot.slane %v2697_v1, 1  ;;  %v2659_v32 = vrot.slane %v2658_v51, 4  ;;  %v2619_v60 = vmul.f32 %v3495_v50, %v2450_v48  ;;  %v5587_v48 = vmov %v5564_v61 }
 0x565   : >> { %v5588_v50 = vmov %v5563_v7 }
 0x566   : >> { %v2699_v39 = vadd.f32 %v2698_v28, %v2697_v1  ;;  %v2660_v0 = vadd.f32 %v2659_v32, %v2658_v51  ;;  %v2679_v34 = vadd.f32 %v2619_v60, %v2607_v19  ;;  %v2434_v18 = vpop.permute.xlu1 %2433  ;;  %v5579_v60 = vmov %v5573_v3 }
 0x567   : >> { %v2464_v36 = vsel %vm1860_vm15, %v2462_v44, %v2434_v18  ;;  %v5585_v28 = vmov %v5567_v17 }
 0x568   : >> { %v5326_v40 = vadd.f32 %v3578_v40, %v2699_v39   ;;  %v2661_v9 = vrot.slane %v2660_v0, 2  ;;  %v2680_v5 = vrot.slane %v2679_v34, 4  ;;  %v2622_v42 = vmul.f32 %v3499_v30, %v2464_v36 }
 0x569   : >> { %v5576_v30 = vmov %v4765_v15  ;;  %v2894_v28 = vsub.f32 (%p5332_p4), 0.0, %v4392_v6 }
 0x56a   : >> { %v5574_v45 = vmov %v5326_v40  ;;  %v2662_v35 = vadd.f32 %v2661_v9, %v2660_v0  ;;  %v2681_v12 = vadd.f32 %v2680_v5, %v2679_v34  ;;  %v2700_v41 = vadd.f32 %v2622_v42, %v2610_v59 }
 0x56b   : > { %v2895_v39 = vmul.f32 (%p5332_p4), 1.442695, %v2894_v28  ;;  %v2905_v28 = vld [vmem:[%s5471_s11] sm:$0x1] (%p5332_p4) }
 0x56c   : >> { %v2663_v55 = vrot.slane %v2662_v35, 1  ;;  %v2682_v62 = vrot.slane %v2681_v12, 2  ;;  %v2701_v52 = vrot.slane %v2700_v41, 4 }
 0x56d   : > { %3500 = vpow2.f32 (%p5332_p4), %v2895_v39 }
 0x56e   : >> { %v2664_v20 = vadd.f32 %v2663_v55, %v2662_v35  ;;  %v2683_v57 = vadd.f32 %v2682_v62, %v2681_v12  ;;  %v2702_v58 = vadd.f32 %v2701_v52, %v2700_v41  ;;  %v5581_v55 = vmov %v5572_v43 }
 0x570   : >> { %v2712_v38 = vadd.f32 %v3598_v2, %v2664_v20   ;;  %v2684_v47 = vrot.slane %v2683_v57, 1  ;;  %v2703_v31 = vrot.slane %v2702_v58, 2 }
 0x572   : >> { %v2685_v10 = vadd.f32 %v2684_v47, %v2683_v57  ;;  %v2704_v56 = vadd.f32 %v2703_v31, %v2702_v58  ;;  %v5583_v2 = vmov %v2712_v38  ;;  %2793 = vrot.lane.b32.xlu1 (%p5332_p4), %v2712_v38, %s3675_s25  ;;  %2798 = vrot.lane.b32.xlu0 (%p5332_p4), %v2712_v38, %s3632_s12 }
 0x574   : >> { %v2715_v22 = vadd.f32 %v3586_v29, %v2685_v10   ;;  %v2705_v40 = vrot.slane %v2704_v56, 1 }
 0x576   : >> { %v2706_v54 = vadd.f32 %v2705_v40, %v2704_v56  ;;  %v5578_v40 = vmov %v5574_v45  ;;  %v5580_v29 = vmov %v2715_v22  ;;  %1693 = sbr.rel (!%p5332_p4) target bundleno = 911 (0x38f), region = 112  ;;  %2802 = vrot.lane.b32.xlu1 (%p5332_p4), %v2712_v38, %s3677_s26  ;;  %2808 = vrot.lane.b32.xlu0 (%p5332_p4), %v5571_v8, %s3673_s23 }
 0x578   : >> { %v2718_v37 = vadd.f32 %v3574_v23, %v2706_v54   ;;  %v5584_v54 = vmov %v5570_v4 }
 0x57a   : >> { %v5577_v23 = vmov %v2718_v37  ;;  %2813 = vrot.lane.b32.xlu1 (%p5332_p4), %v5571_v8, %s3672_s22  ;;  %2815 = vrot.lane.b32.xlu0 (%p5332_p4), %v5572_v43, %s3672_s22  ;;  %v3501_v52 = vpop.eup (%p5332_p4), %3500 }
 0x57b   : > { %v2897_v38 = vadd.f32 1.0, %v3501_v52 }
 0x57d   : > { %3502 = vrcp.f32 %v2897_v38 }
 0x57e   : > { %2820 = vrot.lane.b32.xlu1 %v5572_v43, %s3674_s24  ;;  %2824 = vrot.lane.b32.xlu0 %v5572_v43, %s3676_s21 }
 0x582   : > { %2829 = vrot.lane.b32.xlu1 %v5572_v43, %s3675_s25  ;;  %2831 = vrot.lane.b32.xlu0 %v2715_v22, %s3675_s25 }
 0x586   : > { %2836 = vrot.lane.b32.xlu1 %v2715_v22, %s3632_s12  ;;  %2840 = vrot.lane.b32.xlu0 %v2715_v22, %s3677_s26 }
 0x58a   : > { %2846 = vrot.lane.b32.xlu1 %v5573_v3, %s3673_s23  ;;  %2851 = vrot.lane.b32.xlu0 %v5573_v3, %s3672_s22 }
 0x58e   : > { %2853 = vrot.lane.b32.xlu1 %v5574_v45, %s3672_s22  ;;  %2858 = vrot.lane.b32.xlu0 %v5574_v45, %s3674_s24 }
 0x592   : > { %2862 = vrot.lane.b32.xlu1 %v5574_v45, %s3676_s21  ;;  %2867 = vrot.lane.b32.xlu0 %v5574_v45, %s3675_s25  ;;  %v2732_v63 = vpop.permute.xlu0 %2731 }
 0x593   : > { %v2734_v23 = vadd.f32 %v2732_v63, %v5563_v7 }
 0x594   : > { %v2739_v53 = vpop.permute.xlu1 %2738 }
 0x596   : > { %2869 = vrot.lane.b32.xlu1 %v2718_v37, %s3675_s25  ;;  %2874 = vrot.lane.b32.xlu0 %v2718_v37, %s3632_s12  ;;  %v2737_v2 = vpop.permute.xlu0 %2736 }
 0x597   : > { %v2740_v15 = vsel %vm1661_vm4, %v2737_v2, %v2739_v53 }
 0x598   : > { %v2744_v29 = vpop.permute.xlu1 %2743  ;;  %v2742_v16 = vadd.f32 %v2740_v15, %v2734_v23 }
 0x59a   : > { %2878 = vrot.lane.b32.xlu1 %v2718_v37, %s3677_s26  ;;  %v2746_v33 = vadd.f32 %v2744_v29, %v2742_v16  ;;  %v2748_v14 = vpop.permute.xlu0 %2747 }
 0x59c   : > { %v2753_v21 = vpop.permute.xlu1 %2752  ;;  %v2750_v61 = vadd.f32 %v2748_v14, %v2746_v33  ;;  %v3036_v14 = vld [vmem:[%s5470_s10] ss:$0 sm:$0xff] }
 0x59e   : > { %v2755_v4 = vpop.permute.xlu0 %2754 }
 0x59f   : > { %v2757_v43 = vsel %vm1719_vm13, %v2753_v21, %v2755_v4 }
 0x5a0   : > { %v2761_v46 = vpop.permute.xlu1 %2760  ;;  %v2759_v24 = vadd.f32 %v2757_v43, %v2750_v61  ;;  %v3503_v61 = vpop.eup %3502 }
 0x5a2   : > { %v2763_v1 = vadd.f32 %v2761_v46, %v2759_v24  ;;  %v2765_v51 = vpop.permute.xlu0 %2764 }
 0x5a4   : > { %v2771_v26 = vpop.permute.xlu1 %2770  ;;  %v2767_v49 = vadd.f32 %v2765_v51, %v2763_v1  ;;  %v2900_v1 = vmul.f32 %v3503_v61, %v4392_v6 }
 0x5a6   : > { %v2768_v7 = vadd.f32 %v2767_v49, %v5567_v17  ;;  %v2776_v13 = vpop.permute.xlu0 %2775 }
 0x5a8   : > { %v2773_v19 = vadd.f32 %v2771_v26, %v2768_v7 }
 0x5bd   : > { %v2778_v50 = vpop.permute.xlu1 %2777 }
 0x5be   : > { %v2779_v48 = vsel %vm1661_vm4, %v2776_v13, %v2778_v50  ;;  %v2783_v60 = vpop.permute.xlu0 %2782 }
 0x5bf   : > { %v2781_v32 = vadd.f32 %v2779_v48, %v2773_v19  ;;  %v2902_v19 = vrot.slane %v2900_v1, 7 }
 0x5c1   : > { %v2787_v11 = vpop.permute.xlu1 %2786  ;;  %v2785_v27 = vadd.f32 %v2783_v60, %v2781_v32 }
 0x5c2   : > { %v2792_v34 = vpop.permute.xlu0 %2791 }
 0x5c3   : > { %v2789_v44 = vadd.f32 %v2787_v11, %v2785_v27 }
 0x5e4   : > { %v2794_v0 = vpop.permute.xlu1 %2793  ;;  %v2799_v59 = vpop.permute.xlu0 %2798 }
 0x5e5   : > { %v2795_v18 = vsel %vm1719_vm13, %v2792_v34, %v2794_v0 }
 0x5e6   : > { %v2797_v30 = vadd.f32 %v2795_v18, %v2789_v44 }
 0x5e8   : > { %v2803_v17 = vpop.permute.xlu1 %2802  ;;  %v2801_v36 = vadd.f32 %v2799_v59, %v2797_v30  ;;  %v2809_v5 = vpop.permute.xlu0 %2808 }
 0x5ea   : > { %v2805_v45 = vadd.f32 %v2803_v17, %v2801_v36 }
 0x5ec   : > { %v2814_v9 = vpop.permute.xlu1 %2813  ;;  %v2806_v42 = vadd.f32 %v2805_v45, %v5571_v8  ;;  %v2816_v41 = vpop.permute.xlu0 %2815 }
 0x5ed   : > { %v2817_v55 = vsel %vm1661_vm4, %v2814_v9, %v2816_v41 }
 0x5ee   : > { %v2811_v35 = vadd.f32 %v2809_v5, %v2806_v42 }
 0x5f0   : > { %v2821_v12 = vpop.permute.xlu1 %2820  ;;  %v2819_v62 = vadd.f32 %v2817_v55, %v2811_v35  ;;  %v2825_v58 = vpop.permute.xlu0 %2824 }
 0x5f2   : > { %v2823_v57 = vadd.f32 %v2821_v12, %v2819_v62 }
 0x5f4   : > { %v2830_v20 = vpop.permute.xlu1 %2829  ;;  %v2827_v47 = vadd.f32 %v2825_v58, %v2823_v57  ;;  %v2832_v10 = vpop.permute.xlu0 %2831 }
 0x5f5   : > { %v2833_v56 = vsel %vm1719_vm13, %v2830_v20, %v2832_v10 }
 0x5f6   : > { %v2835_v22 = vadd.f32 %v2833_v56, %v2827_v47 }
 0x5f8   : > { %v2837_v31 = vpop.permute.xlu1 %2836  ;;  %v2841_v54 = vpop.permute.xlu0 %2840 }
 0x5f9   : > { %v2839_v8 = vadd.f32 %v2837_v31, %v2835_v22 }
 0x5fb   : > { %v2843_v37 = vadd.f32 %v2841_v54, %v2839_v8 }
 0x5fc   : > { %v2847_v40 = vpop.permute.xlu1 %2846  ;;  %v2852_v23 = vpop.permute.xlu0 %2851 }
 0x5fd   : > { %v2844_v53 = vadd.f32 %v2843_v37, %v5573_v3  ;;  %v2889_v3 = vmul.f32 %v3036_v14, %v4498_v25  ;;  %v2911_v25 = vld [vmem:[#allocation6] sm:$0x1] }
 0x5ff   : > { %v2849_v29 = vadd.f32 %v2847_v40, %v2844_v53  ;;  %v2891_v50 = vrot.slane %v2889_v3, 7 }
 0x600   : > { %v2854_v63 = vpop.permute.xlu1 %2853  ;;  %v2859_v21 = vpop.permute.xlu0 %2858 }
 0x601   : > { %v2855_v2 = vsel %vm1661_vm4, %v2852_v23, %v2854_v63 }
 0x602   : > { %v2857_v15 = vadd.f32 %v2855_v2, %v2849_v29 }
 0x604   : > { %v2863_v16 = vpop.permute.xlu1 %2862  ;;  %v2861_v33 = vadd.f32 %v2859_v21, %v2857_v15  ;;  %v2868_v43 = vpop.permute.xlu0 %2867 }
 0x606   : > { %v2865_v46 = vadd.f32 %v2863_v16, %v2861_v33 }
 0x608   : > { %v2870_v4 = vpop.permute.xlu1 %2869  ;;  %v2875_v51 = vpop.permute.xlu0 %2874 }
 0x609   : > { %v2871_v24 = vsel %vm1719_vm13, %v2868_v43, %v2870_v4 }
 0x60a   : > { %v2873_v26 = vadd.f32 %v2871_v24, %v2865_v46 }
 0x60c   : > { %v2879_v49 = vpop.permute.xlu1 %2878  ;;  %v2877_v7 = vadd.f32 %v2875_v51, %v2873_v26 }
 0x60e   : > { %v2881_v13 = vadd.f32 %v2879_v49, %v2877_v7 }
 0x610   : > { %v2893_v48 = vadd.f32 %v2891_v50, %v2881_v13 }
 0x612   : > { %v2904_v32 = vmul.f32 %v2902_v19, %v2893_v48 }
 0x614   : > { %v2906_v11 = vmul.f32 %v2905_v28, %v2904_v32 }
 0x616   : > { %v2908_v60 = vsel %vm2907_vm1, %v2906_v11, 0.0 }
 0x617   : > { %2909 = vadd.xlane.f32.xlu0 %v2908_v60 }
 0x6a0   : > { %v2910_v6 = vpop.xlane.xlu0 %2909 }
 0x6a1   : > { %v2912_v27 = vadd.f32 %v2911_v25, %v2910_v6 }
 0x6a3   : > { %2914 = vst.msk [vmem:[%s438_s14] sm:$0x1] %vm2913_vm3, %v2912_v27 }
 0x6a4 PF: > { %s25_s27 = sadd.s32 1, %s3566_s27  }
 0x6a5   : > { %p22_p5 = scmp.ge.s32.totalorder %s25_s27, 4  }
 0x6a7   :  { %24 = sbr.rel (!%p22_p5) target bundleno = 3 (0x3), region = 123 }

</bundles_post_ra>
